<compile_context>
chip_gen: v7x
topology: tpu7x:2x2x1
jax: 0.10.0
libtpu: 0.0.40
codegen_flags: <defaults>
</compile_context>

<pallas_src>
import functools

import jax
import jax.numpy as jnp
from jax.experimental import pallas as pl
from jax.experimental.pallas import tpu as pltpu

BN_EPS = 1e-5
VMEM_LIMIT_BYTES = 48 * 1024 * 1024   # safe on 64 MiB (v7x) parts


def _compiler_params():
    return pltpu.CompilerParams(
        dimension_semantics=("parallel",),    # megacore-shard the grid axis
        vmem_limit_bytes=VMEM_LIMIT_BYTES,
    )


# ---------------------------------------------------------------------------
# Row-tiling helper: prefer a tile that divides N exactly (no pad / slice).
# ---------------------------------------------------------------------------
def _row_tiling(n, tile_m):
    """Return (tile, padded_n).  padded_n == n whenever a clean divisor of n
    that is a multiple of 8 and <= tile_m exists (always true for OS16 maps)."""
    if n <= tile_m:
        return n, n
    if n % tile_m == 0:
        return tile_m, n
    for t in range(tile_m, 7, -1):
        if n % t == 0 and t % 8 == 0:
            return t, n
    # Awkward N: fall back to zero padding (extra HBM pass, rare).
    return tile_m, pl.cdiv(n, tile_m) * tile_m


# ---------------------------------------------------------------------------
# Fused 1x1-conv (matmul) kernels: bias [+ residual] [+ ReLU] epilogues.
# ---------------------------------------------------------------------------
def _mm_bias_kernel(x_ref, w_ref, b_ref, o_ref, *, relu):
    acc = jnp.dot(x_ref[...], w_ref[...], preferred_element_type=jnp.float32)
    acc = acc + b_ref[...]
    if relu:
        acc = jnp.maximum(acc, 0.0)
    o_ref[...] = acc.astype(o_ref.dtype)


def _mm_bias_res_kernel(x_ref, w_ref, b_ref, r_ref, o_ref, *, relu):
    acc = jnp.dot(x_ref[...], w_ref[...], preferred_element_type=jnp.float32)
    acc = acc + b_ref[...]
    if o_ref.dtype == jnp.bfloat16 and r_ref.dtype == jnp.bfloat16:
        # bf16 epilogue: residual add + ReLU at 2x elements/vreg (v6e/v7x VPU).
        out = acc.astype(jnp.bfloat16) + r_ref[...]
        if relu:
            out = jnp.maximum(out, 0)
        o_ref[...] = out.astype(o_ref.dtype)
    else:
        out = acc + r_ref[...].astype(jnp.float32)
        if relu:
            out = jnp.maximum(out, 0.0)
        o_ref[...] = out.astype(o_ref.dtype)


def _mm_dual_kernel(x_ref, w1_ref, b1_ref, wd_ref, bd_ref, o1_ref, od_ref):
    """conv1+bn1+ReLU and downsample conv+bn share one x-tile DMA."""
    x = x_ref[...]
    a1 = jnp.dot(x, w1_ref[...], preferred_element_type=jnp.float32) + b1_ref[...]
    o1_ref[...] = jnp.maximum(a1, 0.0).astype(o1_ref.dtype)
    ad = jnp.dot(x, wd_ref[...], preferred_element_type=jnp.float32) + bd_ref[...]
    od_ref[...] = ad.astype(od_ref.dtype)


def fused_matmul(x, w, b, residual=None, *, relu, tile_m=512, out_dtype=None):
    """y = act(x @ w + b [+ residual]) as a row-tiled Pallas matmul."""
    n, k = x.shape
    c_out = w.shape[1]
    out_dtype = out_dtype if out_dtype is not None else x.dtype

    tile, n_pad = _row_tiling(n, tile_m)
    if n_pad != n:
        x = jnp.pad(x, ((0, n_pad - n), (0, 0)))
        if residual is not None:
            residual = jnp.pad(residual, ((0, n_pad - n), (0, 0)))
    n_tiles = n_pad // tile

    b2d = b.reshape(1, c_out).astype(jnp.float32)

    # Weight / bias blocks are grid-invariant (index_map -> (0, 0)).
    # TODO(synk): on v7x consider pipeline_mode=pl.Buffered(1) for these specs
    # to halve their VMEM residency under the 64 MiB physical budget.
    x_spec = pl.BlockSpec((tile, k), lambda i: (i, 0))
    w_spec = pl.BlockSpec((k, c_out), lambda i: (0, 0))
    b_spec = pl.BlockSpec((1, c_out), lambda i: (0, 0))
    o_spec = pl.BlockSpec((tile, c_out), lambda i: (i, 0))

    if residual is None:
        kernel = functools.partial(_mm_bias_kernel, relu=relu)
        in_specs = [x_spec, w_spec, b_spec]
        args = (x, w, b2d)
    else:
        kernel = functools.partial(_mm_bias_res_kernel, relu=relu)
        r_spec = pl.BlockSpec((tile, c_out), lambda i: (i, 0))
        in_specs = [x_spec, w_spec, b_spec, r_spec]
        args = (x, w, b2d, residual)

    out = pl.pallas_call(
        kernel,
        out_shape=jax.ShapeDtypeStruct((n_pad, c_out), out_dtype),
        grid_spec=pltpu.PrefetchScalarGridSpec(
            num_scalar_prefetch=0,
            grid=(n_tiles,),
            in_specs=in_specs,
            out_specs=o_spec,
        ),
        compiler_params=_compiler_params(),
    )(*args)

    return out[:n] if n_pad != n else out


def fused_matmul_dual(x, w1, b1, wd, bd, *, tile_m=512, out_dtype=None):
    """Fused conv1(+ReLU) and downsample 1x1 conv: one kernel, one x DMA,
    two weights, two outputs."""
    n, k = x.shape
    c1, cd = w1.shape[1], wd.shape[1]
    out_dtype = out_dtype if out_dtype is not None else x.dtype

    tile, n_pad = _row_tiling(n, tile_m)
    if n_pad != n:
        x = jnp.pad(x, ((0, n_pad - n), (0, 0)))
    n_tiles = n_pad // tile

    b1_2d = b1.reshape(1, c1).astype(jnp.float32)
    bd_2d = bd.reshape(1, cd).astype(jnp.float32)

    h1, res = pl.pallas_call(
        _mm_dual_kernel,
        out_shape=(jax.ShapeDtypeStruct((n_pad, c1), out_dtype),
                   jax.ShapeDtypeStruct((n_pad, cd), out_dtype)),
        grid_spec=pltpu.PrefetchScalarGridSpec(
            num_scalar_prefetch=0,
            grid=(n_tiles,),
            in_specs=[
                pl.BlockSpec((tile, k), lambda i: (i, 0)),
                pl.BlockSpec((k, c1), lambda i: (0, 0)),
                pl.BlockSpec((1, c1), lambda i: (0, 0)),
                pl.BlockSpec((k, cd), lambda i: (0, 0)),
                pl.BlockSpec((1, cd), lambda i: (0, 0)),
            ],
            out_specs=(pl.BlockSpec((tile, c1), lambda i: (i, 0)),
                       pl.BlockSpec((tile, cd), lambda i: (i, 0))),
        ),
        compiler_params=_compiler_params(),
    )(x, w1, b1_2d, wd, bd_2d)

    if n_pad != n:
        h1, res = h1[:n], res[:n]
    return h1, res


# ---------------------------------------------------------------------------
# Dilated 3x3 conv + BN + ReLU: in-kernel 9-shifted-tap accumulation (NHWC).
# ---------------------------------------------------------------------------
def _conv3x3_kernel(x_ref, w_ref, b_ref, o_ref, *, dilation, relu):
    # x_ref: (H+2d, W+2d, C) padded activation tile (one batch element)
    # w_ref: (9, C, C_out) folded weights, tap-major (ky*3 + kx)
    # b_ref: (1, C_out) f32 folded BN bias
    # o_ref: (H, W, C_out)
    d = dilation
    h, w, c_out = o_ref.shape
    c = x_ref.shape[-1]
    acc = None
    for t in range(9):
        ky, kx = divmod(t, 3)
        tap = x_ref[ky * d:ky * d + h, kx * d:kx * d + w, :].reshape(h * w, c)
        m = jnp.dot(tap, w_ref[t], preferred_element_type=jnp.float32)
        acc = m if acc is None else acc + m
    acc = acc + b_ref[...]
    if relu:
        acc = jnp.maximum(acc, 0.0)
    o_ref[...] = acc.reshape(h, w, c_out).astype(o_ref.dtype)


def dilated_conv3x3(x_nhwc, w9, bias, *, dilation, relu=True, out_dtype=None):
    """3x3 conv, stride=1, padding=dilation (same spatial size) + bias (+ReLU).

    x_nhwc: (B, H, W, C), w9: (9, C, C_out) tap-major, bias: (C_out,) f32.
    TODO(synk): for very large spatial maps add an H-tile grid axis with a
    halo of `dilation` rows (pl.Element or manual DMA) instead of one whole
    image per grid step.
    """
    b, h, w, c = x_nhwc.shape
    c_out = w9.shape[-1]
    out_dtype = out_dtype if out_dtype is not None else x_nhwc.dtype
    d = dilation

    xp = jnp.pad(x_nhwc, ((0, 0), (d, d), (d, d), (0, 0)))
    hp, wp = h + 2 * d, w + 2 * d
    b2d = bias.reshape(1, c_out).astype(jnp.float32)

    kernel = functools.partial(_conv3x3_kernel, dilation=d, relu=relu)
    return pl.pallas_call(
        kernel,
        out_shape=jax.ShapeDtypeStruct((b, h, w, c_out), out_dtype),
        grid_spec=pltpu.PrefetchScalarGridSpec(
            num_scalar_prefetch=0,
            grid=(b,),
            in_specs=[
                pl.BlockSpec((None, hp, wp, c), lambda i: (i, 0, 0, 0)),
                pl.BlockSpec((9, c, c_out), lambda i: (0, 0, 0)),
                pl.BlockSpec((1, c_out), lambda i: (0, 0)),
            ],
            out_specs=pl.BlockSpec((None, h, w, c_out), lambda i: (i, 0, 0, 0)),
        ),
        compiler_params=_compiler_params(),
    )(xp, w9, b2d)


# ---------------------------------------------------------------------------
# Conv+BN folding (inference-mode).
# ---------------------------------------------------------------------------
def fold_bn(w, gamma, beta, mean, var, eps=BN_EPS):
    """Fold eval-mode BatchNorm into the preceding bias-free conv.

    w: PyTorch conv weight (C_out, C_in, kh, kw).  Returns (w_mat, bias) with
    w_mat of shape (kh*kw*C_in, C_out), tap-major / channel-minor order."""
    scale = gamma / jnp.sqrt(var + eps)
    bias = beta - mean * scale
    c_out, c_in, kh, kw = w.shape
    w = w * scale[:, None, None, None]
    w_mat = jnp.transpose(w, (2, 3, 1, 0)).reshape(kh * kw * c_in, c_out)
    return w_mat, bias


def fold_block_params(raw, compute_dtype):
    w1, b1 = fold_bn(raw["w1"], *raw["bn1"])
    w2m, b2 = fold_bn(raw["w2"], *raw["bn2"])          # (9*C, C_out)
    w3, b3 = fold_bn(raw["w3"], *raw["bn3"])
    w2 = w2m.reshape(9, -1, w2m.shape[1])              # tap-major (9, C, C_out)
    params = {
        "w1": w1.astype(compute_dtype), "b1": b1,
        "w2": w2.astype(compute_dtype), "b2": b2,
        "w3": w3.astype(compute_dtype), "b3": b3,
        "wd": None, "bd": None,
    }
    if raw["wd"] is not None:
        wd, bd = fold_bn(raw["wd"], *raw["bnd"])
        params["wd"] = wd.astype(compute_dtype)
        params["bd"] = bd
    return params


# ---------------------------------------------------------------------------
# Bottleneck_2 forward (stride=1, as in layer5) and the layer5 stack.
# ---------------------------------------------------------------------------
def bottleneck2_forward(x_flat, spatial, params, *, dilation, tile_m,
                        compute_dtype, out_dtype):
    b, h, w = spatial

    if params["wd"] is not None:
        # conv1+bn1+ReLU and downsample conv+bn share one x-tile DMA.
        h1, res = fused_matmul_dual(x_flat, params["w1"], params["b1"],
                                    params["wd"], params["bd"],
                                    tile_m=tile_m, out_dtype=compute_dtype)
    else:
        h1 = fused_matmul(x_flat, params["w1"], params["b1"], relu=True,
                          tile_m=tile_m, out_dtype=compute_dtype)
        res = x_flat

    # conv2 (3x3, dilation=d, padding=d) + bn2 + ReLU: in-kernel 9-tap accum.
    c = h1.shape[1]
    h2 = dilated_conv3x3(h1.reshape(b, h, w, c), params["w2"], params["b2"],
                         dilation=dilation, relu=True, out_dtype=compute_dtype)
    h2_flat = h2.reshape(b * h * w, h2.shape[-1])

    # conv3 (1x1) + bn3, fused with residual add + final ReLU.
    return fused_matmul(h2_flat, params["w3"], params["b3"], residual=res,
                        relu=True, tile_m=tile_m, out_dtype=out_dtype)


@functools.partial(jax.jit, static_argnames=("dilation", "tile_m"))
def layer5_forward(c4_nchw, blocks, *, dilation=2, tile_m=512):
    """Pallas forward of ResNet_Bottleneck_OS16.layer5 (3 x Bottleneck_2)."""
    compute_dtype = blocks[0]["w1"].dtype
    b, c, h, w = c4_nchw.shape
    # Single NCHW -> NHWC transpose at the boundary; everything downstream is
    # channel-last (lane-dense) and flattened to (B*H*W, C).
    x = jnp.transpose(c4_nchw, (0, 2, 3, 1)).reshape(b * h * w, c)
    x = x.astype(compute_dtype)
    n_blocks = len(blocks)
    for idx, p in enumerate(blocks):
        last = idx == n_blocks - 1
        x = bottleneck2_forward(
            x, (b, h, w), p, dilation=dilation, tile_m=tile_m,
            compute_dtype=compute_dtype,
            out_dtype=jnp.float32 if last else compute_dtype)
    out = x.reshape(b, h, w, x.shape[1])          # already f32 (in-kernel cast)
    return jnp.transpose(out, (0, 3, 1, 2))


# ---------------------------------------------------------------------------
# Synthetic params and pure-JAX references.
# ---------------------------------------------------------------------------
def make_bottleneck_raw_params(key, in_channels, channels):
    """Synthetic PyTorch-layout params for one Bottleneck_2 (eval-mode BN)."""
    expansion = 4
    out_channels = expansion * channels
    keys = jax.random.split(key, 16)

    def conv_w(k, c_out, c_in, kh, kw):
        fan_in = c_in * kh * kw
        return (fan_in ** -0.5) * jax.random.normal(
            k, (c_out, c_in, kh, kw), jnp.float32)

    def bn_p(ks, c):
        g = 1.0 + 0.1 * jax.random.normal(ks[0], (c,), jnp.float32)
        bt = 0.1 * jax.random.normal(ks[1], (c,), jnp.float32)
        mu = 0.1 * jax.random.normal(ks[2], (c,), jnp.float32)
        var = jax.random.uniform(ks[3], (c,), jnp.float32, 0.5, 1.5)
        return (g, bt, mu, var)

    raw = {
        "w1": conv_w(keys[0], channels, in_channels, 1, 1),
        "bn1": bn_p(keys[3:7], channels),
        "w2": conv_w(keys[1], channels, channels, 3, 3),
        "bn2": bn_p(keys[7:11], channels),
        "w3": conv_w(keys[2], out_channels, channels, 1, 1),
        "bn3": bn_p(keys[11:15], out_channels),
        "wd": None, "bnd": None,
    }
    if in_channels != out_channels:           # stride=1 in layer5, so this is
        kd, kbn = jax.random.split(keys[15])  # the only downsample trigger
        raw["wd"] = conv_w(kd, out_channels, in_channels, 1, 1)
        raw["bnd"] = bn_p(jax.random.split(kbn, 4), out_channels)
    return raw


def layer5_reference(c4_nchw, blocks, *, dilation=2):
    """Same-precision plain-JAX mirror of the kernel math."""
    compute_dtype = blocks[0]["w1"].dtype
    b, c, h, w = c4_nchw.shape
    d = dilation
    x = jnp.transpose(c4_nchw, (0, 2, 3, 1)).reshape(b * h * w, c)
    x = x.astype(compute_dtype)

    def mm(a, wt, bias):
        return jnp.dot(a, wt, preferred_element_type=jnp.float32) + bias

    n_blocks = len(blocks)
    for idx, p in enumerate(blocks):
        last = idx == n_blocks - 1
        out_dtype = jnp.float32 if last else compute_dtype
        h1 = jnp.maximum(mm(x, p["w1"], p["b1"]), 0.0).astype(compute_dtype)
        res = (mm(x, p["wd"], p["bd"]).astype(compute_dtype)
               if p["wd"] is not None else x)
        ci = h1.shape[1]
        xp = jnp.pad(h1.reshape(b, h, w, ci),
                     ((0, 0), (d, d), (d, d), (0, 0)))
        acc = None
        for t in range(9):
            ky, kx = divmod(t, 3)
            tap = xp[:, ky * d:ky * d + h, kx * d:kx * d + w, :]
            m = jnp.dot(tap.reshape(b * h * w, ci), p["w2"][t],
                        preferred_element_type=jnp.float32)
            acc = m if acc is None else acc + m
        h2 = jnp.maximum(acc + p["b2"], 0.0).astype(compute_dtype)
        acc3 = mm(h2, p["w3"], p["b3"])
        if out_dtype == jnp.bfloat16 and res.dtype == jnp.bfloat16:
            x = jnp.maximum(acc3.astype(jnp.bfloat16) + res, 0)
        else:
            x = jnp.maximum(acc3 + res.astype(jnp.float32), 0.0).astype(out_dtype)
    out = x.reshape(b, h, w, x.shape[1]).astype(jnp.float32)
    return jnp.transpose(out, (0, 3, 1, 2))


def _bn_nchw(x, g, b, m, v, eps=BN_EPS):
    return (g[None, :, None, None] * (x - m[None, :, None, None])
            / jnp.sqrt(v[None, :, None, None] + eps) + b[None, :, None, None])


def _conv_nchw(x, w, dilation=1, padding=0):
    return jax.lax.conv_general_dilated(
        x, w, window_strides=(1, 1),
        padding=((padding, padding), (padding, padding)),
        rhs_dilation=(dilation, dilation),
        dimension_numbers=("NCHW", "OIHW", "NCHW"))


def layer5_reference_f32(x, raw_blocks, *, dilation=2):
    """Full-f32 conv/BN reference matching Bottleneck_2.forward exactly."""
    for p in raw_blocks:
        out = jax.nn.relu(_bn_nchw(_conv_nchw(x, p["w1"]), *p["bn1"]))
        out = jax.nn.relu(_bn_nchw(
            _conv_nchw(out, p["w2"], dilation=dilation, padding=dilation),
            *p["bn2"]))
        out = _bn_nchw(_conv_nchw(out, p["w3"]), *p["bn3"])
        sc = (_bn_nchw(_conv_nchw(x, p["wd"]), *p["bnd"])
              if p["wd"] is not None else x)
        x = jax.nn.relu(out + sc)
    return x


if __name__ == "__main__":
    key = jax.random.PRNGKey(0)
    k_x, k_p = jax.random.split(key)

    # Scaled-down layer5: Bottleneck_2(in=64, channels=32, out=128) x 3,
    # stride=1, dilation=2.  (Real model: in=1024, channels=512, out=2048.)
    B, C_IN, H, W = 2, 64, 16, 16
    CHANNELS, NUM_BLOCKS, DILATION = 32, 3, 2

    x = jax.random.normal(k_x, (B, C_IN, H, W), jnp.float32)

    raw_blocks = []
    in_c = C_IN
    for kb in jax.random.split(k_p, NUM_BLOCKS):
        raw_blocks.append(make_bottleneck_raw_params(kb, in_c, CHANNELS))
        in_c = 4 * CHANNELS

    compute_dtype = jnp.bfloat16   # bf16 MXU inputs, f32 accumulation
    blocks = [fold_block_params(p, compute_dtype) for p in raw_blocks]

    # tile_m=256 keeps >= 2 row tiles at this small test size (default 512).
    out = layer5_forward(x, blocks, dilation=DILATION, tile_m=256)
    out = jax.block_until_ready(out)
    assert out.shape == (B, 4 * CHANNELS, H, W), out.shape
    assert out.dtype == jnp.float32, out.dtype

    # Check 1: same-precision reference (validates the Pallas kernels).
    ref = layer5_reference(x, blocks, dilation=DILATION)
    assert jnp.allclose(out, ref, atol=2e-2, rtol=2e-2), \
        float(jnp.max(jnp.abs(out - ref)))

    # Check 2: full-f32 conv/BN reference (validates module semantics; loose
    # tolerance only accounts for the bf16 compute path).
    ref32 = layer5_reference_f32(x, raw_blocks, dilation=DILATION)
    assert jnp.allclose(out, ref32, atol=1e-1, rtol=1e-1), \
        float(jnp.max(jnp.abs(out - ref32)))

    print("KERNEL_OK")
</pallas_src>

<mosaic_0001>
module attributes {stable_mosaic.version = 11 : i64} {
  func.func @_mm_dual_kernel(%arg0: i32, %arg1: memref<256x64xbf16, #tpu.memory_space<vmem>>, %arg2: memref<64x32xbf16, #tpu.memory_space<vmem>>, %arg3: memref<1x32xf32, #tpu.memory_space<vmem>>, %arg4: memref<64x128xbf16, #tpu.memory_space<vmem>>, %arg5: memref<1x128xf32, #tpu.memory_space<vmem>>, %arg6: memref<256x32xbf16, #tpu.memory_space<vmem>>, %arg7: memref<256x128xbf16, #tpu.memory_space<vmem>>) attributes {dimension_semantics = [#tpu.dimension_semantics<parallel>], iteration_bounds = array<i64: 2>, scalar_prefetch = 0 : i64, scratch_operands = 0 : i64, tpu.core_type = #tpu.core_type<tc>, window_params = [{transform_indices = @transform_0, window_bounds = array<i64: 256, 64>}, {pipeline_mode = #tpu.pipeline_mode<synchronous>, transform_indices = @transform_1, window_bounds = array<i64: 64, 32>}, {pipeline_mode = #tpu.pipeline_mode<synchronous>, transform_indices = @transform_2, window_bounds = array<i64: 1, 32>}, {pipeline_mode = #tpu.pipeline_mode<synchronous>, transform_indices = @transform_3, window_bounds = array<i64: 64, 128>}, {pipeline_mode = #tpu.pipeline_mode<synchronous>, transform_indices = @transform_4, window_bounds = array<i64: 1, 128>}, {transform_indices = @transform_5, window_bounds = array<i64: 256, 32>}, {transform_indices = @transform_6, window_bounds = array<i64: 256, 128>}]} {
    %c0 = arith.constant 0 : index
    %c0_0 = arith.constant 0 : index
    %0 = vector.load %arg1[%c0, %c0_0] : memref<256x64xbf16, #tpu.memory_space<vmem>>, vector<256x64xbf16>
    %c0_1 = arith.constant 0 : index
    %c0_2 = arith.constant 0 : index
    %1 = vector.load %arg2[%c0_1, %c0_2] : memref<64x32xbf16, #tpu.memory_space<vmem>>, vector<64x32xbf16>
    %cst = arith.constant dense<0.000000e+00> : vector<256x32xf32>
    %2 = tpu.matmul %0, %1, %cst {dimension_numbers = #tpu.dot_dimension_numbers<[1], [0], [0], [1], [0, 0, 1, 1], [], []>} : vector<256x64xbf16>, vector<64x32xbf16>, vector<256x32xf32> -> vector<256x32xf32>
    %c0_3 = arith.constant 0 : index
    %c0_4 = arith.constant 0 : index
    %3 = vector.load %arg3[%c0_3, %c0_4] : memref<1x32xf32, #tpu.memory_space<vmem>>, vector<1x32xf32>
    %4 = vector.broadcast %3 : vector<1x32xf32> to vector<256x32xf32>
    %5 = arith.addf %2, %4 : vector<256x32xf32>
    %cst_5 = arith.constant 0.000000e+00 : f32
    %6 = vector.broadcast %cst_5 : f32 to vector<256x32xf32>
    %7 = arith.maximumf %5, %6 : vector<256x32xf32>
    %8 = arith.truncf %7 : vector<256x32xf32> to vector<256x32xbf16>
    %c0_6 = arith.constant 0 : index
    %c0_7 = arith.constant 0 : index
    %9 = vector.load %arg6[%c0_6, %c0_7] : memref<256x32xbf16, #tpu.memory_space<vmem>>, vector<256x32xbf16>
    tpu.vector_store %arg6[%c0_6, %c0_7], %8 {strides = array<i32>} : memref<256x32xbf16, #tpu.memory_space<vmem>>, vector<256x32xbf16>,
    %c0_8 = arith.constant 0 : index
    %c0_9 = arith.constant 0 : index
    %10 = vector.load %arg4[%c0_8, %c0_9] : memref<64x128xbf16, #tpu.memory_space<vmem>>, vector<64x128xbf16>
    %cst_10 = arith.constant dense<0.000000e+00> : vector<256x128xf32>
    %11 = tpu.matmul %0, %10, %cst_10 {dimension_numbers = #tpu.dot_dimension_numbers<[1], [0], [0], [1], [0, 0, 1, 1], [], []>} : vector<256x64xbf16>, vector<64x128xbf16>, vector<256x128xf32> -> vector<256x128xf32>
    %c0_11 = arith.constant 0 : index
    %c0_12 = arith.constant 0 : index
    %12 = vector.load %arg5[%c0_11, %c0_12] : memref<1x128xf32, #tpu.memory_space<vmem>>, vector<1x128xf32>
    %13 = vector.broadcast %12 : vector<1x128xf32> to vector<256x128xf32>
    %14 = arith.addf %11, %13 : vector<256x128xf32>
    %15 = arith.truncf %14 : vector<256x128xf32> to vector<256x128xbf16>
    %c0_13 = arith.constant 0 : index
    %c0_14 = arith.constant 0 : index
    %16 = vector.load %arg7[%c0_13, %c0_14] : memref<256x128xbf16, #tpu.memory_space<vmem>>, vector<256x128xbf16>
    tpu.vector_store %arg7[%c0_13, %c0_14], %15 {strides = array<i32>} : memref<256x128xbf16, #tpu.memory_space<vmem>>, vector<256x128xbf16>,
    return
  }
  func.func @transform_0(%arg0: i32) -> (i32, i32) {
    %c0_i32 = arith.constant 0 : i32
    %c0_i32_0 = arith.constant 0 : i32
    return %arg0, %c0_i32 : i32, i32
  }
  func.func @transform_1(%arg0: i32) -> (i32, i32) {
    %c0_i32 = arith.constant 0 : i32
    %c0_i32_0 = arith.constant 0 : i32
    %c0_i32_1 = arith.constant 0 : i32
    return %c0_i32, %c0_i32_0 : i32, i32
  }
  func.func @transform_2(%arg0: i32) -> (i32, i32) {
    %c0_i32 = arith.constant 0 : i32
    %c0_i32_0 = arith.constant 0 : i32
    %c0_i32_1 = arith.constant 0 : i32
    return %c0_i32, %c0_i32_0 : i32, i32
  }
  func.func @transform_3(%arg0: i32) -> (i32, i32) {
    %c0_i32 = arith.constant 0 : i32
    %c0_i32_0 = arith.constant 0 : i32
    %c0_i32_1 = arith.constant 0 : i32
    return %c0_i32, %c0_i32_0 : i32, i32
  }
  func.func @transform_4(%arg0: i32) -> (i32, i32) {
    %c0_i32 = arith.constant 0 : i32
    %c0_i32_0 = arith.constant 0 : i32
    %c0_i32_1 = arith.constant 0 : i32
    return %c0_i32, %c0_i32_0 : i32, i32
  }
  func.func @transform_5(%arg0: i32) -> (i32, i32) {
    %c0_i32 = arith.constant 0 : i32
    %c0_i32_0 = arith.constant 0 : i32
    return %arg0, %c0_i32 : i32, i32
  }
  func.func @transform_6(%arg0: i32) -> (i32, i32) {
    %c0_i32 = arith.constant 0 : i32
    %c0_i32_0 = arith.constant 0 : i32
    return %arg0, %c0_i32 : i32, i32
  }
}

module attributes {stable_mosaic.version = 11 : i64} {
  func.func @_conv3x3_kernel(%arg0: i32, %arg1: memref<1x20x20x32xbf16, #tpu.memory_space<vmem>>, %arg2: memref<9x32x32xbf16, #tpu.memory_space<vmem>>, %arg3: memref<1x32xf32, #tpu.memory_space<vmem>>, %arg4: memref<1x16x16x32xbf16, #tpu.memory_space<vmem>>) attributes {dimension_semantics = [#tpu.dimension_semantics<parallel>], iteration_bounds = array<i64: 2>, scalar_prefetch = 0 : i64, scratch_operands = 0 : i64, tpu.core_type = #tpu.core_type<tc>, window_params = [{transform_indices = @transform_0, window_bounds = array<i64: 1, 20, 20, 32>}, {pipeline_mode = #tpu.pipeline_mode<synchronous>, transform_indices = @transform_1, window_bounds = array<i64: 9, 32, 32>}, {pipeline_mode = #tpu.pipeline_mode<synchronous>, transform_indices = @transform_2, window_bounds = array<i64: 1, 32>}, {transform_indices = @transform_3, window_bounds = array<i64: 1, 16, 16, 32>}]} {
    %c0 = arith.constant 0 : index
    %c0_0 = arith.constant 0 : index
    %c0_1 = arith.constant 0 : index
    %c0_2 = arith.constant 0 : index
    %0 = vector.load %arg1[%c0, %c0_0, %c0_1, %c0_2] : memref<1x20x20x32xbf16, #tpu.memory_space<vmem>>, vector<1x16x16x32xbf16>
    %1 = vector.shape_cast %0 : vector<1x16x16x32xbf16> to vector<16x16x32xbf16>
    %2 = vector.shape_cast %1 : vector<16x16x32xbf16> to vector<256x32xbf16>
    %c0_3 = arith.constant 0 : index
    %c0_4 = arith.constant 0 : index
    %c0_5 = arith.constant 0 : index
    %3 = vector.load %arg2[%c0_3, %c0_4, %c0_5] : memref<9x32x32xbf16, #tpu.memory_space<vmem>>, vector<1x32x32xbf16>
    %4 = vector.shape_cast %3 : vector<1x32x32xbf16> to vector<32x32xbf16>
    %cst = arith.constant dense<0.000000e+00> : vector<256x32xf32>
    %5 = tpu.matmul %2, %4, %cst {dimension_numbers = #tpu.dot_dimension_numbers<[1], [0], [0], [1], [0, 0, 1, 1], [], []>} : vector<256x32xbf16>, vector<32x32xbf16>, vector<256x32xf32> -> vector<256x32xf32>
    %c0_6 = arith.constant 0 : index
    %c0_7 = arith.constant 0 : index
    %c2 = arith.constant 2 : index
    %c0_8 = arith.constant 0 : index
    %6 = vector.load %arg1[%c0_6, %c0_7, %c2, %c0_8] : memref<1x20x20x32xbf16, #tpu.memory_space<vmem>>, vector<1x16x16x32xbf16>
    %7 = vector.shape_cast %6 : vector<1x16x16x32xbf16> to vector<16x16x32xbf16>
    %8 = vector.shape_cast %7 : vector<16x16x32xbf16> to vector<256x32xbf16>
    %c1 = arith.constant 1 : index
    %c0_9 = arith.constant 0 : index
    %c0_10 = arith.constant 0 : index
    %9 = vector.load %arg2[%c1, %c0_9, %c0_10] : memref<9x32x32xbf16, #tpu.memory_space<vmem>>, vector<1x32x32xbf16>
    %10 = vector.shape_cast %9 : vector<1x32x32xbf16> to vector<32x32xbf16>
    %cst_11 = arith.constant dense<0.000000e+00> : vector<256x32xf32>
    %11 = tpu.matmul %8, %10, %cst_11 {dimension_numbers = #tpu.dot_dimension_numbers<[1], [0], [0], [1], [0, 0, 1, 1], [], []>} : vector<256x32xbf16>, vector<32x32xbf16>, vector<256x32xf32> -> vector<256x32xf32>
    %12 = arith.addf %5, %11 : vector<256x32xf32>
    %c0_12 = arith.constant 0 : index
    %c0_13 = arith.constant 0 : index
    %c4 = arith.constant 4 : index
    %c0_14 = arith.constant 0 : index
    %13 = vector.load %arg1[%c0_12, %c0_13, %c4, %c0_14] : memref<1x20x20x32xbf16, #tpu.memory_space<vmem>>, vector<1x16x16x32xbf16>
    %14 = vector.shape_cast %13 : vector<1x16x16x32xbf16> to vector<16x16x32xbf16>
    %15 = vector.shape_cast %14 : vector<16x16x32xbf16> to vector<256x32xbf16>
    %c2_15 = arith.constant 2 : index
    %c0_16 = arith.constant 0 : index
    %c0_17 = arith.constant 0 : index
    %16 = vector.load %arg2[%c2_15, %c0_16, %c0_17] : memref<9x32x32xbf16, #tpu.memory_space<vmem>>, vector<1x32x32xbf16>
    %17 = vector.shape_cast %16 : vector<1x32x32xbf16> to vector<32x32xbf16>
    %cst_18 = arith.constant dense<0.000000e+00> : vector<256x32xf32>
    %18 = tpu.matmul %15, %17, %cst_18 {dimension_numbers = #tpu.dot_dimension_numbers<[1], [0], [0], [1], [0, 0, 1, 1], [], []>} : vector<256x32xbf16>, vector<32x32xbf16>, vector<256x32xf32> -> vector<256x32xf32>
    %19 = arith.addf %12, %18 : vector<256x32xf32>
    %c0_19 = arith.constant 0 : index
    %c2_20 = arith.constant 2 : index
    %c0_21 = arith.constant 0 : index
    %c0_22 = arith.constant 0 : index
    %20 = vector.load %arg1[%c0_19, %c2_20, %c0_21, %c0_22] : memref<1x20x20x32xbf16, #tpu.memory_space<vmem>>, vector<1x16x16x32xbf16>
    %21 = vector.shape_cast %20 : vector<1x16x16x32xbf16> to vector<16x16x32xbf16>
    %22 = vector.shape_cast %21 : vector<16x16x32xbf16> to vector<256x32xbf16>
    %c3 = arith.constant 3 : index
    %c0_23 = arith.constant 0 : index
    %c0_24 = arith.constant 0 : index
    %23 = vector.load %arg2[%c3, %c0_23, %c0_24] : memref<9x32x32xbf16, #tpu.memory_space<vmem>>, vector<1x32x32xbf16>
    %24 = vector.shape_cast %23 : vector<1x32x32xbf16> to vector<32x32xbf16>
    %cst_25 = arith.constant dense<0.000000e+00> : vector<256x32xf32>
    %25 = tpu.matmul %22, %24, %cst_25 {dimension_numbers = #tpu.dot_dimension_numbers<[1], [0], [0], [1], [0, 0, 1, 1], [], []>} : vector<256x32xbf16>, vector<32x32xbf16>, vector<256x32xf32> -> vector<256x32xf32>
    %26 = arith.addf %19, %25 : vector<256x32xf32>
    %c0_26 = arith.constant 0 : index
    %c2_27 = arith.constant 2 : index
    %c2_28 = arith.constant 2 : index
    %c0_29 = arith.constant 0 : index
    %27 = vector.load %arg1[%c0_26, %c2_27, %c2_28, %c0_29] : memref<1x20x20x32xbf16, #tpu.memory_space<vmem>>, vector<1x16x16x32xbf16>
    %28 = vector.shape_cast %27 : vector<1x16x16x32xbf16> to vector<16x16x32xbf16>
    %29 = vector.shape_cast %28 : vector<16x16x32xbf16> to vector<256x32xbf16>
    %c4_30 = arith.constant 4 : index
    %c0_31 = arith.constant 0 : index
    %c0_32 = arith.constant 0 : index
    %30 = vector.load %arg2[%c4_30, %c0_31, %c0_32] : memref<9x32x32xbf16, #tpu.memory_space<vmem>>, vector<1x32x32xbf16>
    %31 = vector.shape_cast %30 : vector<1x32x32xbf16> to vector<32x32xbf16>
    %cst_33 = arith.constant dense<0.000000e+00> : vector<256x32xf32>
    %32 = tpu.matmul %29, %31, %cst_33 {dimension_numbers = #tpu.dot_dimension_numbers<[1], [0], [0], [1], [0, 0, 1, 1], [], []>} : vector<256x32xbf16>, vector<32x32xbf16>, vector<256x32xf32> -> vector<256x32xf32>
    %33 = arith.addf %26, %32 : vector<256x32xf32>
    %c0_34 = arith.constant 0 : index
    %c2_35 = arith.constant 2 : index
    %c4_36 = arith.constant 4 : index
    %c0_37 = arith.constant 0 : index
    %34 = vector.load %arg1[%c0_34, %c2_35, %c4_36, %c0_37] : memref<1x20x20x32xbf16, #tpu.memory_space<vmem>>, vector<1x16x16x32xbf16>
    %35 = vector.shape_cast %34 : vector<1x16x16x32xbf16> to vector<16x16x32xbf16>
    %36 = vector.shape_cast %35 : vector<16x16x32xbf16> to vector<256x32xbf16>
    %c5 = arith.constant 5 : index
    %c0_38 = arith.constant 0 : index
    %c0_39 = arith.constant 0 : index
    %37 = vector.load %arg2[%c5, %c0_38, %c0_39] : memref<9x32x32xbf16, #tpu.memory_space<vmem>>, vector<1x32x32xbf16>
    %38 = vector.shape_cast %37 : vector<1x32x32xbf16> to vector<32x32xbf16>
    %cst_40 = arith.constant dense<0.000000e+00> : vector<256x32xf32>
    %39 = tpu.matmul %36, %38, %cst_40 {dimension_numbers = #tpu.dot_dimension_numbers<[1], [0], [0], [1], [0, 0, 1, 1], [], []>} : vector<256x32xbf16>, vector<32x32xbf16>, vector<256x32xf32> -> vector<256x32xf32>
    %40 = arith.addf %33, %39 : vector<256x32xf32>
    %c0_41 = arith.constant 0 : index
    %c4_42 = arith.constant 4 : index
    %c0_43 = arith.constant 0 : index
    %c0_44 = arith.constant 0 : index
    %41 = vector.load %arg1[%c0_41, %c4_42, %c0_43, %c0_44] : memref<1x20x20x32xbf16, #tpu.memory_space<vmem>>, vector<1x16x16x32xbf16>
    %42 = vector.shape_cast %41 : vector<1x16x16x32xbf16> to vector<16x16x32xbf16>
    %43 = vector.shape_cast %42 : vector<16x16x32xbf16> to vector<256x32xbf16>
    %c6 = arith.constant 6 : index
    %c0_45 = arith.constant 0 : index
    %c0_46 = arith.constant 0 : index
    %44 = vector.load %arg2[%c6, %c0_45, %c0_46] : memref<9x32x32xbf16, #tpu.memory_space<vmem>>, vector<1x32x32xbf16>
    %45 = vector.shape_cast %44 : vector<1x32x32xbf16> to vector<32x32xbf16>
    %cst_47 = arith.constant dense<0.000000e+00> : vector<256x32xf32>
    %46 = tpu.matmul %43, %45, %cst_47 {dimension_numbers = #tpu.dot_dimension_numbers<[1], [0], [0], [1], [0, 0, 1, 1], [], []>} : vector<256x32xbf16>, vector<32x32xbf16>, vector<256x32xf32> -> vector<256x32xf32>
    %47 = arith.addf %40, %46 : vector<256x32xf32>
    %c0_48 = arith.constant 0 : index
    %c4_49 = arith.constant 4 : index
    %c2_50 = arith.constant 2 : index
    %c0_51 = arith.constant 0 : index
    %48 = vector.load %arg1[%c0_48, %c4_49, %c2_50, %c0_51] : memref<1x20x20x32xbf16, #tpu.memory_space<vmem>>, vector<1x16x16x32xbf16>
    %49 = vector.shape_cast %48 : vector<1x16x16x32xbf16> to vector<16x16x32xbf16>
    %50 = vector.shape_cast %49 : vector<16x16x32xbf16> to vector<256x32xbf16>
    %c7 = arith.constant 7 : index
    %c0_52 = arith.constant 0 : index
    %c0_53 = arith.constant 0 : index
    %51 = vector.load %arg2[%c7, %c0_52, %c0_53] : memref<9x32x32xbf16, #tpu.memory_space<vmem>>, vector<1x32x32xbf16>
    %52 = vector.shape_cast %51 : vector<1x32x32xbf16> to vector<32x32xbf16>
    %cst_54 = arith.constant dense<0.000000e+00> : vector<256x32xf32>
    %53 = tpu.matmul %50, %52, %cst_54 {dimension_numbers = #tpu.dot_dimension_numbers<[1], [0], [0], [1], [0, 0, 1, 1], [], []>} : vector<256x32xbf16>, vector<32x32xbf16>, vector<256x32xf32> -> vector<256x32xf32>
    %54 = arith.addf %47, %53 : vector<256x32xf32>
    %c0_55 = arith.constant 0 : index
    %c4_56 = arith.constant 4 : index
    %c4_57 = arith.constant 4 : index
    %c0_58 = arith.constant 0 : index
    %55 = vector.load %arg1[%c0_55, %c4_56, %c4_57, %c0_58] : memref<1x20x20x32xbf16, #tpu.memory_space<vmem>>, vector<1x16x16x32xbf16>
    %56 = vector.shape_cast %55 : vector<1x16x16x32xbf16> to vector<16x16x32xbf16>
    %57 = vector.shape_cast %56 : vector<16x16x32xbf16> to vector<256x32xbf16>
    %c8 = arith.constant 8 : index
    %c0_59 = arith.constant 0 : index
    %c0_60 = arith.constant 0 : index
    %58 = vector.load %arg2[%c8, %c0_59, %c0_60] : memref<9x32x32xbf16, #tpu.memory_space<vmem>>, vector<1x32x32xbf16>
    %59 = vector.shape_cast %58 : vector<1x32x32xbf16> to vector<32x32xbf16>
    %cst_61 = arith.constant dense<0.000000e+00> : vector<256x32xf32>
    %60 = tpu.matmul %57, %59, %cst_61 {dimension_numbers = #tpu.dot_dimension_numbers<[1], [0], [0], [1], [0, 0, 1, 1], [], []>} : vector<256x32xbf16>, vector<32x32xbf16>, vector<256x32xf32> -> vector<256x32xf32>
    %61 = arith.addf %54, %60 : vector<256x32xf32>
    %c0_62 = arith.constant 0 : index
    %c0_63 = arith.constant 0 : index
    %62 = vector.load %arg3[%c0_62, %c0_63] : memref<1x32xf32, #tpu.memory_space<vmem>>, vector<1x32xf32>
    %63 = vector.broadcast %62 : vector<1x32xf32> to vector<256x32xf32>
    %64 = arith.addf %61, %63 : vector<256x32xf32>
    %cst_64 = arith.constant 0.000000e+00 : f32
    %65 = vector.broadcast %cst_64 : f32 to vector<256x32xf32>
    %66 = arith.maximumf %64, %65 : vector<256x32xf32>
    %67 = vector.shape_cast %66 : vector<256x32xf32> to vector<16x16x32xf32>
    %68 = arith.truncf %67 : vector<16x16x32xf32> to vector<16x16x32xbf16>
    %c0_65 = arith.constant 0 : index
    %c0_66 = arith.constant 0 : index
    %c0_67 = arith.constant 0 : index
    %c0_68 = arith.constant 0 : index
    %69 = vector.load %arg4[%c0_65, %c0_66, %c0_67, %c0_68] : memref<1x16x16x32xbf16, #tpu.memory_space<vmem>>, vector<1x16x16x32xbf16>
    %70 = vector.shape_cast %69 : vector<1x16x16x32xbf16> to vector<16x16x32xbf16>
    %71 = vector.shape_cast %68 : vector<16x16x32xbf16> to vector<1x16x16x32xbf16>
    tpu.vector_store %arg4[%c0_65, %c0_66, %c0_67, %c0_68], %71 {strides = array<i32>} : memref<1x16x16x32xbf16, #tpu.memory_space<vmem>>, vector<1x16x16x32xbf16>,
    return
  }
  func.func @transform_0(%arg0: i32) -> (i32, i32, i32, i32) {
    %c0_i32 = arith.constant 0 : i32
    %c0_i32_0 = arith.constant 0 : i32
    %c0_i32_1 = arith.constant 0 : i32
    %c0_i32_2 = arith.constant 0 : i32
    return %arg0, %c0_i32, %c0_i32_0, %c0_i32_1 : i32, i32, i32, i32
  }
  func.func @transform_1(%arg0: i32) -> (i32, i32, i32) {
    %c0_i32 = arith.constant 0 : i32
    %c0_i32_0 = arith.constant 0 : i32
    %c0_i32_1 = arith.constant 0 : i32
    %c0_i32_2 = arith.constant 0 : i32
    return %c0_i32, %c0_i32_0, %c0_i32_1 : i32, i32, i32
  }
  func.func @transform_2(%arg0: i32) -> (i32, i32) {
    %c0_i32 = arith.constant 0 : i32
    %c0_i32_0 = arith.constant 0 : i32
    %c0_i32_1 = arith.constant 0 : i32
    return %c0_i32, %c0_i32_0 : i32, i32
  }
  func.func @transform_3(%arg0: i32) -> (i32, i32, i32, i32) {
    %c0_i32 = arith.constant 0 : i32
    %c0_i32_0 = arith.constant 0 : i32
    %c0_i32_1 = arith.constant 0 : i32
    %c0_i32_2 = arith.constant 0 : i32
    return %arg0, %c0_i32, %c0_i32_0, %c0_i32_1 : i32, i32, i32, i32
  }
}

module attributes {stable_mosaic.version = 11 : i64} {
  func.func @_mm_bias_res_kernel(%arg0: i32, %arg1: memref<256x32xbf16, #tpu.memory_space<vmem>>, %arg2: memref<32x128xbf16, #tpu.memory_space<vmem>>, %arg3: memref<1x128xf32, #tpu.memory_space<vmem>>, %arg4: memref<256x128xbf16, #tpu.memory_space<vmem>>, %arg5: memref<256x128xbf16, #tpu.memory_space<vmem>>) attributes {dimension_semantics = [#tpu.dimension_semantics<parallel>], iteration_bounds = array<i64: 2>, scalar_prefetch = 0 : i64, scratch_operands = 0 : i64, tpu.core_type = #tpu.core_type<tc>, window_params = [{transform_indices = @transform_0, window_bounds = array<i64: 256, 32>}, {pipeline_mode = #tpu.pipeline_mode<synchronous>, transform_indices = @transform_1, window_bounds = array<i64: 32, 128>}, {pipeline_mode = #tpu.pipeline_mode<synchronous>, transform_indices = @transform_2, window_bounds = array<i64: 1, 128>}, {transform_indices = @transform_3, window_bounds = array<i64: 256, 128>}, {transform_indices = @transform_4, window_bounds = array<i64: 256, 128>}]} {
    %c0 = arith.constant 0 : index
    %c0_0 = arith.constant 0 : index
    %0 = vector.load %arg1[%c0, %c0_0] : memref<256x32xbf16, #tpu.memory_space<vmem>>, vector<256x32xbf16>
    %c0_1 = arith.constant 0 : index
    %c0_2 = arith.constant 0 : index
    %1 = vector.load %arg2[%c0_1, %c0_2] : memref<32x128xbf16, #tpu.memory_space<vmem>>, vector<32x128xbf16>
    %cst = arith.constant dense<0.000000e+00> : vector<256x128xf32>
    %2 = tpu.matmul %0, %1, %cst {dimension_numbers = #tpu.dot_dimension_numbers<[1], [0], [0], [1], [0, 0, 1, 1], [], []>} : vector<256x32xbf16>, vector<32x128xbf16>, vector<256x128xf32> -> vector<256x128xf32>
    %c0_3 = arith.constant 0 : index
    %c0_4 = arith.constant 0 : index
    %3 = vector.load %arg3[%c0_3, %c0_4] : memref<1x128xf32, #tpu.memory_space<vmem>>, vector<1x128xf32>
    %4 = vector.broadcast %3 : vector<1x128xf32> to vector<256x128xf32>
    %5 = arith.addf %2, %4 : vector<256x128xf32>
    %6 = arith.truncf %5 : vector<256x128xf32> to vector<256x128xbf16>
    %c0_5 = arith.constant 0 : index
    %c0_6 = arith.constant 0 : index
    %7 = vector.load %arg4[%c0_5, %c0_6] : memref<256x128xbf16, #tpu.memory_space<vmem>>, vector<256x128xbf16>
    %8 = arith.addf %6, %7 : vector<256x128xbf16>
    %cst_7 = arith.constant 0.000000e+00 : bf16
    %9 = vector.broadcast %cst_7 : bf16 to vector<256x128xbf16>
    %10 = arith.maximumf %8, %9 : vector<256x128xbf16>
    %c0_8 = arith.constant 0 : index
    %c0_9 = arith.constant 0 : index
    %11 = vector.load %arg5[%c0_8, %c0_9] : memref<256x128xbf16, #tpu.memory_space<vmem>>, vector<256x128xbf16>
    tpu.vector_store %arg5[%c0_8, %c0_9], %10 {strides = array<i32>} : memref<256x128xbf16, #tpu.memory_space<vmem>>, vector<256x128xbf16>,
    return
  }
  func.func @transform_0(%arg0: i32) -> (i32, i32) {
    %c0_i32 = arith.constant 0 : i32
    %c0_i32_0 = arith.constant 0 : i32
    return %arg0, %c0_i32 : i32, i32
  }
  func.func @transform_1(%arg0: i32) -> (i32, i32) {
    %c0_i32 = arith.constant 0 : i32
    %c0_i32_0 = arith.constant 0 : i32
    %c0_i32_1 = arith.constant 0 : i32
    return %c0_i32, %c0_i32_0 : i32, i32
  }
  func.func @transform_2(%arg0: i32) -> (i32, i32) {
    %c0_i32 = arith.constant 0 : i32
    %c0_i32_0 = arith.constant 0 : i32
    %c0_i32_1 = arith.constant 0 : i32
    return %c0_i32, %c0_i32_0 : i32, i32
  }
  func.func @transform_3(%arg0: i32) -> (i32, i32) {
    %c0_i32 = arith.constant 0 : i32
    %c0_i32_0 = arith.constant 0 : i32
    return %arg0, %c0_i32 : i32, i32
  }
  func.func @transform_4(%arg0: i32) -> (i32, i32) {
    %c0_i32 = arith.constant 0 : i32
    %c0_i32_0 = arith.constant 0 : i32
    return %arg0, %c0_i32 : i32, i32
  }
}

module attributes {stable_mosaic.version = 11 : i64} {
  func.func @_mm_bias_kernel(%arg0: i32, %arg1: memref<256x128xbf16, #tpu.memory_space<vmem>>, %arg2: memref<128x32xbf16, #tpu.memory_space<vmem>>, %arg3: memref<1x32xf32, #tpu.memory_space<vmem>>, %arg4: memref<256x32xbf16, #tpu.memory_space<vmem>>) attributes {dimension_semantics = [#tpu.dimension_semantics<parallel>], iteration_bounds = array<i64: 2>, scalar_prefetch = 0 : i64, scratch_operands = 0 : i64, tpu.core_type = #tpu.core_type<tc>, window_params = [{transform_indices = @transform_0, window_bounds = array<i64: 256, 128>}, {pipeline_mode = #tpu.pipeline_mode<synchronous>, transform_indices = @transform_1, window_bounds = array<i64: 128, 32>}, {pipeline_mode = #tpu.pipeline_mode<synchronous>, transform_indices = @transform_2, window_bounds = array<i64: 1, 32>}, {transform_indices = @transform_3, window_bounds = array<i64: 256, 32>}]} {
    %c0 = arith.constant 0 : index
    %c0_0 = arith.constant 0 : index
    %0 = vector.load %arg1[%c0, %c0_0] : memref<256x128xbf16, #tpu.memory_space<vmem>>, vector<256x128xbf16>
    %c0_1 = arith.constant 0 : index
    %c0_2 = arith.constant 0 : index
    %1 = vector.load %arg2[%c0_1, %c0_2] : memref<128x32xbf16, #tpu.memory_space<vmem>>, vector<128x32xbf16>
    %cst = arith.constant dense<0.000000e+00> : vector<256x32xf32>
    %2 = tpu.matmul %0, %1, %cst {dimension_numbers = #tpu.dot_dimension_numbers<[1], [0], [0], [1], [0, 0, 1, 1], [], []>} : vector<256x128xbf16>, vector<128x32xbf16>, vector<256x32xf32> -> vector<256x32xf32>
    %c0_3 = arith.constant 0 : index
    %c0_4 = arith.constant 0 : index
    %3 = vector.load %arg3[%c0_3, %c0_4] : memref<1x32xf32, #tpu.memory_space<vmem>>, vector<1x32xf32>
    %4 = vector.broadcast %3 : vector<1x32xf32> to vector<256x32xf32>
    %5 = arith.addf %2, %4 : vector<256x32xf32>
    %cst_5 = arith.constant 0.000000e+00 : f32
    %6 = vector.broadcast %cst_5 : f32 to vector<256x32xf32>
    %7 = arith.maximumf %5, %6 : vector<256x32xf32>
    %8 = arith.truncf %7 : vector<256x32xf32> to vector<256x32xbf16>
    %c0_6 = arith.constant 0 : index
    %c0_7 = arith.constant 0 : index
    %9 = vector.load %arg4[%c0_6, %c0_7] : memref<256x32xbf16, #tpu.memory_space<vmem>>, vector<256x32xbf16>
    tpu.vector_store %arg4[%c0_6, %c0_7], %8 {strides = array<i32>} : memref<256x32xbf16, #tpu.memory_space<vmem>>, vector<256x32xbf16>,
    return
  }
  func.func @transform_0(%arg0: i32) -> (i32, i32) {
    %c0_i32 = arith.constant 0 : i32
    %c0_i32_0 = arith.constant 0 : i32
    return %arg0, %c0_i32 : i32, i32
  }
  func.func @transform_1(%arg0: i32) -> (i32, i32) {
    %c0_i32 = arith.constant 0 : i32
    %c0_i32_0 = arith.constant 0 : i32
    %c0_i32_1 = arith.constant 0 : i32
    return %c0_i32, %c0_i32_0 : i32, i32
  }
  func.func @transform_2(%arg0: i32) -> (i32, i32) {
    %c0_i32 = arith.constant 0 : i32
    %c0_i32_0 = arith.constant 0 : i32
    %c0_i32_1 = arith.constant 0 : i32
    return %c0_i32, %c0_i32_0 : i32, i32
  }
  func.func @transform_3(%arg0: i32) -> (i32, i32) {
    %c0_i32 = arith.constant 0 : i32
    %c0_i32_0 = arith.constant 0 : i32
    return %arg0, %c0_i32 : i32, i32
  }
}

module attributes {stable_mosaic.version = 11 : i64} {
  func.func @_mm_bias_res_kernel(%arg0: i32, %arg1: memref<256x32xbf16, #tpu.memory_space<vmem>>, %arg2: memref<32x128xbf16, #tpu.memory_space<vmem>>, %arg3: memref<1x128xf32, #tpu.memory_space<vmem>>, %arg4: memref<256x128xbf16, #tpu.memory_space<vmem>>, %arg5: memref<256x128xf32, #tpu.memory_space<vmem>>) attributes {dimension_semantics = [#tpu.dimension_semantics<parallel>], iteration_bounds = array<i64: 2>, scalar_prefetch = 0 : i64, scratch_operands = 0 : i64, tpu.core_type = #tpu.core_type<tc>, window_params = [{transform_indices = @transform_0, window_bounds = array<i64: 256, 32>}, {pipeline_mode = #tpu.pipeline_mode<synchronous>, transform_indices = @transform_1, window_bounds = array<i64: 32, 128>}, {pipeline_mode = #tpu.pipeline_mode<synchronous>, transform_indices = @transform_2, window_bounds = array<i64: 1, 128>}, {transform_indices = @transform_3, window_bounds = array<i64: 256, 128>}, {transform_indices = @transform_4, window_bounds = array<i64: 256, 128>}]} {
    %c0 = arith.constant 0 : index
    %c0_0 = arith.constant 0 : index
    %0 = vector.load %arg1[%c0, %c0_0] : memref<256x32xbf16, #tpu.memory_space<vmem>>, vector<256x32xbf16>
    %c0_1 = arith.constant 0 : index
    %c0_2 = arith.constant 0 : index
    %1 = vector.load %arg2[%c0_1, %c0_2] : memref<32x128xbf16, #tpu.memory_space<vmem>>, vector<32x128xbf16>
    %cst = arith.constant dense<0.000000e+00> : vector<256x128xf32>
    %2 = tpu.matmul %0, %1, %cst {dimension_numbers = #tpu.dot_dimension_numbers<[1], [0], [0], [1], [0, 0, 1, 1], [], []>} : vector<256x32xbf16>, vector<32x128xbf16>, vector<256x128xf32> -> vector<256x128xf32>
    %c0_3 = arith.constant 0 : index
    %c0_4 = arith.constant 0 : index
    %3 = vector.load %arg3[%c0_3, %c0_4] : memref<1x128xf32, #tpu.memory_space<vmem>>, vector<1x128xf32>
    %4 = vector.broadcast %3 : vector<1x128xf32> to vector<256x128xf32>
    %5 = arith.addf %2, %4 : vector<256x128xf32>
    %c0_5 = arith.constant 0 : index
    %c0_6 = arith.constant 0 : index
    %6 = vector.load %arg4[%c0_5, %c0_6] : memref<256x128xbf16, #tpu.memory_space<vmem>>, vector<256x128xbf16>
    %7 = arith.extf %6 : vector<256x128xbf16> to vector<256x128xf32>
    %8 = arith.addf %5, %7 : vector<256x128xf32>
    %cst_7 = arith.constant 0.000000e+00 : f32
    %9 = vector.broadcast %cst_7 : f32 to vector<256x128xf32>
    %10 = arith.maximumf %8, %9 : vector<256x128xf32>
    %c0_8 = arith.constant 0 : index
    %c0_9 = arith.constant 0 : index
    %11 = vector.load %arg5[%c0_8, %c0_9] : memref<256x128xf32, #tpu.memory_space<vmem>>, vector<256x128xf32>
    tpu.vector_store %arg5[%c0_8, %c0_9], %10 {strides = array<i32>} : memref<256x128xf32, #tpu.memory_space<vmem>>, vector<256x128xf32>,
    return
  }
  func.func @transform_0(%arg0: i32) -> (i32, i32) {
    %c0_i32 = arith.constant 0 : i32
    %c0_i32_0 = arith.constant 0 : i32
    return %arg0, %c0_i32 : i32, i32
  }
  func.func @transform_1(%arg0: i32) -> (i32, i32) {
    %c0_i32 = arith.constant 0 : i32
    %c0_i32_0 = arith.constant 0 : i32
    %c0_i32_1 = arith.constant 0 : i32
    return %c0_i32, %c0_i32_0 : i32, i32
  }
  func.func @transform_2(%arg0: i32) -> (i32, i32) {
    %c0_i32 = arith.constant 0 : i32
    %c0_i32_0 = arith.constant 0 : i32
    %c0_i32_1 = arith.constant 0 : i32
    return %c0_i32, %c0_i32_0 : i32, i32
  }
  func.func @transform_3(%arg0: i32) -> (i32, i32) {
    %c0_i32 = arith.constant 0 : i32
    %c0_i32_0 = arith.constant 0 : i32
    return %arg0, %c0_i32 : i32, i32
  }
  func.func @transform_4(%arg0: i32) -> (i32, i32) {
    %c0_i32 = arith.constant 0 : i32
    %c0_i32_0 = arith.constant 0 : i32
    return %arg0, %c0_i32 : i32, i32
  }
}

</mosaic_0001>

<bundles_post_ra>
// kernel: layer5_forward.9
= control target key start
LH: loop header
LB: loop body
LE: loop exit
PB: predicated region body
PF: predicated region fallthrough
CT: control target
= control target key end

     0   :  { %s1763_s21 = smov 0   ;;  %s2020_s0 = inlined_call_operand.vmem [shape: bf16[512,64], index: 0, kind: input, shape index: {}]   ;;  %s2021_s1 = inlined_call_operand.vmem [shape: bf16[64,32], index: 1, kind: input, shape index: {}]   ;;  %s2022_s2 = inlined_call_operand.vmem [shape: f32[1,32], index: 2, kind: input, shape index: {}]   ;;  %s2023_s3 = inlined_call_operand.vmem [shape: bf16[64,128], index: 3, kind: input, shape index: {}]   ;;  %s2024_s4 = inlined_call_operand.vmem [shape: f32[1,128], index: 4, kind: input, shape index: {}]   ;;  %s2025_s5 = inlined_call_operand.vmem [shape: bf16[512,32], index: 5, kind: output, shape index: {0}]   ;;  %s2026_s6 = inlined_call_operand.vmem [shape: bf16[512,128], index: 6, kind: output, shape index: {1}]  }
   0x1 LB: > { %s1274_s22 = sadd.s32 4294967295, %s1726_s21   ;;  %p1278_p0 = scmp.ge.s32.totalorder %s1726_s21, 1  ;;  %s1726_s21 = sphi %s1763_s21, %s17_s21  }
   0x2   : > { %p216_p1 = scmp.lt.s32.totalorder %s1726_s21, 3 }
   0x4   : > { %p217_p2 = pnand %p1278_p0, %p216_p1 }
   0x5   : > { %v1696_v0 = vld [vmem:[%s2021_s1] sm:$0xff] (!%p217_p2)   ;;  %s1279_s25 = sshll.u32 (!%p217_p2), %s1274_s22, 5  ;;  %v1698_v2 = vld [vmem:[%s2021_s1 + $0x8] sm:$0xff] (!%p217_p2)   ;;  %v1700_v4 = vld [vmem:[%s2021_s1 + $0x10] sm:$0xff] (!%p217_p2)   ;;  %vm421_vm0 = vcmask (!%p217_p2), 523264   ;;  %vm791_vm1 = vcmask (!%p217_p2), 257024  }
   0x6   : > { %220 = sbr.rel (%p217_p2) target bundleno = 300 (0x12c), region = 40  ;;  %v1697_v1 = vld [vmem:[%s2023_s3] sm:$0xff] (!%p217_p2)   ;;  %p252_p3 = scmp.lt.s32.totalorder (!%p217_p2), %s1279_s25, 63  ;;  %1608 = vmatprep.subr.bf16.mxu0 (!%p217_p2), %v1696_v0  ;;  %v1699_v3 = vld [vmem:[%s2023_s3 + $0x8] sm:$0xff] (!%p217_p2)   ;;  %v1701_v5 = vld [vmem:[%s2023_s3 + $0x10] sm:$0xff] (!%p217_p2)  }
   0x7   : > { %1648 = vmatprep.subr.bf16.mxu1 (!%p217_p2), %v1697_v1  ;;  %1609 = vmatpush3.bf16.msra.mxu0 (!%p217_p2), %v1696_v0  ;;  %v1702_v6 = vld [vmem:[%s2021_s1 + $0x18] sm:$0xff] (!%p217_p2)   ;;  %v1854_v24 = vld [vmem:[%s2022_s2] ss:$0 sm:$0xff] (!%p217_p2) }
   0x8   : > { %1649 = vmatpush3.bf16.msra.mxu1 (!%p217_p2), %v1697_v1  ;;  %1610 = vmatprep.subr.bf16.mxu0 (!%p217_p2), %v1698_v2  ;;  %v1703_v8 = vld [vmem:[%s2023_s3 + $0x18] sm:$0xff] (!%p217_p2)   ;;  %v1859_v25 = vld [vmem:[%s2024_s4] ss:$0 sm:$0xff] (!%p217_p2) }
   0x9   : > { %1650 = vmatprep.subr.bf16.mxu1 (!%p217_p2), %v1699_v3 }
   0xb   : > { %1611 = vmatpush3.bf16.msra.mxu0 (!%p217_p2), %v1698_v2 }
   0xc   : > { %1651 = vmatpush3.bf16.msra.mxu1 (!%p217_p2), %v1699_v3  ;;  %1612 = vmatprep.subr.bf16.mxu0 (!%p217_p2), %v1700_v4 }
   0xd   : > { %s2028_s25 = smov (!%p252_p3, %s1279_s25), 63  ;;  %1652 = vmatprep.subr.bf16.mxu1 %v1701_v5 }
   0xe   : > { %s1789_s12 = sshll.u32 %s2028_s25, 2 }
   0xf   : > { %s1795_s15 = scalar_lea.vmem %s2020_s0, %s1789_s12  ;;  %1613 = vmatpush3.bf16.msra.mxu0 %v1700_v4  ;;  %s1870_s27 = scalar_lea.vmem %s2025_s5, %s1789_s12 }
  0x10   : > { %v1704_v7 = vld [vmem:[%s1795_s15] sm:$0xff]   ;;  %1653 = vmatpush3.bf16.msra.mxu1 %v1701_v5  ;;  %1614 = vmatprep.subr.bf16.mxu0 %v1702_v6  ;;  %v1705_v9 = vld [vmem:[%s1795_s15 + $0x8] sm:$0xff]   ;;  %v1706_v10 = vld [vmem:[%s1795_s15 + $0x10] sm:$0xff]   ;;  %s1878_s30 = scalar_lea.vmem %s2026_s6, %s1789_s12 }
  0x11   : > { %1616 = vmatprep.mubr.msk.bf16.mxu0 %vm421_vm0, %v1704_v7  ;;  %1656 = vmatprep.mubr.msk.bf16.mxu1 %vm421_vm0, %v1704_v7  ;;  %v1707_v11 = vld [vmem:[%s1795_s15 + $0x18] sm:$0xff]   ;;  %v1708_v12 = vld [vmem:[%s1795_s15 + $0x20] sm:$0xff]   ;;  %v1709_v13 = vld [vmem:[%s1795_s15 + $0x28] sm:$0xff]  }
  0x12   : > { %1654 = vmatprep.subr.bf16.mxu1 %v1703_v8  ;;  %v1710_v14 = vld [vmem:[%s1795_s15 + $0x30] sm:$0xff]   ;;  %v1711_v15 = vld [vmem:[%s1795_s15 + $0x38] sm:$0xff]   ;;  %v1712_v16 = vld [vmem:[%s1795_s15 + $0x40] sm:$0xff]  }
  0x13   : > { %1615 = vmatpush3.bf16.msra.mxu0 %v1702_v6  ;;  %v1713_v17 = vld [vmem:[%s1795_s15 + $0x48] sm:$0xff]   ;;  %v1714_v18 = vld [vmem:[%s1795_s15 + $0x50] sm:$0xff]   ;;  %v1715_v19 = vld [vmem:[%s1795_s15 + $0x58] sm:$0xff]  }
  0x14   : > { %1655 = vmatpush3.bf16.msra.mxu1 %v1703_v8  ;;  %v1716_v20 = vld [vmem:[%s1795_s15 + $0x60] sm:$0xff]   ;;  %v1717_v21 = vld [vmem:[%s1795_s15 + $0x68] sm:$0xff]   ;;  %v1718_v22 = vld [vmem:[%s1795_s15 + $0x70] sm:$0xff]  }
  0x15   : > { %v1719_v23 = vld [vmem:[%s1795_s15 + $0x78] sm:$0xff]  }
  0x16   : > { %1617 = vmatmul.mubr.msk.bf16.vlgmr.msra.gmra.mrb[0].mxu0 %vm421_vm0, %v1705_v9 }
  0x17   : > { %1657 = vmatmul.mubr.msk.bf16.vlgmr.msra.gmra.mrb[0].mxu1 %vm421_vm0, %v1705_v9  ;;  %1620 = vmatprep.mubr.msk.bf16.mxu0 %vm421_vm0, %v1706_v10 }
  0x18   : > { %1660 = vmatprep.mubr.msk.bf16.mxu1 %vm421_vm0, %v1706_v10 }
  0x1e   : > { %1621 = vmatmul.mubr.msk.bf16.gmra.mrb[4].mxu0 %vm421_vm0, %v1707_v11 }
  0x1f   : > { %1661 = vmatmul.mubr.msk.bf16.gmra.mrb[4].mxu1 %vm421_vm0, %v1707_v11  ;;  %1624 = vmatprep.mubr.msk.bf16.mxu0 %vm421_vm0, %v1708_v12 }
  0x20   : > { %1664 = vmatprep.mubr.msk.bf16.mxu1 %vm421_vm0, %v1708_v12 }
  0x26   : > { %1625 = vmatmul.mubr.msk.bf16.gmra.mrb[8].mxu0 %vm421_vm0, %v1709_v13 }
  0x27   : > { %1665 = vmatmul.mubr.msk.bf16.gmra.mrb[8].mxu1 %vm421_vm0, %v1709_v13  ;;  %1628 = vmatprep.mubr.msk.bf16.mxu0 %vm421_vm0, %v1710_v14 }
  0x28   : > { %1668 = vmatprep.mubr.msk.bf16.mxu1 %vm421_vm0, %v1710_v14 }
  0x2e   : > { %1629 = vmatmul.mubr.msk.bf16.gmra.mrb[12].mxu0 %vm421_vm0, %v1711_v15 }
  0x2f   : > { %1669 = vmatmul.mubr.msk.bf16.gmra.mrb[12].mxu1 %vm421_vm0, %v1711_v15  ;;  %1632 = vmatprep.mubr.msk.bf16.mxu0 %vm421_vm0, %v1712_v16 }
  0x30   : > { %1672 = vmatprep.mubr.msk.bf16.mxu1 %vm421_vm0, %v1712_v16 }
  0x36   : > { %1633 = vmatmul.mubr.msk.bf16.gmra.mrb[16].mxu0 %vm421_vm0, %v1713_v17 }
  0x37   : > { %1673 = vmatmul.mubr.msk.bf16.gmra.mrb[16].mxu1 %vm421_vm0, %v1713_v17  ;;  %1636 = vmatprep.mubr.msk.bf16.mxu0 %vm421_vm0, %v1714_v18 }
  0x38   : > { %1676 = vmatprep.mubr.msk.bf16.mxu1 %vm421_vm0, %v1714_v18 }
  0x3e   : > { %1637 = vmatmul.mubr.msk.bf16.gmra.mrb[20].mxu0 %vm421_vm0, %v1715_v19 }
  0x3f   : > { %1677 = vmatmul.mubr.msk.bf16.gmra.mrb[20].mxu1 %vm421_vm0, %v1715_v19  ;;  %1640 = vmatprep.mubr.msk.bf16.mxu0 %vm421_vm0, %v1716_v20 }
  0x40   : > { %1680 = vmatprep.mubr.msk.bf16.mxu1 %vm421_vm0, %v1716_v20 }
  0x46   : > { %1641 = vmatmul.mubr.msk.bf16.gmra.mrb[24].mxu0 %vm421_vm0, %v1717_v21 }
  0x47   : > { %1681 = vmatmul.mubr.msk.bf16.gmra.mrb[24].mxu1 %vm421_vm0, %v1717_v21  ;;  %1644 = vmatprep.mubr.msk.bf16.mxu0 %vm421_vm0, %v1718_v22 }
  0x48   : > { %1684 = vmatprep.mubr.msk.bf16.mxu1 %vm421_vm0, %v1718_v22 }
  0x4e   : > { %1645 = vmatmul.mubr.msk.bf16.gmra.mrb[28].mxu0 %vm421_vm0, %v1719_v23 }
  0x4f   : > { %1685 = vmatmul.mubr.msk.bf16.gmra.mrb[28].mxu1 %vm421_vm0, %v1719_v23 }
  0xe9   : > { %v1618_v26 = vpop.f32.mrb[0].mxu0 }
  0xea   : > { %v513_v27 = vadd.f32 %v1618_v26, %v1854_v24  ;;  %v1658_v28 = vpop.f32.mrb[0].mxu1  ;;  %v504_v29 = vpop.f32.mrb[1].mxu0 }
  0xeb   : > { %v906_v30 = vadd.f32 %v1658_v28, %v1859_v25  ;;  %v505_v31 = vadd.f32 %v1854_v24, %v504_v29  ;;  %v897_v32 = vpop.f32.mrb[1].mxu1  ;;  %v1619_v33 = vpop.f32.mrb[2].mxu0 }
  0xec   : > { %v633_v34 = vmax.f32 %v513_v27, 0.0  ;;  %v898_v35 = vadd.f32 %v1859_v25, %v897_v32  ;;  %v516_v36 = vadd.f32 %v1619_v33, %v1854_v24  ;;  %v1659_v37 = vpop.f32.mrb[2].mxu1  ;;  %v507_v38 = vpop.f32.mrb[3].mxu0 }
  0xed   : > { %v631_v39 = vmax.f32 %v505_v31, 0.0  ;;  %v909_v40 = vadd.f32 %v1659_v37, %v1859_v25  ;;  %v508_v41 = vadd.f32 %v1854_v24, %v507_v38  ;;  %v900_v42 = vpop.f32.mrb[3].mxu1 }
  0xee   : > { %v1411_v43 = vpack.c.bf16 %v633_v34, %v633_v34  ;;  %v634_v44 = vmax.f32 %v516_v36, 0.0  ;;  %v901_v45 = vadd.f32 %v1859_v25, %v900_v42 }
  0xef   : > { %v1409_v46 = vpack.c.bf16 %v631_v39, %v631_v39  ;;  %v1481_v47 = vpack.c.bf16 %v909_v40, %v906_v30  ;;  %v632_v48 = vmax.f32 %v508_v41, 0.0 }
  0xf0   : > { %794 = vst.msk [vmem:[%s1870_s27 + $0x8] sm:$0xf] %vm791_vm1, %v1411_v43  ;;  %v1412_v49 = vpack.c.bf16 %v634_v44, %v634_v44  ;;  %v1476_v50 = vpack.c.bf16 %v901_v45, %v898_v35 }
  0xf1   : > { %792 = vst.msk [vmem:[%s1870_s27] sm:$0xf] %vm791_vm1, %v1409_v46  ;;  %1553 = vst [vmem:[%s1878_s30 + $0x8] sm:$0xff] %v1481_v47   ;;  %v1410_v51 = vpack.c.bf16 %v632_v48, %v632_v48  ;;  %v1622_v52 = vpop.f32.mrb[4].mxu0 }
  0xf2   : > { %795 = vst.msk [vmem:[%s1870_s27 + $0xc] sm:$0xf] %vm791_vm1, %v1412_v49  ;;  %1477 = vst [vmem:[%s1878_s30] sm:$0xff] %v1476_v50   ;;  %v529_v53 = vadd.f32 %v1622_v52, %v1854_v24  ;;  %v1662_v54 = vpop.f32.mrb[4].mxu1  ;;  %v520_v55 = vpop.f32.mrb[5].mxu0 }
  0xf3   : > { %793 = vst.msk [vmem:[%s1870_s27 + $0x4] sm:$0xf] %vm791_vm1, %v1410_v51  ;;  %v922_v56 = vadd.f32 %v1662_v54, %v1859_v25  ;;  %v521_v57 = vadd.f32 %v1854_v24, %v520_v55  ;;  %v913_v58 = vpop.f32.mrb[5].mxu1  ;;  %v1623_v59 = vpop.f32.mrb[6].mxu0 }
  0xf4   : > { %v637_v60 = vmax.f32 %v529_v53, 0.0  ;;  %v914_v61 = vadd.f32 %v1859_v25, %v913_v58  ;;  %v532_v62 = vadd.f32 %v1623_v59, %v1854_v24  ;;  %v1663_v63 = vpop.f32.mrb[6].mxu1  ;;  %v523_v0 = vpop.f32.mrb[7].mxu0 }
  0xf5   : > { %v635_v1 = vmax.f32 %v521_v57, 0.0  ;;  %v925_v2 = vadd.f32 %v1663_v63, %v1859_v25  ;;  %v524_v3 = vadd.f32 %v1854_v24, %v523_v0  ;;  %v916_v4 = vpop.f32.mrb[7].mxu1 }
  0xf6   : > { %v1415_v5 = vpack.c.bf16 %v637_v60, %v637_v60  ;;  %v638_v6 = vmax.f32 %v532_v62, 0.0  ;;  %v917_v7 = vadd.f32 %v1859_v25, %v916_v4 }
  0xf7   : > { %v1413_v8 = vpack.c.bf16 %v635_v1, %v635_v1  ;;  %v1491_v9 = vpack.c.bf16 %v925_v2, %v922_v56  ;;  %v636_v10 = vmax.f32 %v524_v3, 0.0 }
  0xf8   : > { %798 = vst.msk [vmem:[%s1870_s27 + $0x18] sm:$0xf] %vm791_vm1, %v1415_v5  ;;  %v1416_v11 = vpack.c.bf16 %v638_v6, %v638_v6  ;;  %v1486_v12 = vpack.c.bf16 %v917_v7, %v914_v61 }
  0xf9   : > { %796 = vst.msk [vmem:[%s1870_s27 + $0x10] sm:$0xf] %vm791_vm1, %v1413_v8  ;;  %1555 = vst [vmem:[%s1878_s30 + $0x18] sm:$0xff] %v1491_v9   ;;  %v1414_v13 = vpack.c.bf16 %v636_v10, %v636_v10  ;;  %v1626_v14 = vpop.f32.mrb[8].mxu0 }
  0xfa   : > { %799 = vst.msk [vmem:[%s1870_s27 + $0x1c] sm:$0xf] %vm791_vm1, %v1416_v11  ;;  %1554 = vst [vmem:[%s1878_s30 + $0x10] sm:$0xff] %v1486_v12   ;;  %v545_v15 = vadd.f32 %v1626_v14, %v1854_v24  ;;  %v1666_v16 = vpop.f32.mrb[8].mxu1  ;;  %v536_v17 = vpop.f32.mrb[9].mxu0 }
  0xfb   : > { %797 = vst.msk [vmem:[%s1870_s27 + $0x14] sm:$0xf] %vm791_vm1, %v1414_v13  ;;  %v938_v18 = vadd.f32 %v1666_v16, %v1859_v25  ;;  %v537_v19 = vadd.f32 %v1854_v24, %v536_v17  ;;  %v929_v20 = vpop.f32.mrb[9].mxu1  ;;  %v1627_v21 = vpop.f32.mrb[10].mxu0 }
  0xfc   : > { %v641_v22 = vmax.f32 %v545_v15, 0.0  ;;  %v930_v23 = vadd.f32 %v1859_v25, %v929_v20  ;;  %v548_v26 = vadd.f32 %v1627_v21, %v1854_v24  ;;  %v1667_v27 = vpop.f32.mrb[10].mxu1  ;;  %v539_v28 = vpop.f32.mrb[11].mxu0 }
  0xfd   : > { %v639_v29 = vmax.f32 %v537_v19, 0.0  ;;  %v941_v30 = vadd.f32 %v1667_v27, %v1859_v25  ;;  %v540_v31 = vadd.f32 %v1854_v24, %v539_v28  ;;  %v932_v32 = vpop.f32.mrb[11].mxu1 }
  0xfe   : > { %v1419_v33 = vpack.c.bf16 %v641_v22, %v641_v22  ;;  %v642_v34 = vmax.f32 %v548_v26, 0.0  ;;  %v933_v35 = vadd.f32 %v1859_v25, %v932_v32 }
  0xff   : > { %v1417_v36 = vpack.c.bf16 %v639_v29, %v639_v29  ;;  %v1501_v37 = vpack.c.bf16 %v941_v30, %v938_v18  ;;  %v640_v38 = vmax.f32 %v540_v31, 0.0 }
 0x100   : > { %802 = vst.msk [vmem:[%s1870_s27 + $0x28] sm:$0xf] %vm791_vm1, %v1419_v33  ;;  %v1420_v39 = vpack.c.bf16 %v642_v34, %v642_v34  ;;  %v1496_v40 = vpack.c.bf16 %v933_v35, %v930_v23 }
 0x101   : > { %800 = vst.msk [vmem:[%s1870_s27 + $0x20] sm:$0xf] %vm791_vm1, %v1417_v36  ;;  %1557 = vst [vmem:[%s1878_s30 + $0x28] sm:$0xff] %v1501_v37   ;;  %v1418_v41 = vpack.c.bf16 %v640_v38, %v640_v38  ;;  %v1630_v42 = vpop.f32.mrb[12].mxu0 }
 0x102   : > { %803 = vst.msk [vmem:[%s1870_s27 + $0x2c] sm:$0xf] %vm791_vm1, %v1420_v39  ;;  %1556 = vst [vmem:[%s1878_s30 + $0x20] sm:$0xff] %v1496_v40   ;;  %v561_v43 = vadd.f32 %v1630_v42, %v1854_v24  ;;  %v1670_v44 = vpop.f32.mrb[12].mxu1  ;;  %v552_v45 = vpop.f32.mrb[13].mxu0 }
 0x103   : > { %801 = vst.msk [vmem:[%s1870_s27 + $0x24] sm:$0xf] %vm791_vm1, %v1418_v41  ;;  %v954_v46 = vadd.f32 %v1670_v44, %v1859_v25  ;;  %v553_v47 = vadd.f32 %v1854_v24, %v552_v45  ;;  %v945_v48 = vpop.f32.mrb[13].mxu1  ;;  %v1631_v49 = vpop.f32.mrb[14].mxu0 }
 0x104   : > { %v645_v50 = vmax.f32 %v561_v43, 0.0  ;;  %v946_v51 = vadd.f32 %v1859_v25, %v945_v48  ;;  %v564_v52 = vadd.f32 %v1631_v49, %v1854_v24  ;;  %v1671_v53 = vpop.f32.mrb[14].mxu1  ;;  %v555_v54 = vpop.f32.mrb[15].mxu0 }
 0x105   : > { %v643_v55 = vmax.f32 %v553_v47, 0.0  ;;  %v957_v56 = vadd.f32 %v1671_v53, %v1859_v25  ;;  %v556_v57 = vadd.f32 %v1854_v24, %v555_v54  ;;  %v948_v58 = vpop.f32.mrb[15].mxu1 }
 0x106   : > { %v1423_v59 = vpack.c.bf16 %v645_v50, %v645_v50  ;;  %v646_v60 = vmax.f32 %v564_v52, 0.0  ;;  %v949_v61 = vadd.f32 %v1859_v25, %v948_v58 }
 0x107   : > { %v1421_v62 = vpack.c.bf16 %v643_v55, %v643_v55  ;;  %v1511_v63 = vpack.c.bf16 %v957_v56, %v954_v46  ;;  %v644_v0 = vmax.f32 %v556_v57, 0.0 }
 0x108   : > { %806 = vst.msk [vmem:[%s1870_s27 + $0x38] sm:$0xf] %vm791_vm1, %v1423_v59  ;;  %v1424_v1 = vpack.c.bf16 %v646_v60, %v646_v60  ;;  %v1506_v2 = vpack.c.bf16 %v949_v61, %v946_v51 }
 0x109   : > { %804 = vst.msk [vmem:[%s1870_s27 + $0x30] sm:$0xf] %vm791_vm1, %v1421_v62  ;;  %1559 = vst [vmem:[%s1878_s30 + $0x38] sm:$0xff] %v1511_v63   ;;  %v1422_v3 = vpack.c.bf16 %v644_v0, %v644_v0  ;;  %v1634_v4 = vpop.f32.mrb[16].mxu0 }
 0x10a   : > { %807 = vst.msk [vmem:[%s1870_s27 + $0x3c] sm:$0xf] %vm791_vm1, %v1424_v1  ;;  %1558 = vst [vmem:[%s1878_s30 + $0x30] sm:$0xff] %v1506_v2   ;;  %v577_v5 = vadd.f32 %v1634_v4, %v1854_v24  ;;  %v1674_v6 = vpop.f32.mrb[16].mxu1  ;;  %v568_v7 = vpop.f32.mrb[17].mxu0 }
 0x10b   : > { %805 = vst.msk [vmem:[%s1870_s27 + $0x34] sm:$0xf] %vm791_vm1, %v1422_v3  ;;  %v970_v8 = vadd.f32 %v1674_v6, %v1859_v25  ;;  %v569_v9 = vadd.f32 %v1854_v24, %v568_v7  ;;  %v961_v10 = vpop.f32.mrb[17].mxu1  ;;  %v1635_v11 = vpop.f32.mrb[18].mxu0 }
 0x10c   : > { %v649_v12 = vmax.f32 %v577_v5, 0.0  ;;  %v962_v13 = vadd.f32 %v1859_v25, %v961_v10  ;;  %v580_v14 = vadd.f32 %v1635_v11, %v1854_v24  ;;  %v1675_v15 = vpop.f32.mrb[18].mxu1  ;;  %v571_v16 = vpop.f32.mrb[19].mxu0 }
 0x10d   : > { %v647_v17 = vmax.f32 %v569_v9, 0.0  ;;  %v973_v18 = vadd.f32 %v1675_v15, %v1859_v25  ;;  %v572_v19 = vadd.f32 %v1854_v24, %v571_v16  ;;  %v964_v20 = vpop.f32.mrb[19].mxu1 }
 0x10e   : > { %v1427_v21 = vpack.c.bf16 %v649_v12, %v649_v12  ;;  %v650_v22 = vmax.f32 %v580_v14, 0.0  ;;  %v965_v23 = vadd.f32 %v1859_v25, %v964_v20 }
 0x10f   : > { %v1425_v26 = vpack.c.bf16 %v647_v17, %v647_v17  ;;  %v1521_v27 = vpack.c.bf16 %v973_v18, %v970_v8  ;;  %v648_v28 = vmax.f32 %v572_v19, 0.0 }
 0x110   : > { %810 = vst.msk [vmem:[%s1870_s27 + $0x48] sm:$0xf] %vm791_vm1, %v1427_v21  ;;  %v1428_v29 = vpack.c.bf16 %v650_v22, %v650_v22  ;;  %v1516_v30 = vpack.c.bf16 %v965_v23, %v962_v13 }
 0x111   : > { %808 = vst.msk [vmem:[%s1870_s27 + $0x40] sm:$0xf] %vm791_vm1, %v1425_v26  ;;  %1561 = vst [vmem:[%s1878_s30 + $0x48] sm:$0xff] %v1521_v27   ;;  %v1426_v31 = vpack.c.bf16 %v648_v28, %v648_v28  ;;  %v1638_v32 = vpop.f32.mrb[20].mxu0 }
 0x112   : > { %811 = vst.msk [vmem:[%s1870_s27 + $0x4c] sm:$0xf] %vm791_vm1, %v1428_v29  ;;  %1560 = vst [vmem:[%s1878_s30 + $0x40] sm:$0xff] %v1516_v30   ;;  %v593_v33 = vadd.f32 %v1638_v32, %v1854_v24  ;;  %v1678_v34 = vpop.f32.mrb[20].mxu1  ;;  %v584_v35 = vpop.f32.mrb[21].mxu0 }
 0x113   : > { %809 = vst.msk [vmem:[%s1870_s27 + $0x44] sm:$0xf] %vm791_vm1, %v1426_v31  ;;  %v986_v36 = vadd.f32 %v1678_v34, %v1859_v25  ;;  %v585_v37 = vadd.f32 %v1854_v24, %v584_v35  ;;  %v977_v38 = vpop.f32.mrb[21].mxu1  ;;  %v1639_v39 = vpop.f32.mrb[22].mxu0 }
 0x114   : > { %v653_v40 = vmax.f32 %v593_v33, 0.0  ;;  %v978_v41 = vadd.f32 %v1859_v25, %v977_v38  ;;  %v596_v42 = vadd.f32 %v1639_v39, %v1854_v24  ;;  %v1679_v43 = vpop.f32.mrb[22].mxu1  ;;  %v587_v44 = vpop.f32.mrb[23].mxu0 }
 0x115   : > { %v651_v45 = vmax.f32 %v585_v37, 0.0  ;;  %v989_v46 = vadd.f32 %v1679_v43, %v1859_v25  ;;  %v588_v47 = vadd.f32 %v1854_v24, %v587_v44  ;;  %v980_v48 = vpop.f32.mrb[23].mxu1 }
 0x116   : > { %v1431_v49 = vpack.c.bf16 %v653_v40, %v653_v40  ;;  %v654_v50 = vmax.f32 %v596_v42, 0.0  ;;  %v981_v51 = vadd.f32 %v1859_v25, %v980_v48 }
 0x117   : > { %v1429_v52 = vpack.c.bf16 %v651_v45, %v651_v45  ;;  %v1531_v53 = vpack.c.bf16 %v989_v46, %v986_v36  ;;  %v652_v54 = vmax.f32 %v588_v47, 0.0 }
 0x118   : > { %814 = vst.msk [vmem:[%s1870_s27 + $0x58] sm:$0xf] %vm791_vm1, %v1431_v49  ;;  %v1432_v55 = vpack.c.bf16 %v654_v50, %v654_v50  ;;  %v1526_v56 = vpack.c.bf16 %v981_v51, %v978_v41 }
 0x119   : > { %812 = vst.msk [vmem:[%s1870_s27 + $0x50] sm:$0xf] %vm791_vm1, %v1429_v52  ;;  %1563 = vst [vmem:[%s1878_s30 + $0x58] sm:$0xff] %v1531_v53   ;;  %v1430_v57 = vpack.c.bf16 %v652_v54, %v652_v54  ;;  %v1642_v58 = vpop.f32.mrb[24].mxu0 }
 0x11a   : > { %815 = vst.msk [vmem:[%s1870_s27 + $0x5c] sm:$0xf] %vm791_vm1, %v1432_v55  ;;  %1562 = vst [vmem:[%s1878_s30 + $0x50] sm:$0xff] %v1526_v56   ;;  %v609_v59 = vadd.f32 %v1642_v58, %v1854_v24  ;;  %v1682_v60 = vpop.f32.mrb[24].mxu1  ;;  %v600_v61 = vpop.f32.mrb[25].mxu0 }
 0x11b   : > { %813 = vst.msk [vmem:[%s1870_s27 + $0x54] sm:$0xf] %vm791_vm1, %v1430_v57  ;;  %v1002_v62 = vadd.f32 %v1682_v60, %v1859_v25  ;;  %v601_v63 = vadd.f32 %v1854_v24, %v600_v61  ;;  %v993_v0 = vpop.f32.mrb[25].mxu1  ;;  %v1643_v1 = vpop.f32.mrb[26].mxu0 }
 0x11c   : > { %v657_v2 = vmax.f32 %v609_v59, 0.0  ;;  %v994_v3 = vadd.f32 %v1859_v25, %v993_v0  ;;  %v612_v4 = vadd.f32 %v1643_v1, %v1854_v24  ;;  %v1683_v5 = vpop.f32.mrb[26].mxu1  ;;  %v603_v6 = vpop.f32.mrb[27].mxu0 }
 0x11d   : > { %v655_v7 = vmax.f32 %v601_v63, 0.0  ;;  %v1005_v8 = vadd.f32 %v1683_v5, %v1859_v25  ;;  %v604_v9 = vadd.f32 %v1854_v24, %v603_v6  ;;  %v996_v10 = vpop.f32.mrb[27].mxu1 }
 0x11e   : > { %v1435_v11 = vpack.c.bf16 %v657_v2, %v657_v2  ;;  %v658_v12 = vmax.f32 %v612_v4, 0.0  ;;  %v997_v13 = vadd.f32 %v1859_v25, %v996_v10 }
 0x11f   : > { %v1433_v14 = vpack.c.bf16 %v655_v7, %v655_v7  ;;  %v1541_v15 = vpack.c.bf16 %v1005_v8, %v1002_v62  ;;  %v656_v16 = vmax.f32 %v604_v9, 0.0 }
 0x120   : > { %818 = vst.msk [vmem:[%s1870_s27 + $0x68] sm:$0xf] %vm791_vm1, %v1435_v11  ;;  %v1436_v17 = vpack.c.bf16 %v658_v12, %v658_v12  ;;  %v1536_v18 = vpack.c.bf16 %v997_v13, %v994_v3 }
 0x121   : > { %816 = vst.msk [vmem:[%s1870_s27 + $0x60] sm:$0xf] %vm791_vm1, %v1433_v14  ;;  %1565 = vst [vmem:[%s1878_s30 + $0x68] sm:$0xff] %v1541_v15   ;;  %v1434_v19 = vpack.c.bf16 %v656_v16, %v656_v16  ;;  %v1646_v20 = vpop.f32.mrb[28].mxu0 }
 0x122   : > { %819 = vst.msk [vmem:[%s1870_s27 + $0x6c] sm:$0xf] %vm791_vm1, %v1436_v17  ;;  %1564 = vst [vmem:[%s1878_s30 + $0x60] sm:$0xff] %v1536_v18   ;;  %v625_v21 = vadd.f32 %v1646_v20, %v1854_v24  ;;  %v1686_v22 = vpop.f32.mrb[28].mxu1  ;;  %v616_v23 = vpop.f32.mrb[29].mxu0 }
 0x123   : > { %817 = vst.msk [vmem:[%s1870_s27 + $0x64] sm:$0xf] %vm791_vm1, %v1434_v19  ;;  %v1018_v26 = vadd.f32 %v1686_v22, %v1859_v25  ;;  %v617_v27 = vadd.f32 %v1854_v24, %v616_v23  ;;  %v1009_v28 = vpop.f32.mrb[29].mxu1  ;;  %v1647_v29 = vpop.f32.mrb[30].mxu0 }
 0x124   : > { %v661_v30 = vmax.f32 %v625_v21, 0.0  ;;  %v1010_v31 = vadd.f32 %v1859_v25, %v1009_v28  ;;  %v628_v32 = vadd.f32 %v1647_v29, %v1854_v24  ;;  %v1687_v33 = vpop.f32.mrb[30].mxu1  ;;  %v619_v34 = vpop.f32.mrb[31].mxu0 }
 0x125   : > { %v659_v35 = vmax.f32 %v617_v27, 0.0  ;;  %v1021_v36 = vadd.f32 %v1687_v33, %v1859_v25  ;;  %v620_v37 = vadd.f32 %v1854_v24, %v619_v34  ;;  %v1012_v38 = vpop.f32.mrb[31].mxu1 }
 0x126   : > { %v1439_v39 = vpack.c.bf16 %v661_v30, %v661_v30  ;;  %v662_v40 = vmax.f32 %v628_v32, 0.0  ;;  %v1013_v41 = vadd.f32 %v1859_v25, %v1012_v38 }
 0x127   : > { %v1437_v42 = vpack.c.bf16 %v659_v35, %v659_v35  ;;  %v1551_v43 = vpack.c.bf16 %v1021_v36, %v1018_v26  ;;  %v660_v44 = vmax.f32 %v620_v37, 0.0 }
 0x128   : > { %822 = vst.msk [vmem:[%s1870_s27 + $0x78] sm:$0xf] %vm791_vm1, %v1439_v39  ;;  %v1440_v45 = vpack.c.bf16 %v662_v40, %v662_v40  ;;  %v1546_v46 = vpack.c.bf16 %v1013_v41, %v1010_v31 }
 0x129   : > { %820 = vst.msk [vmem:[%s1870_s27 + $0x70] sm:$0xf] %vm791_vm1, %v1437_v42  ;;  %1567 = vst [vmem:[%s1878_s30 + $0x78] sm:$0xff] %v1551_v43   ;;  %v1438_v47 = vpack.c.bf16 %v660_v44, %v660_v44 }
 0x12a   : > { %823 = vst.msk [vmem:[%s1870_s27 + $0x7c] sm:$0xf] %vm791_vm1, %v1440_v45  ;;  %1566 = vst [vmem:[%s1878_s30 + $0x70] sm:$0xff] %v1546_v46  }
 0x12b   : > { %821 = vst.msk [vmem:[%s1870_s27 + $0x74] sm:$0xf] %vm791_vm1, %v1438_v47 }
 0x12c PF: > { %s17_s21 = sadd.s32 1, %s1726_s21  }
 0x12d   : > { %p14_p4 = scmp.ge.s32.totalorder %s17_s21, 4  }
 0x12f   :  { %16 = sbr.rel (!%p14_p4) target bundleno = 1 (0x1), region = 82 }

// kernel: layer5_forward.11
= control target key start
LH: loop header
LB: loop body
LE: loop exit
PB: predicated region body
PF: predicated region fallthrough
CT: control target
= control target key end

     0   :  { %s1188_s15 = smov 0   ;;  %s1358_s0 = inlined_call_operand.vmem [shape: bf16[512,32], index: 0, kind: input, shape index: {}]   ;;  %s1359_s1 = inlined_call_operand.vmem [shape: bf16[32,128], index: 1, kind: input, shape index: {}]   ;;  %s1360_s2 = inlined_call_operand.vmem [shape: f32[1,128], index: 2, kind: input, shape index: {}]   ;;  %s1361_s3 = inlined_call_operand.vmem [shape: bf16[512,128], index: 3, kind: input, shape index: {}]   ;;  %s1362_s4 = inlined_call_operand.vmem [shape: bf16[512,128], index: 4, kind: output, shape index: {}]  }
   0x1 LB: > { %s957_s16 = sadd.s32 4294967295, %s1160_s15   ;;  %p961_p0 = scmp.ge.s32.totalorder %s1160_s15, 1  ;;  %s1160_s15 = sphi %s1188_s15, %s14_s15  }
   0x2   : > { %p174_p1 = scmp.lt.s32.totalorder %s1160_s15, 3 }
   0x4   : > { %p175_p2 = pnand %p961_p0, %p174_p1 }
   0x5   : > { %v1120_v0 = vld [vmem:[%s1359_s1] sm:$0xff] (!%p175_p2)   ;;  %s962_s19 = sshll.u32 (!%p175_p2), %s957_s16, 5  ;;  %v1121_v1 = vld [vmem:[%s1359_s1 + $0x8] sm:$0xff] (!%p175_p2)   ;;  %vm359_vm0 = vcmask (!%p175_p2), 261120   ;;  %v1162_v47 = vmov (!%p175_p2), 0  }
   0x6   : > { %178 = sbr.rel (%p175_p2) target bundleno = 272 (0x110), region = 36  ;;  %p206_p3 = scmp.lt.s32.totalorder (!%p175_p2), %s962_s19, 63  ;;  %1071 = vmatprep.subr.bf16.mxu0 (!%p175_p2), %v1120_v0  ;;  %1107 = vmatprep.subr.bf16.mxu1 (!%p175_p2), %v1120_v0  ;;  %v1251_v19 = vld [vmem:[%s1360_s2] ss:$0 sm:$0xff] (!%p175_p2) }
   0x7   : > { %1072 = vmatpush3.bf16.msra.mxu0 (!%p175_p2), %v1120_v0  ;;  %1109 = vmatpush3.bf16.msra.mxu1 (!%p175_p2), %v1120_v0 }
   0x8   : > { %1073 = vmatprep.subr.bf16.mxu0 (!%p175_p2), %v1121_v1  ;;  %1108 = vmatprep.subr.bf16.mxu1 (!%p175_p2), %v1121_v1 }
   0xb   : > { %1074 = vmatpush3.bf16.msra.mxu0 (!%p175_p2), %v1121_v1  ;;  %1110 = vmatpush3.bf16.msra.mxu1 (!%p175_p2), %v1121_v1 }
   0xd   : > { %s1364_s19 = smov (!%p206_p3, %s962_s19), 63 }
   0xe   : > { %s1202_s22 = sshll.u32 %s1364_s19, 2 }
   0xf   : > { %s1208_s25 = scalar_lea.vmem %s1358_s0, %s1202_s22  ;;  %s1235_s28 = scalar_lea.vmem %s1361_s3, %s1202_s22 }
  0x10   : > { %v1122_v2 = vld [vmem:[%s1208_s25] sm:$0xff]   ;;  %v1124_v4 = vld [vmem:[%s1208_s25 + $0x8] sm:$0xff]   ;;  %v1126_v6 = vld [vmem:[%s1208_s25 + $0x10] sm:$0xff]   ;;  %s1270_s7 = scalar_lea.vmem %s1362_s4, %s1202_s22 }
  0x11   : > { %v1123_v3 = vld [vmem:[%s1208_s25 + $0x40] sm:$0xff]   ;;  %1075 = vmatprep.mubr.msk.bf16.mxu0 %vm359_vm0, %v1122_v2  ;;  %v1125_v5 = vld [vmem:[%s1208_s25 + $0x48] sm:$0xff]   ;;  %v1127_v7 = vld [vmem:[%s1208_s25 + $0x50] sm:$0xff]  }
  0x12   : > { %1091 = vmatprep.mubr.msk.bf16.mxu1 %vm359_vm0, %v1123_v3  ;;  %1076 = vmatmul.mubr.msk.bf16.vlgmr.msra.gmra.mrb[0].mxu0 %vm359_vm0, %v1124_v4  ;;  %v1128_v8 = vld [vmem:[%s1208_s25 + $0x18] sm:$0xff]   ;;  %v1130_v10 = vld [vmem:[%s1208_s25 + $0x20] sm:$0xff]   ;;  %v1132_v12 = vld [vmem:[%s1208_s25 + $0x28] sm:$0xff]  }
  0x13   : > { %1092 = vmatmul.mubr.msk.bf16.vlgmr.msra.gmra.mrb[0].mxu1 %vm359_vm0, %v1125_v5  ;;  %1079 = vmatprep.mubr.msk.bf16.mxu0 %vm359_vm0, %v1126_v6  ;;  %v1129_v9 = vld [vmem:[%s1208_s25 + $0x58] sm:$0xff]   ;;  %v1131_v11 = vld [vmem:[%s1208_s25 + $0x60] sm:$0xff]   ;;  %v1133_v13 = vld [vmem:[%s1208_s25 + $0x68] sm:$0xff]  }
  0x14   : > { %1095 = vmatprep.mubr.msk.bf16.mxu1 %vm359_vm0, %v1127_v7  ;;  %v1134_v14 = vld [vmem:[%s1208_s25 + $0x30] sm:$0xff]   ;;  %v1136_v16 = vld [vmem:[%s1208_s25 + $0x38] sm:$0xff]   ;;  %v1138_v26 = vld [vmem:[%s1235_s28 + $0x8] sm:$0xff]  }
  0x15   : > { %v1135_v15 = vld [vmem:[%s1208_s25 + $0x70] sm:$0xff]   ;;  %v1137_v17 = vld [vmem:[%s1208_s25 + $0x78] sm:$0xff]   ;;  %v1139_v32 = vld [vmem:[%s1235_s28 + $0x48] sm:$0xff]  }
  0x16   : > { %v1140_v34 = vld [vmem:[%s1235_s28] sm:$0xff]   ;;  %v1142_v7 = vld [vmem:[%s1235_s28 + $0x18] sm:$0xff]  }
  0x17   : > { %v1141_v39 = vld [vmem:[%s1235_s28 + $0x40] sm:$0xff]  }
  0x1a   : > { %1080 = vmatmul.mubr.msk.bf16.gmra.mrb[4].mxu0 %vm359_vm0, %v1128_v8 }
  0x1b   : > { %1096 = vmatmul.mubr.msk.bf16.gmra.mrb[4].mxu1 %vm359_vm0, %v1129_v9  ;;  %1083 = vmatprep.mubr.msk.bf16.mxu0 %vm359_vm0, %v1130_v10  ;;  %v1143_v9 = vld [vmem:[%s1235_s28 + $0x58] sm:$0xff]  }
  0x1c   : > { %1099 = vmatprep.mubr.msk.bf16.mxu1 %vm359_vm0, %v1131_v11 }
  0x22   : > { %1084 = vmatmul.mubr.msk.bf16.gmra.mrb[8].mxu0 %vm359_vm0, %v1132_v12 }
  0x23   : > { %1100 = vmatmul.mubr.msk.bf16.gmra.mrb[8].mxu1 %vm359_vm0, %v1133_v13  ;;  %1087 = vmatprep.mubr.msk.bf16.mxu0 %vm359_vm0, %v1134_v14  ;;  %v1144_v13 = vld [vmem:[%s1235_s28 + $0x10] sm:$0xff]  }
  0x24   : > { %1103 = vmatprep.mubr.msk.bf16.mxu1 %vm359_vm0, %v1135_v15  ;;  %v1145_v15 = vld [vmem:[%s1235_s28 + $0x50] sm:$0xff]  }
  0x2a   : > { %1088 = vmatmul.mubr.msk.bf16.gmra.mrb[12].mxu0 %vm359_vm0, %v1136_v16 }
  0x2b   : > { %1104 = vmatmul.mubr.msk.bf16.gmra.mrb[12].mxu1 %vm359_vm0, %v1137_v17 }
  0xe5   : > { %v1077_v18 = vpop.f32.mrb[0].mxu0 }
  0xe6   : > { %v1093_v20 = vpop.f32.mrb[0].mxu1  ;;  %v442_v21 = vpop.f32.mrb[1].mxu0  ;;  %v451_v24 = vadd.f32 %v1077_v18, %v1251_v19 }
  0xe7   : > { %v506_v22 = vpop.f32.mrb[1].mxu1  ;;  %v1078_v23 = vpop.f32.mrb[2].mxu0  ;;  %v515_v29 = vadd.f32 %v1093_v20, %v1251_v19  ;;  %v443_v30 = vadd.f32 %v1251_v19, %v442_v21 }
  0xe8   : > { %v454_v25 = vadd.f32 %v1078_v23, %v1251_v19  ;;  %v1094_v27 = vpop.f32.mrb[2].mxu1  ;;  %v445_v28 = vpop.f32.mrb[3].mxu0  ;;  %v507_v36 = vadd.f32 %v1251_v19, %v506_v22 }
  0xe9   : > { %v518_v31 = vadd.f32 %v1094_v27, %v1251_v19  ;;  %v446_v33 = vadd.f32 %v1251_v19, %v445_v28  ;;  %v509_v35 = vpop.f32.mrb[3].mxu1 }
  0xea   : > { %v570_v37 = vpack.c.bf16 %v454_v25, %v451_v24  ;;  %v510_v38 = vadd.f32 %v1251_v19, %v509_v35 }
  0xeb   : > { %v578_v40 = vpack.c.bf16 %v518_v31, %v515_v29  ;;  %v569_v41 = vpack.c.bf16 %v446_v33, %v443_v30 }
  0xec   : > { %v714_v42 = vadd.bf16 %v1138_v26, %v570_v37  ;;  %v577_v43 = vpack.c.bf16 %v510_v38, %v507_v36 }
  0xed   : > { %v722_v44 = vadd.bf16 %v1139_v32, %v578_v40  ;;  %v713_v45 = vadd.bf16 %v1140_v34, %v569_v41  ;;  %v1081_v46 = vpop.f32.mrb[4].mxu0 }
  0xee   : > { %v730_v48 = vmax.bf16 %v1162_v47, %v714_v42  ;;  %v721_v49 = vadd.bf16 %v1141_v39, %v577_v43  ;;  %v1097_v50 = vpop.f32.mrb[4].mxu1  ;;  %v458_v51 = vpop.f32.mrb[5].mxu0  ;;  %v467_v54 = vadd.f32 %v1081_v46, %v1251_v19 }
  0xef   : > { %v738_v52 = vmax.bf16 %v1162_v47, %v722_v44  ;;  %v729_v53 = vmax.bf16 %v1162_v47, %v713_v45  ;;  %v522_v55 = vpop.f32.mrb[5].mxu1  ;;  %v1082_v56 = vpop.f32.mrb[6].mxu0  ;;  %v531_v60 = vadd.f32 %v1097_v50, %v1251_v19  ;;  %v459_v10 = vadd.f32 %v1251_v19, %v458_v51  ;;  %v1147_v50 = vld [vmem:[%s1235_s28 + $0x68] sm:$0xff]   ;;  %v1148_v51 = vld [vmem:[%s1235_s28 + $0x20] sm:$0xff]  }
  0xf0   : > { %v1021_v57 = vcombine.low %v730_v48, %v730_v48  ;;  %v1022_v58 = vcombine.high %v730_v48, %v730_v48  ;;  %v737_v59 = vmax.bf16 %v1162_v47, %v721_v49  ;;  %v1098_v61 = vpop.f32.mrb[6].mxu1  ;;  %v461_v62 = vpop.f32.mrb[7].mxu0  ;;  %v470_v6 = vadd.f32 %v1082_v56, %v1251_v19  ;;  %v1146_v49 = vld [vmem:[%s1235_s28 + $0x28] sm:$0xff]  }
  0xf1   : > { %v1037_v63 = vcombine.low %v738_v52, %v738_v52  ;;  %v1038_v0 = vcombine.high %v738_v52, %v738_v52  ;;  %v1019_v1 = vcombine.low %v729_v53, %v729_v53  ;;  %v1020_v2 = vcombine.high %v729_v53, %v729_v53  ;;  %v525_v3 = vpop.f32.mrb[7].mxu1 }
  0xf2   : > { %859 = vst [vmem:[%s1270_s7 + $0x8] sm:$0xf] %v1021_v57  ;;  %860 = vst [vmem:[%s1270_s7 + $0xc] sm:$0xf] %v1022_v58  ;;  %v1035_v4 = vcombine.low %v737_v59, %v737_v59  ;;  %v1036_v5 = vcombine.high %v737_v59, %v737_v59  ;;  %v534_v8 = vadd.f32 %v1098_v61, %v1251_v19 }
  0xf3   : > { %875 = vst [vmem:[%s1270_s7 + $0x48] sm:$0xf] %v1037_v63  ;;  %876 = vst [vmem:[%s1270_s7 + $0x4c] sm:$0xf] %v1038_v0  ;;  %v523_v11 = vadd.f32 %v1251_v19, %v522_v55  ;;  %v462_v12 = vadd.f32 %v1251_v19, %v461_v62  ;;  %v526_v14 = vadd.f32 %v1251_v19, %v525_v3 }
  0xf4   : > { %857 = vst [vmem:[%s1270_s7] sm:$0xf] %v1019_v1  ;;  %858 = vst [vmem:[%s1270_s7 + $0x4] sm:$0xf] %v1020_v2  ;;  %v572_v16 = vpack.c.bf16 %v470_v6, %v467_v54  ;;  %v580_v17 = vpack.c.bf16 %v534_v8, %v531_v60  ;;  %v1149_v60 = vld [vmem:[%s1235_s28 + $0x60] sm:$0xff]  }
  0xf5   : > { %873 = vst [vmem:[%s1270_s7 + $0x40] sm:$0xf] %v1035_v4  ;;  %874 = vst [vmem:[%s1270_s7 + $0x44] sm:$0xf] %v1036_v5  ;;  %v571_v18 = vpack.c.bf16 %v462_v12, %v459_v10  ;;  %v579_v20 = vpack.c.bf16 %v526_v14, %v523_v11  ;;  %v1085_v21 = vpop.f32.mrb[8].mxu0 }
  0xf6   : > { %v716_v22 = vadd.bf16 %v1142_v7, %v572_v16  ;;  %v724_v23 = vadd.bf16 %v1143_v9, %v580_v17  ;;  %v483_v24 = vadd.f32 %v1085_v21, %v1251_v19  ;;  %v1101_v25 = vpop.f32.mrb[8].mxu1  ;;  %v474_v26 = vpop.f32.mrb[9].mxu0  ;;  %v1150_v16 = vld [vmem:[%s1235_s28 + $0x38] sm:$0xff]  }
  0xf7   : > { %v715_v27 = vadd.bf16 %v1144_v13, %v571_v18  ;;  %v723_v28 = vadd.bf16 %v1145_v15, %v579_v20  ;;  %v547_v29 = vadd.f32 %v1101_v25, %v1251_v19  ;;  %v475_v30 = vadd.f32 %v1251_v19, %v474_v26  ;;  %v538_v31 = vpop.f32.mrb[9].mxu1  ;;  %v1086_v32 = vpop.f32.mrb[10].mxu0  ;;  %v1151_v25 = vld [vmem:[%s1235_s28 + $0x78] sm:$0xff]   ;;  %v1152_v26 = vld [vmem:[%s1235_s28 + $0x30] sm:$0xff]  }
  0xf8   : > { %v732_v33 = vmax.bf16 %v1162_v47, %v716_v22  ;;  %v740_v34 = vmax.bf16 %v1162_v47, %v724_v23  ;;  %v539_v35 = vadd.f32 %v1251_v19, %v538_v31  ;;  %v486_v36 = vadd.f32 %v1086_v32, %v1251_v19  ;;  %v1102_v37 = vpop.f32.mrb[10].mxu1  ;;  %v477_v38 = vpop.f32.mrb[11].mxu0 }
  0xf9   : > { %v731_v39 = vmax.bf16 %v1162_v47, %v715_v27  ;;  %v739_v40 = vmax.bf16 %v1162_v47, %v723_v28  ;;  %v550_v41 = vadd.f32 %v1102_v37, %v1251_v19  ;;  %v478_v42 = vadd.f32 %v1251_v19, %v477_v38  ;;  %v541_v43 = vpop.f32.mrb[11].mxu1 }
  0xfa   : > { %v1025_v44 = vcombine.low %v732_v33, %v732_v33  ;;  %v1026_v45 = vcombine.high %v732_v33, %v732_v33  ;;  %v1041_v46 = vcombine.low %v740_v34, %v740_v34  ;;  %v1042_v48 = vcombine.high %v740_v34, %v740_v34 }
  0xfb   : > { %v1023_v52 = vcombine.low %v731_v39, %v731_v39  ;;  %v1024_v53 = vcombine.high %v731_v39, %v731_v39  ;;  %v1039_v54 = vcombine.low %v739_v40, %v739_v40  ;;  %v1040_v55 = vcombine.high %v739_v40, %v739_v40 }
  0xfc   : > { %863 = vst [vmem:[%s1270_s7 + $0x18] sm:$0xf] %v1025_v44  ;;  %864 = vst [vmem:[%s1270_s7 + $0x1c] sm:$0xf] %v1026_v45  ;;  %v574_v56 = vpack.c.bf16 %v486_v36, %v483_v24  ;;  %v582_v57 = vpack.c.bf16 %v550_v41, %v547_v29  ;;  %v573_v58 = vpack.c.bf16 %v478_v42, %v475_v30 }
  0xfd   : > { %879 = vst [vmem:[%s1270_s7 + $0x58] sm:$0xf] %v1041_v46  ;;  %880 = vst [vmem:[%s1270_s7 + $0x5c] sm:$0xf] %v1042_v48  ;;  %v542_v59 = vadd.f32 %v1251_v19, %v541_v43  ;;  %v1089_v61 = vpop.f32.mrb[12].mxu0 }
  0xfe   : > { %861 = vst [vmem:[%s1270_s7 + $0x10] sm:$0xf] %v1023_v52  ;;  %862 = vst [vmem:[%s1270_s7 + $0x14] sm:$0xf] %v1024_v53  ;;  %v718_v62 = vadd.bf16 %v1146_v49, %v574_v56  ;;  %v726_v63 = vadd.bf16 %v1147_v50, %v582_v57  ;;  %v717_v0 = vadd.bf16 %v1148_v51, %v573_v58  ;;  %v1105_v2 = vpop.f32.mrb[12].mxu1  ;;  %v490_v3 = vpop.f32.mrb[13].mxu0 }
  0xff   : > { %877 = vst [vmem:[%s1270_s7 + $0x50] sm:$0xf] %v1039_v54  ;;  %878 = vst [vmem:[%s1270_s7 + $0x54] sm:$0xf] %v1040_v55  ;;  %v581_v1 = vpack.c.bf16 %v542_v59, %v539_v35  ;;  %v499_v4 = vadd.f32 %v1089_v61, %v1251_v19  ;;  %v563_v5 = vadd.f32 %v1105_v2, %v1251_v19  ;;  %v554_v6 = vpop.f32.mrb[13].mxu1  ;;  %v1090_v7 = vpop.f32.mrb[14].mxu0 }
 0x100   : > { %v734_v8 = vmax.bf16 %v1162_v47, %v718_v62  ;;  %v742_v9 = vmax.bf16 %v1162_v47, %v726_v63  ;;  %v733_v10 = vmax.bf16 %v1162_v47, %v717_v0  ;;  %v1106_v12 = vpop.f32.mrb[14].mxu1  ;;  %v493_v13 = vpop.f32.mrb[15].mxu0  ;;  %v491_v14 = vadd.f32 %v1251_v19, %v490_v3  ;;  %v1153_v35 = vld [vmem:[%s1235_s28 + $0x70] sm:$0xff]  }
 0x101   : > { %v725_v11 = vadd.bf16 %v1149_v60, %v581_v1  ;;  %v502_v15 = vadd.f32 %v1090_v7, %v1251_v19  ;;  %v566_v17 = vadd.f32 %v1106_v12, %v1251_v19  ;;  %v494_v18 = vadd.f32 %v1251_v19, %v493_v13  ;;  %v557_v20 = vpop.f32.mrb[15].mxu1 }
 0x102   : > { %v1029_v21 = vcombine.low %v734_v8, %v734_v8  ;;  %v1030_v22 = vcombine.high %v734_v8, %v734_v8  ;;  %v1045_v23 = vcombine.low %v742_v9, %v742_v9  ;;  %v1046_v24 = vcombine.high %v742_v9, %v742_v9 }
 0x103   : > { %v1027_v27 = vcombine.low %v733_v10, %v733_v10  ;;  %v1028_v28 = vcombine.high %v733_v10, %v733_v10  ;;  %v741_v29 = vmax.bf16 %v1162_v47, %v725_v11  ;;  %v576_v30 = vpack.c.bf16 %v502_v15, %v499_v4 }
 0x104   : > { %867 = vst [vmem:[%s1270_s7 + $0x28] sm:$0xf] %v1029_v21  ;;  %868 = vst [vmem:[%s1270_s7 + $0x2c] sm:$0xf] %v1030_v22  ;;  %v555_v31 = vadd.f32 %v1251_v19, %v554_v6  ;;  %v584_v32 = vpack.c.bf16 %v566_v17, %v563_v5  ;;  %v575_v33 = vpack.c.bf16 %v494_v18, %v491_v14 }
 0x105   : > { %883 = vst [vmem:[%s1270_s7 + $0x68] sm:$0xf] %v1045_v23  ;;  %884 = vst [vmem:[%s1270_s7 + $0x6c] sm:$0xf] %v1046_v24  ;;  %v558_v34 = vadd.f32 %v1251_v19, %v557_v20  ;;  %v1043_v36 = vcombine.low %v741_v29, %v741_v29  ;;  %v1044_v37 = vcombine.high %v741_v29, %v741_v29 }
 0x106   : > { %865 = vst [vmem:[%s1270_s7 + $0x20] sm:$0xf] %v1027_v27  ;;  %866 = vst [vmem:[%s1270_s7 + $0x24] sm:$0xf] %v1028_v28  ;;  %v720_v38 = vadd.bf16 %v1150_v16, %v576_v30  ;;  %v728_v39 = vadd.bf16 %v1151_v25, %v584_v32  ;;  %v719_v40 = vadd.bf16 %v1152_v26, %v575_v33 }
 0x107   : > { %v583_v41 = vpack.c.bf16 %v558_v34, %v555_v31  ;;  %881 = vst [vmem:[%s1270_s7 + $0x60] sm:$0xf] %v1043_v36  ;;  %882 = vst [vmem:[%s1270_s7 + $0x64] sm:$0xf] %v1044_v37 }
 0x108   : > { %v736_v42 = vmax.bf16 %v1162_v47, %v720_v38  ;;  %v744_v19 = vmax.bf16 %v1162_v47, %v728_v39  ;;  %v735_v43 = vmax.bf16 %v1162_v47, %v719_v40 }
 0x109   : > { %v727_v44 = vadd.bf16 %v1153_v35, %v583_v41 }
 0x10a   : > { %v1033_v45 = vcombine.low %v736_v42, %v736_v42  ;;  %v1034_v46 = vcombine.high %v736_v42, %v736_v42  ;;  %v1049_v48 = vcombine.low %v744_v19, %v744_v19  ;;  %v1050_v49 = vcombine.high %v744_v19, %v744_v19 }
 0x10b   : > { %v1031_v50 = vcombine.low %v735_v43, %v735_v43  ;;  %v1032_v51 = vcombine.high %v735_v43, %v735_v43  ;;  %v743_v52 = vmax.bf16 %v1162_v47, %v727_v44 }
 0x10c   : > { %871 = vst [vmem:[%s1270_s7 + $0x38] sm:$0xf] %v1033_v45  ;;  %872 = vst [vmem:[%s1270_s7 + $0x3c] sm:$0xf] %v1034_v46 }
 0x10d   : > { %887 = vst [vmem:[%s1270_s7 + $0x78] sm:$0xf] %v1049_v48  ;;  %888 = vst [vmem:[%s1270_s7 + $0x7c] sm:$0xf] %v1050_v49  ;;  %v1047_v53 = vcombine.low %v743_v52, %v743_v52  ;;  %v1048_v54 = vcombine.high %v743_v52, %v743_v52 }
 0x10e   : > { %869 = vst [vmem:[%s1270_s7 + $0x30] sm:$0xf] %v1031_v50  ;;  %870 = vst [vmem:[%s1270_s7 + $0x34] sm:$0xf] %v1032_v51 }
 0x10f   : > { %885 = vst [vmem:[%s1270_s7 + $0x70] sm:$0xf] %v1047_v53  ;;  %886 = vst [vmem:[%s1270_s7 + $0x74] sm:$0xf] %v1048_v54 }
 0x110 PF: > { %s14_s15 = sadd.s32 1, %s1160_s15  }
 0x111   : > { %p11_p4 = scmp.ge.s32.totalorder %s14_s15, 4  }
 0x113   :  { %13 = sbr.rel (!%p11_p4) target bundleno = 1 (0x1), region = 69 }

// kernel: layer5_forward.12
= control target key start
LH: loop header
LB: loop body
LE: loop exit
PB: predicated region body
PF: predicated region fallthrough
CT: control target
= control target key end

     0   :  { %s1032_s12 = smov 0   ;;  %s1201_s0 = inlined_call_operand.vmem [shape: bf16[512,128], index: 0, kind: input, shape index: {}]   ;;  %s1202_s1 = inlined_call_operand.vmem [shape: bf16[128,32], index: 1, kind: input, shape index: {}]   ;;  %s1203_s2 = inlined_call_operand.vmem [shape: f32[1,32], index: 2, kind: input, shape index: {}]   ;;  %s1204_s3 = inlined_call_operand.vmem [shape: bf16[512,32], index: 3, kind: output, shape index: {}]  }
   0x1 LB: > { %s784_s13 = sadd.s32 4294967295, %s1010_s12   ;;  %p788_p0 = scmp.ge.s32.totalorder %s1010_s12, 1  ;;  %s1010_s12 = sphi %s1032_s12, %s13_s12  }
   0x2   : > { %p138_p1 = scmp.lt.s32.totalorder %s1010_s12, 3 }
   0x4   : > { %p139_p2 = pnand %p788_p0, %p138_p1 }
   0x5   : > { %v980_v0 = vld [vmem:[%s1202_s1] sm:$0xff] (!%p139_p2)   ;;  %s789_s16 = sshll.u32 (!%p139_p2), %s784_s13, 5  ;;  %v981_v1 = vld [vmem:[%s1202_s1 + $0x8] sm:$0xff] (!%p139_p2)   ;;  %v982_v2 = vld [vmem:[%s1202_s1 + $0x10] sm:$0xff] (!%p139_p2)   ;;  %vm695_vm0 = vcmask (!%p139_p2), 257024  }
   0x6   : > { %142 = sbr.rel (%p139_p2) target bundleno = 284 (0x11c), region = 32  ;;  %p163_p3 = scmp.lt.s32.totalorder (!%p139_p2), %s789_s16, 63  ;;  %908 = vmatprep.subr.bf16.mxu0 (!%p139_p2), %v980_v0  ;;  %956 = vmatprep.subr.bf16.mxu1 (!%p139_p2), %v980_v0  ;;  %v983_v3 = vld [vmem:[%s1202_s1 + $0x18] sm:$0xff] (!%p139_p2)   ;;  %v984_v6 = vld [vmem:[%s1202_s1 + $0x20] sm:$0xff] (!%p139_p2)   ;;  %v985_v7 = vld [vmem:[%s1202_s1 + $0x28] sm:$0xff] (!%p139_p2)  }
   0x7   : > { %909 = vmatpush3.bf16.msra.mxu0 (!%p139_p2), %v980_v0  ;;  %964 = vmatpush3.bf16.msra.mxu1 (!%p139_p2), %v980_v0  ;;  %v986_v8 = vld [vmem:[%s1202_s1 + $0x30] sm:$0xff] (!%p139_p2)   ;;  %v987_v9 = vld [vmem:[%s1202_s1 + $0x38] sm:$0xff] (!%p139_p2)   ;;  %v1093_v24 = vld [vmem:[%s1203_s2] ss:$0 sm:$0xff] (!%p139_p2) }
   0x8   : > { %910 = vmatprep.subr.bf16.mxu0 (!%p139_p2), %v981_v1  ;;  %957 = vmatprep.subr.bf16.mxu1 (!%p139_p2), %v981_v1 }
   0xb   : > { %911 = vmatpush3.bf16.msra.mxu0 (!%p139_p2), %v981_v1  ;;  %965 = vmatpush3.bf16.msra.mxu1 (!%p139_p2), %v981_v1 }
   0xc   : > { %912 = vmatprep.subr.bf16.mxu0 (!%p139_p2), %v982_v2  ;;  %958 = vmatprep.subr.bf16.mxu1 (!%p139_p2), %v982_v2 }
   0xd   : > { %s1206_s16 = smov (!%p163_p3, %s789_s16), 63 }
   0xe   : > { %s790_s21 = sshll.u32 %s1206_s16, 2 }
   0xf   : > { %s1057_s24 = scalar_lea.vmem %s1201_s0, %s790_s21  ;;  %913 = vmatpush3.bf16.msra.mxu0 %v982_v2  ;;  %966 = vmatpush3.bf16.msra.mxu1 %v982_v2  ;;  %s1106_s13 = scalar_lea.vmem %s1204_s3, %s790_s21 }
  0x10   : > { %v988_v4 = vld [vmem:[%s1057_s24] sm:$0xff]   ;;  %914 = vmatprep.subr.bf16.mxu0 %v983_v3  ;;  %959 = vmatprep.subr.bf16.mxu1 %v983_v3  ;;  %v990_v10 = vld [vmem:[%s1057_s24 + $0x8] sm:$0xff]   ;;  %v992_v12 = vld [vmem:[%s1057_s24 + $0x10] sm:$0xff]  }
  0x11   : > { %v989_v5 = vld [vmem:[%s1057_s24 + $0x40] sm:$0xff]   ;;  %924 = vmatprep.mubr.bf16.mxu0 %v988_v4  ;;  %v991_v11 = vld [vmem:[%s1057_s24 + $0x48] sm:$0xff]   ;;  %v993_v13 = vld [vmem:[%s1057_s24 + $0x50] sm:$0xff]  }
  0x12   : > { %940 = vmatprep.mubr.bf16.mxu1 %v989_v5  ;;  %v994_v14 = vld [vmem:[%s1057_s24 + $0x18] sm:$0xff]   ;;  %v996_v16 = vld [vmem:[%s1057_s24 + $0x20] sm:$0xff]   ;;  %v998_v18 = vld [vmem:[%s1057_s24 + $0x28] sm:$0xff]  }
  0x13   : > { %915 = vmatpush3.bf16.msra.mxu0 %v983_v3  ;;  %967 = vmatpush3.bf16.msra.mxu1 %v983_v3  ;;  %v995_v15 = vld [vmem:[%s1057_s24 + $0x58] sm:$0xff]   ;;  %v997_v17 = vld [vmem:[%s1057_s24 + $0x60] sm:$0xff]   ;;  %v999_v19 = vld [vmem:[%s1057_s24 + $0x68] sm:$0xff]  }
  0x14   : > { %916 = vmatprep.subr.bf16.mxu0 %v984_v6  ;;  %960 = vmatprep.subr.bf16.mxu1 %v984_v6  ;;  %v1000_v20 = vld [vmem:[%s1057_s24 + $0x30] sm:$0xff]   ;;  %v1002_v22 = vld [vmem:[%s1057_s24 + $0x38] sm:$0xff]  }
  0x15   : > { %v1001_v21 = vld [vmem:[%s1057_s24 + $0x70] sm:$0xff]   ;;  %v1003_v23 = vld [vmem:[%s1057_s24 + $0x78] sm:$0xff]  }
  0x17   : > { %917 = vmatpush3.bf16.msra.mxu0 %v984_v6  ;;  %968 = vmatpush3.bf16.msra.mxu1 %v984_v6 }
  0x18   : > { %918 = vmatprep.subr.bf16.mxu0 %v985_v7  ;;  %961 = vmatprep.subr.bf16.mxu1 %v985_v7 }
  0x1b   : > { %919 = vmatpush3.bf16.msra.mxu0 %v985_v7  ;;  %969 = vmatpush3.bf16.msra.mxu1 %v985_v7 }
  0x1c   : > { %920 = vmatprep.subr.bf16.mxu0 %v986_v8  ;;  %962 = vmatprep.subr.bf16.mxu1 %v986_v8 }
  0x1f   : > { %921 = vmatpush3.bf16.msra.mxu0 %v986_v8  ;;  %970 = vmatpush3.bf16.msra.mxu1 %v986_v8 }
  0x20   : > { %922 = vmatprep.subr.bf16.mxu0 %v987_v9  ;;  %963 = vmatprep.subr.bf16.mxu1 %v987_v9 }
  0x23   : > { %923 = vmatpush3.bf16.msra.mxu0 %v987_v9  ;;  %971 = vmatpush3.bf16.msra.mxu1 %v987_v9 }
  0x26   : > { %925 = vmatmul.mubr.bf16.vlgmr.msra.gmra.mrb[0].mxu0 %v990_v10  ;;  %941 = vmatmul.mubr.bf16.vlgmr.msra.gmra.mrb[0].mxu1 %v991_v11 }
  0x27   : > { %928 = vmatprep.mubr.bf16.mxu0 %v992_v12  ;;  %944 = vmatprep.mubr.bf16.mxu1 %v993_v13 }
  0x2e   : > { %929 = vmatmul.mubr.bf16.gmra.mrb[4].mxu0 %v994_v14  ;;  %945 = vmatmul.mubr.bf16.gmra.mrb[4].mxu1 %v995_v15 }
  0x2f   : > { %932 = vmatprep.mubr.bf16.mxu0 %v996_v16  ;;  %948 = vmatprep.mubr.bf16.mxu1 %v997_v17 }
  0x36   : > { %933 = vmatmul.mubr.bf16.gmra.mrb[8].mxu0 %v998_v18  ;;  %949 = vmatmul.mubr.bf16.gmra.mrb[8].mxu1 %v999_v19 }
  0x37   : > { %936 = vmatprep.mubr.bf16.mxu0 %v1000_v20  ;;  %952 = vmatprep.mubr.bf16.mxu1 %v1001_v21 }
  0x3e   : > { %937 = vmatmul.mubr.bf16.gmra.mrb[12].mxu0 %v1002_v22  ;;  %953 = vmatmul.mubr.bf16.gmra.mrb[12].mxu1 %v1003_v23 }
  0xf9   : > { %v926_v25 = vpop.f32.mrb[0].mxu0  ;;  %v942_v26 = vpop.f32.mrb[0].mxu1 }
  0xfa   : > { %v417_v27 = vadd.f32 %v926_v25, %v1093_v24  ;;  %v481_v28 = vadd.f32 %v942_v26, %v1093_v24  ;;  %v408_v29 = vpop.f32.mrb[1].mxu0  ;;  %v472_v30 = vpop.f32.mrb[1].mxu1 }
  0xfb   : > { %v409_v31 = vadd.f32 %v1093_v24, %v408_v29  ;;  %v473_v32 = vadd.f32 %v1093_v24, %v472_v30  ;;  %v927_v33 = vpop.f32.mrb[2].mxu0  ;;  %v943_v34 = vpop.f32.mrb[2].mxu1 }
  0xfc   : > { %v537_v35 = vmax.f32 %v417_v27, 0.0  ;;  %v553_v36 = vmax.f32 %v481_v28, 0.0  ;;  %v420_v37 = vadd.f32 %v927_v33, %v1093_v24  ;;  %v484_v38 = vadd.f32 %v943_v34, %v1093_v24  ;;  %v411_v39 = vpop.f32.mrb[3].mxu0  ;;  %v475_v40 = vpop.f32.mrb[3].mxu1 }
  0xfd   : > { %v535_v41 = vmax.f32 %v409_v31, 0.0  ;;  %v551_v42 = vmax.f32 %v473_v32, 0.0  ;;  %v412_v43 = vadd.f32 %v1093_v24, %v411_v39  ;;  %v476_v44 = vadd.f32 %v1093_v24, %v475_v40 }
  0xfe   : > { %v854_v45 = vpack.c.bf16 %v537_v35, %v537_v35  ;;  %v870_v46 = vpack.c.bf16 %v553_v36, %v553_v36  ;;  %v538_v47 = vmax.f32 %v420_v37, 0.0  ;;  %v554_v48 = vmax.f32 %v484_v38, 0.0 }
  0xff   : > { %v852_v49 = vpack.c.bf16 %v535_v41, %v535_v41  ;;  %v868_v50 = vpack.c.bf16 %v551_v42, %v551_v42  ;;  %v536_v51 = vmax.f32 %v412_v43, 0.0  ;;  %v552_v52 = vmax.f32 %v476_v44, 0.0 }
 0x100   : > { %698 = vst.msk [vmem:[%s1106_s13 + $0x8] sm:$0xf] %vm695_vm0, %v854_v45  ;;  %714 = vst.msk [vmem:[%s1106_s13 + $0x48] sm:$0xf] %vm695_vm0, %v870_v46  ;;  %v855_v53 = vpack.c.bf16 %v538_v47, %v538_v47  ;;  %v871_v54 = vpack.c.bf16 %v554_v48, %v554_v48 }
 0x101   : > { %696 = vst.msk [vmem:[%s1106_s13] sm:$0xf] %vm695_vm0, %v852_v49  ;;  %712 = vst.msk [vmem:[%s1106_s13 + $0x40] sm:$0xf] %vm695_vm0, %v868_v50  ;;  %v853_v55 = vpack.c.bf16 %v536_v51, %v536_v51  ;;  %v869_v56 = vpack.c.bf16 %v552_v52, %v552_v52  ;;  %v930_v57 = vpop.f32.mrb[4].mxu0  ;;  %v946_v58 = vpop.f32.mrb[4].mxu1 }
 0x102   : > { %699 = vst.msk [vmem:[%s1106_s13 + $0xc] sm:$0xf] %vm695_vm0, %v855_v53  ;;  %715 = vst.msk [vmem:[%s1106_s13 + $0x4c] sm:$0xf] %vm695_vm0, %v871_v54  ;;  %v433_v59 = vadd.f32 %v930_v57, %v1093_v24  ;;  %v497_v60 = vadd.f32 %v946_v58, %v1093_v24  ;;  %v424_v61 = vpop.f32.mrb[5].mxu0  ;;  %v488_v62 = vpop.f32.mrb[5].mxu1 }
 0x103   : > { %697 = vst.msk [vmem:[%s1106_s13 + $0x4] sm:$0xf] %vm695_vm0, %v853_v55  ;;  %713 = vst.msk [vmem:[%s1106_s13 + $0x44] sm:$0xf] %vm695_vm0, %v869_v56  ;;  %v425_v63 = vadd.f32 %v1093_v24, %v424_v61  ;;  %v489_v0 = vadd.f32 %v1093_v24, %v488_v62  ;;  %v931_v1 = vpop.f32.mrb[6].mxu0  ;;  %v947_v2 = vpop.f32.mrb[6].mxu1 }
 0x104   : > { %v541_v3 = vmax.f32 %v433_v59, 0.0  ;;  %v557_v4 = vmax.f32 %v497_v60, 0.0  ;;  %v436_v5 = vadd.f32 %v931_v1, %v1093_v24  ;;  %v500_v6 = vadd.f32 %v947_v2, %v1093_v24  ;;  %v427_v7 = vpop.f32.mrb[7].mxu0  ;;  %v491_v8 = vpop.f32.mrb[7].mxu1 }
 0x105   : > { %v539_v9 = vmax.f32 %v425_v63, 0.0  ;;  %v555_v10 = vmax.f32 %v489_v0, 0.0  ;;  %v428_v11 = vadd.f32 %v1093_v24, %v427_v7  ;;  %v492_v12 = vadd.f32 %v1093_v24, %v491_v8 }
 0x106   : > { %v858_v13 = vpack.c.bf16 %v541_v3, %v541_v3  ;;  %v874_v14 = vpack.c.bf16 %v557_v4, %v557_v4  ;;  %v542_v15 = vmax.f32 %v436_v5, 0.0  ;;  %v558_v16 = vmax.f32 %v500_v6, 0.0 }
 0x107   : > { %v856_v17 = vpack.c.bf16 %v539_v9, %v539_v9  ;;  %v872_v18 = vpack.c.bf16 %v555_v10, %v555_v10  ;;  %v540_v19 = vmax.f32 %v428_v11, 0.0  ;;  %v556_v20 = vmax.f32 %v492_v12, 0.0 }
 0x108   : > { %702 = vst.msk [vmem:[%s1106_s13 + $0x18] sm:$0xf] %vm695_vm0, %v858_v13  ;;  %718 = vst.msk [vmem:[%s1106_s13 + $0x58] sm:$0xf] %vm695_vm0, %v874_v14  ;;  %v859_v21 = vpack.c.bf16 %v542_v15, %v542_v15  ;;  %v875_v22 = vpack.c.bf16 %v558_v16, %v558_v16 }
 0x109   : > { %700 = vst.msk [vmem:[%s1106_s13 + $0x10] sm:$0xf] %vm695_vm0, %v856_v17  ;;  %716 = vst.msk [vmem:[%s1106_s13 + $0x50] sm:$0xf] %vm695_vm0, %v872_v18  ;;  %v857_v23 = vpack.c.bf16 %v540_v19, %v540_v19  ;;  %v873_v25 = vpack.c.bf16 %v556_v20, %v556_v20  ;;  %v934_v26 = vpop.f32.mrb[8].mxu0  ;;  %v950_v27 = vpop.f32.mrb[8].mxu1 }
 0x10a   : > { %703 = vst.msk [vmem:[%s1106_s13 + $0x1c] sm:$0xf] %vm695_vm0, %v859_v21  ;;  %719 = vst.msk [vmem:[%s1106_s13 + $0x5c] sm:$0xf] %vm695_vm0, %v875_v22  ;;  %v449_v28 = vadd.f32 %v934_v26, %v1093_v24  ;;  %v513_v29 = vadd.f32 %v950_v27, %v1093_v24  ;;  %v440_v30 = vpop.f32.mrb[9].mxu0  ;;  %v504_v31 = vpop.f32.mrb[9].mxu1 }
 0x10b   : > { %701 = vst.msk [vmem:[%s1106_s13 + $0x14] sm:$0xf] %vm695_vm0, %v857_v23  ;;  %717 = vst.msk [vmem:[%s1106_s13 + $0x54] sm:$0xf] %vm695_vm0, %v873_v25  ;;  %v441_v32 = vadd.f32 %v1093_v24, %v440_v30  ;;  %v505_v33 = vadd.f32 %v1093_v24, %v504_v31  ;;  %v935_v34 = vpop.f32.mrb[10].mxu0  ;;  %v951_v35 = vpop.f32.mrb[10].mxu1 }
 0x10c   : > { %v545_v36 = vmax.f32 %v449_v28, 0.0  ;;  %v561_v37 = vmax.f32 %v513_v29, 0.0  ;;  %v452_v38 = vadd.f32 %v935_v34, %v1093_v24  ;;  %v516_v39 = vadd.f32 %v951_v35, %v1093_v24  ;;  %v443_v40 = vpop.f32.mrb[11].mxu0  ;;  %v507_v41 = vpop.f32.mrb[11].mxu1 }
 0x10d   : > { %v543_v42 = vmax.f32 %v441_v32, 0.0  ;;  %v559_v43 = vmax.f32 %v505_v33, 0.0  ;;  %v444_v44 = vadd.f32 %v1093_v24, %v443_v40  ;;  %v508_v45 = vadd.f32 %v1093_v24, %v507_v41 }
 0x10e   : > { %v862_v46 = vpack.c.bf16 %v545_v36, %v545_v36  ;;  %v878_v47 = vpack.c.bf16 %v561_v37, %v561_v37  ;;  %v546_v48 = vmax.f32 %v452_v38, 0.0  ;;  %v562_v49 = vmax.f32 %v516_v39, 0.0 }
 0x10f   : > { %v860_v50 = vpack.c.bf16 %v543_v42, %v543_v42  ;;  %v876_v51 = vpack.c.bf16 %v559_v43, %v559_v43  ;;  %v544_v52 = vmax.f32 %v444_v44, 0.0  ;;  %v560_v53 = vmax.f32 %v508_v45, 0.0 }
 0x110   : > { %706 = vst.msk [vmem:[%s1106_s13 + $0x28] sm:$0xf] %vm695_vm0, %v862_v46  ;;  %722 = vst.msk [vmem:[%s1106_s13 + $0x68] sm:$0xf] %vm695_vm0, %v878_v47  ;;  %v863_v54 = vpack.c.bf16 %v546_v48, %v546_v48  ;;  %v879_v55 = vpack.c.bf16 %v562_v49, %v562_v49 }
 0x111   : > { %704 = vst.msk [vmem:[%s1106_s13 + $0x20] sm:$0xf] %vm695_vm0, %v860_v50  ;;  %720 = vst.msk [vmem:[%s1106_s13 + $0x60] sm:$0xf] %vm695_vm0, %v876_v51  ;;  %v861_v56 = vpack.c.bf16 %v544_v52, %v544_v52  ;;  %v877_v57 = vpack.c.bf16 %v560_v53, %v560_v53  ;;  %v938_v58 = vpop.f32.mrb[12].mxu0  ;;  %v954_v59 = vpop.f32.mrb[12].mxu1 }
 0x112   : > { %707 = vst.msk [vmem:[%s1106_s13 + $0x2c] sm:$0xf] %vm695_vm0, %v863_v54  ;;  %723 = vst.msk [vmem:[%s1106_s13 + $0x6c] sm:$0xf] %vm695_vm0, %v879_v55  ;;  %v465_v60 = vadd.f32 %v938_v58, %v1093_v24  ;;  %v529_v61 = vadd.f32 %v954_v59, %v1093_v24  ;;  %v456_v62 = vpop.f32.mrb[13].mxu0  ;;  %v520_v63 = vpop.f32.mrb[13].mxu1 }
 0x113   : > { %705 = vst.msk [vmem:[%s1106_s13 + $0x24] sm:$0xf] %vm695_vm0, %v861_v56  ;;  %721 = vst.msk [vmem:[%s1106_s13 + $0x64] sm:$0xf] %vm695_vm0, %v877_v57  ;;  %v457_v0 = vadd.f32 %v1093_v24, %v456_v62  ;;  %v521_v1 = vadd.f32 %v1093_v24, %v520_v63  ;;  %v939_v2 = vpop.f32.mrb[14].mxu0  ;;  %v955_v3 = vpop.f32.mrb[14].mxu1 }
 0x114   : > { %v549_v4 = vmax.f32 %v465_v60, 0.0  ;;  %v565_v5 = vmax.f32 %v529_v61, 0.0  ;;  %v468_v6 = vadd.f32 %v939_v2, %v1093_v24  ;;  %v532_v7 = vadd.f32 %v955_v3, %v1093_v24  ;;  %v459_v8 = vpop.f32.mrb[15].mxu0  ;;  %v523_v9 = vpop.f32.mrb[15].mxu1 }
 0x115   : > { %v547_v10 = vmax.f32 %v457_v0, 0.0  ;;  %v563_v11 = vmax.f32 %v521_v1, 0.0  ;;  %v460_v12 = vadd.f32 %v1093_v24, %v459_v8  ;;  %v524_v13 = vadd.f32 %v1093_v24, %v523_v9 }
 0x116   : > { %v866_v14 = vpack.c.bf16 %v549_v4, %v549_v4  ;;  %v882_v15 = vpack.c.bf16 %v565_v5, %v565_v5  ;;  %v550_v16 = vmax.f32 %v468_v6, 0.0  ;;  %v566_v17 = vmax.f32 %v532_v7, 0.0 }
 0x117   : > { %v864_v18 = vpack.c.bf16 %v547_v10, %v547_v10  ;;  %v880_v19 = vpack.c.bf16 %v563_v11, %v563_v11  ;;  %v548_v20 = vmax.f32 %v460_v12, 0.0  ;;  %v564_v21 = vmax.f32 %v524_v13, 0.0 }
 0x118   : > { %710 = vst.msk [vmem:[%s1106_s13 + $0x38] sm:$0xf] %vm695_vm0, %v866_v14  ;;  %726 = vst.msk [vmem:[%s1106_s13 + $0x78] sm:$0xf] %vm695_vm0, %v882_v15  ;;  %v867_v22 = vpack.c.bf16 %v550_v16, %v550_v16  ;;  %v883_v23 = vpack.c.bf16 %v566_v17, %v566_v17 }
 0x119   : > { %708 = vst.msk [vmem:[%s1106_s13 + $0x30] sm:$0xf] %vm695_vm0, %v864_v18  ;;  %724 = vst.msk [vmem:[%s1106_s13 + $0x70] sm:$0xf] %vm695_vm0, %v880_v19  ;;  %v865_v24 = vpack.c.bf16 %v548_v20, %v548_v20  ;;  %v881_v25 = vpack.c.bf16 %v564_v21, %v564_v21 }
 0x11a   : > { %711 = vst.msk [vmem:[%s1106_s13 + $0x3c] sm:$0xf] %vm695_vm0, %v867_v22  ;;  %727 = vst.msk [vmem:[%s1106_s13 + $0x7c] sm:$0xf] %vm695_vm0, %v883_v23 }
 0x11b   : > { %709 = vst.msk [vmem:[%s1106_s13 + $0x34] sm:$0xf] %vm695_vm0, %v865_v24  ;;  %725 = vst.msk [vmem:[%s1106_s13 + $0x74] sm:$0xf] %vm695_vm0, %v881_v25 }
 0x11c PF: > { %s13_s12 = sadd.s32 1, %s1010_s12  }
 0x11d   : > { %p10_p4 = scmp.ge.s32.totalorder %s13_s12, 4  }
 0x11f   :  { %12 = sbr.rel (!%p10_p4) target bundleno = 1 (0x1), region = 62 }

// kernel: layer5_forward.17
= control target key start
LH: loop header
LB: loop body
LE: loop exit
PB: predicated region body
PF: predicated region fallthrough
CT: control target
= control target key end

     0   :  { %9 = vsyncpa [#allocation3], 0  ;;  %s1402_s0 = inlined_call_operand.vmem [shape: bf16[512,32], index: 0, kind: input, shape index: {}]   ;;  %s1403_s1 = inlined_call_operand.vmem [shape: bf16[32,128], index: 1, kind: input, shape index: {}]   ;;  %s1404_s2 = inlined_call_operand.vmem [shape: f32[1,128], index: 2, kind: input, shape index: {}]   ;;  %s1405_s3 = inlined_call_operand.vmem [shape: bf16[512,128], index: 3, kind: input, shape index: {}]   ;;  %s1406_s4 = inlined_call_operand.hbm [shape: f32[512,128], index: 4, kind: output, shape index: {}]  }
   0x1   :  { %11 = vsyncpa [#allocation3 + $0x1], 0  ;;  %s1153_s15 = smov 0   ;;  %s1155_s16 = smov 0  }
   0x2   :  { %s1157_s17 = smov 0   ;;  %s1159_s18 = smov 0  }
   0x3 LB: > { %s1174_s19 = sadd.s32 4294967295, %s1123_s18   ;;  %s815_s20 = sadd.s32 4294967294, %s1123_s18   ;;  %s1123_s18 = sphi %s1159_s18, %s1412_s18   ;;  %s1119_s17 = sphi %s1157_s17, %s1411_s17   ;;  %s1115_s16 = sphi %s1155_s16, %s1410_s16   ;;  %s1111_s15 = sphi %s1153_s15, %s1409_s15  }
   0x4   : > { %s1178_s21 = sadd.s32 1, %s1123_s18   ;;  %s118_s22 = sadd.s32 1, %s1119_s17 }
   0x5   : > { %s115_s23 = ssub.s32 %s1123_s18, %s1178_s21  ;;  %p128_p0 = scmp.ne.s32.totalorder %s1119_s17, %s1115_s16 }
   0x6   : > { %p116_p1 = scmp.eq.s32.totalorder %s115_s23, 0  ;;  %p129_p2 = scmp.eq.s32.totalorder %s1174_s19, 1 }
   0x7   : > { %p134_p3 = scmp.ne.s32.totalorder %s1115_s16, %s1111_s15  ;;  %p135_p4 = scmp.eq.s32.totalorder %s815_s20, 1 }
   0x8   : > { %s1189_s24 = scalar_select %p116_p1, %s1119_s17, %s118_s22  }
   0x9   : > { %p1191_p5 = por %p129_p2, %p128_p0  ;;  %p1195_p6 = por %p135_p4, %p134_p3 }
   0xa   : > { %p818_p7 = scmp.ge.s32.totalorder %s1123_s18, 1  ;;  %p177_p8 = scmp.lt.s32.totalorder %s1123_s18, 3 }
   0xc   : > { %p178_p9 = pnand %p818_p7, %p177_p8 }
   0xd   : > { %v1043_v0 = vld [vmem:[%s1403_s1] sm:$0xff] (!%p178_p9)   ;;  %s820_s29 = sshll.u32 (!%p178_p9), %s1174_s19, 5  ;;  %v1044_v1 = vld [vmem:[%s1403_s1 + $0x8] sm:$0xff] (!%p178_p9)   ;;  %vm357_vm0 = vcmask (!%p178_p9), 261120   ;;  %s205_s13 = sand.u32 (!%p178_p9), 1, %s1115_s16  }
   0xe   : > { %181 = sbr.rel (%p178_p9) target bundleno = 287 (0x11f), region = 36  ;;  %p209_p10 = scmp.lt.s32.totalorder (!%p178_p9), %s820_s29, 63  ;;  %962 = vmatprep.subr.bf16.mxu0 (!%p178_p9), %v1043_v0  ;;  %998 = vmatprep.subr.bf16.mxu1 (!%p178_p9), %v1043_v0  ;;  %v1264_v21 = vld [vmem:[%s1404_s2] ss:$0 sm:$0xff] (!%p178_p9) }
   0xf   : > { %963 = vmatpush3.bf16.msra.mxu0 (!%p178_p9), %v1043_v0  ;;  %1000 = vmatpush3.bf16.msra.mxu1 (!%p178_p9), %v1043_v0  ;;  %s1269_s22 = sshll.u32 (!%p178_p9), %s205_s13, 8  ;;  %s864_s27 = sshll.u32 (!%p178_p9), %s1174_s19, 12 }
  0x10   : > { %964 = vmatprep.subr.bf16.mxu0 (!%p178_p9), %v1044_v1  ;;  %999 = vmatprep.subr.bf16.mxu1 (!%p178_p9), %v1044_v1  ;;  %s1284_s23 = scalar_lea.vmem (!%p178_p9), [#allocation2], %s1269_s22  ;;  %s1350_s30 = scalar_lea.hbm (!%p178_p9), %s1406_s4, %s864_s27 }
  0x11   : > { %s741_s28 = sshll.u32 (!%p178_p9), %s1284_s23, 4  ;;  %s1361_s5 = scalar_lea.sflag (!%p178_p9), [#allocation3], %s205_s13  ;;  %s1352_s28 = int_to_ptr.vmem [resolvable:$true] %s741_s28 }
  0x12   : > { %s1125_s7 = smov (!%p178_p9), [#allocation2]  }
  0x13   : > { %965 = vmatpush3.bf16.msra.mxu0 (!%p178_p9), %v1044_v1  ;;  %1001 = vmatpush3.bf16.msra.mxu1 (!%p178_p9), %v1044_v1  ;;  %s1065_s8 = sshll.u32 (!%p178_p9), %s1125_s7, 4  ;;  %s1066_s8 = int_to_ptr.vmem [resolvable:$false] %s1065_s8 }
  0x14   : > { %p1068_p0 = scmp.lt.s32.totalorder (!%p178_p9), %s1352_s28, %s1066_s8 }
  0x15   : > { %s1414_s29 = smov (!%p209_p10, %s820_s29), 63 }
  0x16   : > { %s821_s6 = sshll.u32 %s1414_s29, 2 }
  0x17   : > { %s1216_s9 = scalar_lea.vmem %s1402_s0, %s821_s6  ;;  %s1255_s12 = scalar_lea.vmem %s1405_s3, %s821_s6 }
  0x18   : > { %v1045_v2 = vld [vmem:[%s1216_s9] sm:$0xff]   ;;  %v1047_v4 = vld [vmem:[%s1216_s9 + $0x8] sm:$0xff]   ;;  %v1049_v6 = vld [vmem:[%s1216_s9 + $0x10] sm:$0xff]   ;;  %s1061_s6 = scalar_lea.vmem %s1352_s28, 4096 }
  0x19   : > { %v1046_v3 = vld [vmem:[%s1216_s9 + $0x40] sm:$0xff]   ;;  %966 = vmatprep.mubr.msk.bf16.mxu0 %vm357_vm0, %v1045_v2  ;;  %v1048_v5 = vld [vmem:[%s1216_s9 + $0x48] sm:$0xff]   ;;  %v1050_v7 = vld [vmem:[%s1216_s9 + $0x50] sm:$0xff]   ;;  %p1062_p11 = scmp.ne.s32.totalorder %s1352_s28, %s1061_s6 }
  0x1a   : > { %982 = vmatprep.mubr.msk.bf16.mxu1 %vm357_vm0, %v1046_v3  ;;  %967 = vmatmul.mubr.msk.bf16.vlgmr.msra.gmra.mrb[0].mxu0 %vm357_vm0, %v1047_v4  ;;  %v1051_v8 = vld [vmem:[%s1216_s9 + $0x18] sm:$0xff]   ;;  %v1053_v10 = vld [vmem:[%s1216_s9 + $0x20] sm:$0xff]   ;;  %v1055_v12 = vld [vmem:[%s1216_s9 + $0x28] sm:$0xff]  }
  0x1b   : > { %983 = vmatmul.mubr.msk.bf16.vlgmr.msra.gmra.mrb[0].mxu1 %vm357_vm0, %v1048_v5  ;;  %970 = vmatprep.mubr.msk.bf16.mxu0 %vm357_vm0, %v1049_v6  ;;  %v1052_v9 = vld [vmem:[%s1216_s9 + $0x58] sm:$0xff]   ;;  %v1054_v11 = vld [vmem:[%s1216_s9 + $0x60] sm:$0xff]   ;;  %v1056_v13 = vld [vmem:[%s1216_s9 + $0x68] sm:$0xff]   ;;  %p1063_p12 = pnand %p1062_p11, %p1191_p5 }
  0x1c   : > { %986 = vmatprep.mubr.msk.bf16.mxu1 %vm357_vm0, %v1050_v7  ;;  %v1057_v14 = vld [vmem:[%s1216_s9 + $0x30] sm:$0xff]   ;;  %v1059_v16 = vld [vmem:[%s1216_s9 + $0x38] sm:$0xff]   ;;  %v929_v18 = vld [vmem:[%s1255_s12 + $0x8] sm:$0xff]  }
  0x1d   : > { %v1058_v15 = vld [vmem:[%s1216_s9 + $0x70] sm:$0xff]   ;;  %v1060_v17 = vld [vmem:[%s1216_s9 + $0x78] sm:$0xff]   ;;  %v937_v19 = vld [vmem:[%s1255_s12 + $0x48] sm:$0xff]   ;;  %v871_v23 = vunpack.c.l.bf16 %v929_v18  ;;  %v872_v31 = vunpack.c.h.bf16 %v929_v18  ;;  %p1064_p13 = pneg %p1063_p12  ;;  %s1067_s9 = scalar_lea.vmem %s1066_s8, 8192 }
  0x1e   : > { %v866_v20 = vld [vmem:[%s1255_s12] sm:$0xff]   ;;  %v903_v25 = vunpack.c.l.bf16 %v937_v19  ;;  %v904_v36 = vunpack.c.h.bf16 %v937_v19  ;;  %v931_v49 = vld [vmem:[%s1255_s12 + $0x18] sm:$0xff]   ;;  %v930_v55 = vld [vmem:[%s1255_s12 + $0x10] sm:$0xff]   ;;  %p1069_p1 = scmp.lt.s32.totalorder %s1067_s9, %s1061_s6 }
  0x1f   : > { %v936_v22 = vld [vmem:[%s1255_s12 + $0x40] sm:$0xff]   ;;  %v867_v26 = vunpack.c.l.bf16 %v866_v20  ;;  %v868_v37 = vunpack.c.h.bf16 %v866_v20  ;;  %v939_v54 = vld [vmem:[%s1255_s12 + $0x58] sm:$0xff]   ;;  %v938_v60 = vld [vmem:[%s1255_s12 + $0x50] sm:$0xff]   ;;  %v879_v0 = vunpack.c.l.bf16 %v931_v49  ;;  %v875_v5 = vunpack.c.l.bf16 %v930_v55 }
  0x20   : > { %v899_v30 = vunpack.c.l.bf16 %v936_v22  ;;  %v900_v43 = vunpack.c.h.bf16 %v936_v22  ;;  %v911_v4 = vunpack.c.l.bf16 %v939_v54  ;;  %p1070_p2 = por %p1069_p1, %p1068_p0 }
  0x22   : > { %971 = vmatmul.mubr.msk.bf16.gmra.mrb[4].mxu0 %vm357_vm0, %v1051_v8  ;;  %p1071_p3 = pnand %p1070_p2, %p1064_p13 }
  0x23   : > { %987 = vmatmul.mubr.msk.bf16.gmra.mrb[4].mxu1 %vm357_vm0, %v1052_v9  ;;  %974 = vmatprep.mubr.msk.bf16.mxu0 %vm357_vm0, %v1053_v10  ;;  %v907_v10 = vunpack.c.l.bf16 %v938_v60 }
  0x24   : > { %990 = vmatprep.mubr.msk.bf16.mxu1 %vm357_vm0, %v1054_v11  ;;  %v880_v11 = vunpack.c.h.bf16 %v931_v49 }
  0x2a   : > { %975 = vmatmul.mubr.msk.bf16.gmra.mrb[8].mxu0 %vm357_vm0, %v1055_v12 }
  0x2b   : > { %991 = vmatmul.mubr.msk.bf16.gmra.mrb[8].mxu1 %vm357_vm0, %v1056_v13  ;;  %978 = vmatprep.mubr.msk.bf16.mxu0 %vm357_vm0, %v1057_v14 }
  0x2c   : > { %994 = vmatprep.mubr.msk.bf16.mxu1 %vm357_vm0, %v1058_v15 }
  0x32   : > { %979 = vmatmul.mubr.msk.bf16.gmra.mrb[12].mxu0 %vm357_vm0, %v1059_v16  ;;  %v912_v16 = vunpack.c.h.bf16 %v939_v54 }
  0x33   : > { %995 = vmatmul.mubr.msk.bf16.gmra.mrb[12].mxu1 %vm357_vm0, %v1060_v17  ;;  %v876_v17 = vunpack.c.h.bf16 %v930_v55 }
  0xed   : > { %v968_v24 = vpop.f32.mrb[0].mxu0 }
  0xee   : > { %v449_v27 = vadd.f32 %v968_v24, %v1264_v21  ;;  %v984_v28 = vpop.f32.mrb[0].mxu1  ;;  %v440_v29 = vpop.f32.mrb[1].mxu0  ;;  %v908_v24 = vunpack.c.h.bf16 %v938_v60 }
  0xef   : > { %v513_v32 = vadd.f32 %v984_v28, %v1264_v21  ;;  %v441_v33 = vadd.f32 %v1264_v21, %v440_v29  ;;  %v504_v34 = vpop.f32.mrb[1].mxu1  ;;  %v969_v35 = vpop.f32.mrb[2].mxu0 }
  0xf0   : > { %v633_v38 = vadd.f32 %v871_v23, %v449_v27  ;;  %v505_v39 = vadd.f32 %v1264_v21, %v504_v34  ;;  %v452_v40 = vadd.f32 %v969_v35, %v1264_v21  ;;  %v985_v41 = vpop.f32.mrb[2].mxu1  ;;  %v443_v42 = vpop.f32.mrb[3].mxu0  ;;  %v941_v35 = vld [vmem:[%s1255_s12 + $0x68] sm:$0xff]  }
  0xf1   : > { %v649_v44 = vadd.f32 %v903_v25, %v513_v32  ;;  %v631_v45 = vadd.f32 %v867_v26, %v441_v33  ;;  %v516_v46 = vadd.f32 %v985_v41, %v1264_v21  ;;  %v444_v47 = vadd.f32 %v1264_v21, %v443_v42  ;;  %v507_v48 = vpop.f32.mrb[3].mxu1  ;;  %v940_v41 = vld [vmem:[%s1255_s12 + $0x60] sm:$0xff]  }
  0xf2   : > { %v665_v50 = vmax.f32 %v633_v38, 0.0  ;;  %v647_v51 = vadd.f32 %v899_v30, %v505_v39  ;;  %v634_v52 = vadd.f32 %v872_v31, %v452_v40  ;;  %v508_v53 = vadd.f32 %v1264_v21, %v507_v48  ;;  %v933_v30 = vld [vmem:[%s1255_s12 + $0x28] sm:$0xff]  }
  0xf3   : > { %v681_v56 = vmax.f32 %v649_v44, 0.0  ;;  %v663_v57 = vmax.f32 %v631_v45, 0.0  ;;  %v650_v58 = vadd.f32 %v904_v36, %v516_v46  ;;  %v632_v59 = vadd.f32 %v868_v37, %v444_v47  ;;  %v932_v36 = vld [vmem:[%s1255_s12 + $0x20] sm:$0xff]  }
  0xf4   : > { %697 = vst [vmem:[%s1284_s23 + $0x10] sm:$0xff] %v665_v50  ;;  %v679_v61 = vmax.f32 %v647_v51, 0.0  ;;  %v666_v62 = vmax.f32 %v634_v52, 0.0  ;;  %v648_v63 = vadd.f32 %v900_v43, %v508_v53  ;;  %v887_v45 = vunpack.c.l.bf16 %v933_v30 }
  0xf5   : > { %713 = vst [vmem:[%s1284_s23 + $0x90] sm:$0xff] %v681_v56  ;;  %695 = vst [vmem:[%s1284_s23] sm:$0xff] %v663_v57  ;;  %v682_v1 = vmax.f32 %v650_v58, 0.0  ;;  %v664_v2 = vmax.f32 %v632_v59, 0.0  ;;  %v972_v3 = vpop.f32.mrb[4].mxu0  ;;  %v919_v49 = vunpack.c.l.bf16 %v941_v35  ;;  %v883_v50 = vunpack.c.l.bf16 %v932_v36 }
  0xf6   : > { %711 = vst [vmem:[%s1284_s23 + $0x80] sm:$0xff] %v679_v61  ;;  %698 = vst [vmem:[%s1284_s23 + $0x18] sm:$0xff] %v666_v62  ;;  %v680_v6 = vmax.f32 %v648_v63, 0.0  ;;  %v465_v7 = vadd.f32 %v972_v3, %v1264_v21  ;;  %v988_v8 = vpop.f32.mrb[4].mxu1  ;;  %v456_v9 = vpop.f32.mrb[5].mxu0  ;;  %v915_v55 = vunpack.c.l.bf16 %v940_v41  ;;  %v888_v56 = vunpack.c.h.bf16 %v933_v30 }
  0xf7   : > { %714 = vst [vmem:[%s1284_s23 + $0x98] sm:$0xff] %v682_v1  ;;  %696 = vst [vmem:[%s1284_s23 + $0x8] sm:$0xff] %v664_v2  ;;  %v529_v12 = vadd.f32 %v988_v8, %v1264_v21  ;;  %v457_v13 = vadd.f32 %v1264_v21, %v456_v9  ;;  %v520_v14 = vpop.f32.mrb[5].mxu1  ;;  %v973_v15 = vpop.f32.mrb[6].mxu0  ;;  %v920_v61 = vunpack.c.h.bf16 %v941_v35  ;;  %v884_v62 = vunpack.c.h.bf16 %v932_v36 }
  0xf8   : > { %712 = vst [vmem:[%s1284_s23 + $0x88] sm:$0xff] %v680_v6  ;;  %v637_v18 = vadd.f32 %v879_v0, %v465_v7  ;;  %v521_v19 = vadd.f32 %v1264_v21, %v520_v14  ;;  %v468_v20 = vadd.f32 %v973_v15, %v1264_v21  ;;  %v989_v22 = vpop.f32.mrb[6].mxu1  ;;  %v459_v23 = vpop.f32.mrb[7].mxu0  ;;  %v943_v15 = vld [vmem:[%s1255_s12 + $0x78] sm:$0xff]  }
  0xf9   : > { %v653_v25 = vadd.f32 %v911_v4, %v529_v12  ;;  %v635_v26 = vadd.f32 %v875_v5, %v457_v13  ;;  %v532_v27 = vadd.f32 %v989_v22, %v1264_v21  ;;  %v460_v28 = vadd.f32 %v1264_v21, %v459_v23  ;;  %v523_v29 = vpop.f32.mrb[7].mxu1  ;;  %v942_v22 = vld [vmem:[%s1255_s12 + $0x70] sm:$0xff]  }
  0xfa   : > { %v669_v31 = vmax.f32 %v637_v18, 0.0  ;;  %v651_v32 = vadd.f32 %v907_v10, %v521_v19  ;;  %v638_v33 = vadd.f32 %v880_v11, %v468_v20  ;;  %v524_v34 = vadd.f32 %v1264_v21, %v523_v29  ;;  %v935_v10 = vld [vmem:[%s1255_s12 + $0x38] sm:$0xff]  }
  0xfb   : > { %v685_v37 = vmax.f32 %v653_v25, 0.0  ;;  %v667_v38 = vmax.f32 %v635_v26, 0.0  ;;  %v654_v39 = vadd.f32 %v912_v16, %v532_v27  ;;  %v636_v40 = vadd.f32 %v876_v17, %v460_v28  ;;  %v934_v16 = vld [vmem:[%s1255_s12 + $0x30] sm:$0xff]  }
  0xfc   : > { %701 = vst [vmem:[%s1284_s23 + $0x30] sm:$0xff] %v669_v31  ;;  %v683_v42 = vmax.f32 %v651_v32, 0.0  ;;  %v670_v43 = vmax.f32 %v638_v33, 0.0  ;;  %v652_v44 = vadd.f32 %v908_v24, %v524_v34  ;;  %v916_v4 = vunpack.c.h.bf16 %v940_v41 }
  0xfd   : > { %717 = vst [vmem:[%s1284_s23 + $0xb0] sm:$0xff] %v685_v37  ;;  %699 = vst [vmem:[%s1284_s23 + $0x20] sm:$0xff] %v667_v38  ;;  %v686_v46 = vmax.f32 %v654_v39, 0.0  ;;  %v668_v47 = vmax.f32 %v636_v40, 0.0  ;;  %v976_v48 = vpop.f32.mrb[8].mxu0  ;;  %v895_v26 = vunpack.c.l.bf16 %v935_v10  ;;  %v927_v30 = vunpack.c.l.bf16 %v943_v15 }
  0xfe   : > { %715 = vst [vmem:[%s1284_s23 + $0xa0] sm:$0xff] %v683_v42  ;;  %702 = vst [vmem:[%s1284_s23 + $0x38] sm:$0xff] %v670_v43  ;;  %v684_v51 = vmax.f32 %v652_v44, 0.0  ;;  %v481_v52 = vadd.f32 %v976_v48, %v1264_v21  ;;  %v992_v53 = vpop.f32.mrb[8].mxu1  ;;  %v472_v54 = vpop.f32.mrb[9].mxu0  ;;  %v891_v31 = vunpack.c.l.bf16 %v934_v16  ;;  %v923_v36 = vunpack.c.l.bf16 %v942_v22 }
  0xff   : > { %718 = vst [vmem:[%s1284_s23 + $0xb8] sm:$0xff] %v686_v46  ;;  %700 = vst [vmem:[%s1284_s23 + $0x28] sm:$0xff] %v668_v47  ;;  %v545_v57 = vadd.f32 %v992_v53, %v1264_v21  ;;  %v473_v58 = vadd.f32 %v1264_v21, %v472_v54  ;;  %v536_v59 = vpop.f32.mrb[9].mxu1  ;;  %v977_v60 = vpop.f32.mrb[10].mxu0  ;;  %v896_v37 = vunpack.c.h.bf16 %v935_v10  ;;  %v928_v42 = vunpack.c.h.bf16 %v943_v15 }
 0x100   : > { %716 = vst [vmem:[%s1284_s23 + $0xa8] sm:$0xff] %v684_v51  ;;  %v641_v63 = vadd.f32 %v887_v45, %v481_v52  ;;  %v537_v0 = vadd.f32 %v1264_v21, %v536_v59  ;;  %v484_v1 = vadd.f32 %v977_v60, %v1264_v21  ;;  %v993_v2 = vpop.f32.mrb[10].mxu1  ;;  %v475_v3 = vpop.f32.mrb[11].mxu0  ;;  %v892_v43 = vunpack.c.h.bf16 %v934_v16 }
 0x101   : > { %v657_v5 = vadd.f32 %v919_v49, %v545_v57  ;;  %v639_v6 = vadd.f32 %v883_v50, %v473_v58  ;;  %v548_v7 = vadd.f32 %v993_v2, %v1264_v21  ;;  %v476_v8 = vadd.f32 %v1264_v21, %v475_v3  ;;  %v539_v9 = vpop.f32.mrb[11].mxu1 }
 0x102   : > { %v673_v11 = vmax.f32 %v641_v63, 0.0  ;;  %v655_v12 = vadd.f32 %v915_v55, %v537_v0  ;;  %v642_v13 = vadd.f32 %v888_v56, %v484_v1  ;;  %v540_v14 = vadd.f32 %v1264_v21, %v539_v9 }
 0x103   : > { %v689_v17 = vmax.f32 %v657_v5, 0.0  ;;  %v671_v18 = vmax.f32 %v639_v6, 0.0  ;;  %v658_v19 = vadd.f32 %v920_v61, %v548_v7  ;;  %v640_v20 = vadd.f32 %v884_v62, %v476_v8 }
 0x104   : > { %705 = vst [vmem:[%s1284_s23 + $0x50] sm:$0xff] %v673_v11  ;;  %v687_v23 = vmax.f32 %v655_v12, 0.0  ;;  %v674_v24 = vmax.f32 %v642_v13, 0.0  ;;  %v656_v25 = vadd.f32 %v916_v4, %v540_v14  ;;  %v924_v49 = vunpack.c.h.bf16 %v942_v22 }
 0x105   : > { %721 = vst [vmem:[%s1284_s23 + $0xd0] sm:$0xff] %v689_v17  ;;  %703 = vst [vmem:[%s1284_s23 + $0x40] sm:$0xff] %v671_v18  ;;  %v690_v27 = vmax.f32 %v658_v19, 0.0  ;;  %v672_v28 = vmax.f32 %v640_v20, 0.0  ;;  %v980_v29 = vpop.f32.mrb[12].mxu0 }
 0x106   : > { %719 = vst [vmem:[%s1284_s23 + $0xc0] sm:$0xff] %v687_v23  ;;  %706 = vst [vmem:[%s1284_s23 + $0x58] sm:$0xff] %v674_v24  ;;  %v688_v32 = vmax.f32 %v656_v25, 0.0  ;;  %v497_v33 = vadd.f32 %v980_v29, %v1264_v21  ;;  %v996_v34 = vpop.f32.mrb[12].mxu1  ;;  %v488_v35 = vpop.f32.mrb[13].mxu0 }
 0x107   : > { %722 = vst [vmem:[%s1284_s23 + $0xd8] sm:$0xff] %v690_v27  ;;  %704 = vst [vmem:[%s1284_s23 + $0x48] sm:$0xff] %v672_v28  ;;  %v561_v38 = vadd.f32 %v996_v34, %v1264_v21  ;;  %v489_v39 = vadd.f32 %v1264_v21, %v488_v35  ;;  %v552_v40 = vpop.f32.mrb[13].mxu1  ;;  %v981_v41 = vpop.f32.mrb[14].mxu0 }
 0x108   : > { %720 = vst [vmem:[%s1284_s23 + $0xc8] sm:$0xff] %v688_v32  ;;  %v645_v44 = vadd.f32 %v895_v26, %v497_v33  ;;  %v553_v45 = vadd.f32 %v1264_v21, %v552_v40  ;;  %v500_v46 = vadd.f32 %v981_v41, %v1264_v21  ;;  %v997_v47 = vpop.f32.mrb[14].mxu1  ;;  %v491_v48 = vpop.f32.mrb[15].mxu0 }
 0x109   : > { %v661_v50 = vadd.f32 %v927_v30, %v561_v38  ;;  %v643_v51 = vadd.f32 %v891_v31, %v489_v39  ;;  %v564_v52 = vadd.f32 %v997_v47, %v1264_v21  ;;  %v492_v53 = vadd.f32 %v1264_v21, %v491_v48  ;;  %v555_v54 = vpop.f32.mrb[15].mxu1 }
 0x10a   : > { %v677_v55 = vmax.f32 %v645_v44, 0.0  ;;  %v659_v56 = vadd.f32 %v923_v36, %v553_v45  ;;  %v646_v57 = vadd.f32 %v896_v37, %v500_v46  ;;  %v556_v58 = vadd.f32 %v1264_v21, %v555_v54 }
 0x10b   : > { %v693_v59 = vmax.f32 %v661_v50, 0.0  ;;  %v675_v60 = vmax.f32 %v643_v51, 0.0  ;;  %v662_v61 = vadd.f32 %v928_v42, %v564_v52  ;;  %v644_v62 = vadd.f32 %v892_v43, %v492_v53 }
 0x10c   : > { %709 = vst [vmem:[%s1284_s23 + $0x70] sm:$0xff] %v677_v55  ;;  %v691_v63 = vmax.f32 %v659_v56, 0.0  ;;  %v678_v0 = vmax.f32 %v646_v57, 0.0  ;;  %v660_v1 = vadd.f32 %v924_v49, %v556_v58 }
 0x10d   : > { %725 = vst [vmem:[%s1284_s23 + $0xf0] sm:$0xff] %v693_v59  ;;  %707 = vst [vmem:[%s1284_s23 + $0x60] sm:$0xff] %v675_v60  ;;  %v694_v21 = vmax.f32 %v662_v61, 0.0  ;;  %v676_v2 = vmax.f32 %v644_v62, 0.0 }
 0x10e   : > { %723 = vst [vmem:[%s1284_s23 + $0xe0] sm:$0xff] %v691_v63  ;;  %710 = vst [vmem:[%s1284_s23 + $0x78] sm:$0xff] %v678_v0  ;;  %v692_v3 = vmax.f32 %v660_v1, 0.0 }
 0x10f   : > { %726 = vst [vmem:[%s1284_s23 + $0xf8] sm:$0xff] %v694_v21  ;;  %708 = vst [vmem:[%s1284_s23 + $0x68] sm:$0xff] %v676_v2 }
 0x110   : > { %724 = vst [vmem:[%s1284_s23 + $0xe8] sm:$0xff] %v692_v3 }
 0x111   : > { %1074 = shalt.err (!%p1071_p3)
}
 0x112   : > { %s1075_s10 = scalar_lea.hbm %s1350_s30, 4096  ;;  %s1079_s13 = scalar_lea.hbm %s1406_s4, 8192 }
 0x113   : > { %p1076_p4 = scmp.ne.s32.totalorder %s1350_s30, %s1075_s10  ;;  %p1080_p9 = scmp.lt.u32.totalorder %s1350_s30, %s1406_s4 }
 0x114   : > { %p1081_p10 = scmp.lt.u32.totalorder %s1079_s13, %s1075_s10  ;;  %p1083_p12 = scmp.lt.u32.totalorder %s1075_s10, %s1350_s30 }
 0x115   : > { %p1077_p7 = pnand %p1076_p4, %p1191_p5 }
 0x116   : > { %p1082_p11 = por %p1081_p10, %p1080_p9 }
 0x117   : > { %p1078_p8 = pneg %p1077_p7 }
 0x118   : > { %p1084_p13 = por %p1083_p12, %p1082_p11 }
 0x11a   : > { %p1085_p0 = pnand %p1084_p13, %p1078_p8 }
 0x11c   : > { %1088 = shalt.err (!%p1085_p0)
}
 0x11d   : > { %s1126_s22 = smov 128   ;;  %s1127_s23 = smov 8  }
 0x11e   : > { %1002 = dma.vmem_to_hbm [thread:$0]  (%p1191_p5), %s1352_s28, 4096, %s1350_s30, %s1361_s5, %s1126_s22, %s1126_s22, %s1127_s23  }
 0x11f PF: > { %p1008_p1 = scmp.ge.s32.totalorder %s1123_s18, 2  ;;  %s756_s27 = sand.u32 1, %s1111_s15  }
 0x120   : > { %s757_s19 = scalar_lea.sflag [#allocation3], %s756_s27 }
 0x121   : > { %p1005_p2 = pnand %p1008_p1, %p1195_p6 }
 0x123   : > { %1106 = dma.done.wait (!%p1005_p2), %s757_s19, 4096  }
 0x124   : > { %1108 = vsyncadd (!%p1005_p2), %s757_s19, 4294963200  ;;  %p14_p3 = scmp.ge.s32.totalorder %s1178_s21, 4   ;;  %s1409_s15 = smov %s1115_s16 }
 0x125   : > { %s1410_s16 = smov %s1119_s17  ;;  %s1411_s17 = smov %s1189_s24 }
 0x126   : > { %s1412_s18 = smov %s1178_s21  ;;  %16 = sbr.rel (!%p14_p3) target bundleno = 3 (0x3), region = 74 }
 0x12d   :  { %762 = vsyncpa [#allocation3], 1 }
 0x12e   :  { %764 = vsyncpa [#allocation3 + $0x1], 1 }

// kernel: layer5_forward.10
= control target key start
LH: loop header
LB: loop body
LE: loop exit
PB: predicated region body
PF: predicated region fallthrough
CT: control target
= control target key end

     0   :  { %s6074_s12 = smov 0   ;;  %s7338_s0 = inlined_call_operand.vmem [shape: bf16[2,20,20,32], index: 0, kind: input, shape index: {}]   ;;  %s7339_s1 = inlined_call_operand.vmem [shape: bf16[9,32,32], index: 1, kind: input, shape index: {}]   ;;  %s7340_s2 = inlined_call_operand.vmem [shape: f32[1,32], index: 2, kind: input, shape index: {}]   ;;  %s7341_s3 = inlined_call_operand.vmem [shape: bf16[2,16,16,32], index: 3, kind: output, shape index: {}]  }
   0x1 LB: > { %s4469_s13 = sadd.s32 4294967295, %s6052_s12   ;;  %p4473_p0 = scmp.ge.s32.totalorder %s6052_s12, 1  ;;  %s6052_s12 = sphi %s6074_s12, %s13_s12  }
   0x2   : > { %p137_p1 = scmp.lt.s32.totalorder %s6052_s12, 3 }
   0x4   : > { %p138_p2 = pnand %p4473_p0, %p137_p1 }
   0x5   : > { %v5958_v0 = vld [vmem:[%s7339_s1 + $0x10] sm:$0xff] (!%p138_p2)   ;;  %p161_p3 = scmp.lt.s32.totalorder (!%p138_p2), %s4469_s13, 1  ;;  %v5959_v1 = vld [vmem:[%s7339_s1 + $0x40] sm:$0xff] (!%p138_p2)   ;;  %vm288_vm0 = vcmask (!%p138_p2), 1042432   ;;  %v5960_v2 = vld [vmem:[%s7339_s1 + $0x18] sm:$0xff] (!%p138_p2)   ;;  %vm289_vm1 = vcmask (!%p138_p2), 1046532  }
   0x6   : > { %141 = sbr.rel (%p138_p2) target bundleno = 535 (0x217), region = 32  ;;  %5365 = vmatprep.subr.bf16.mxu1 (!%p138_p2), %v5958_v0  ;;  %5509 = vmatprep.subr.bf16.mxu0 (!%p138_p2), %v5959_v1  ;;  %v5961_v3 = vld [vmem:[%s7339_s1 + $0x48] sm:$0xff] (!%p138_p2)   ;;  %vm6097_vm2 = vmor (!%p138_p2), %vm288_vm0, %vm289_vm1  ;;  %v6104_v5 = vld [vmem:[%s7339_s1] sm:$0xff] (!%p138_p2)   ;;  %vm468_vm3 = vcmask (!%p138_p2), 261120   ;;  %vm1027_vm4 = vcmask (!%p138_p2), 1041408   ;;  %vm1028_vm5 = vcmask (!%p138_p2), 1045508  }
   0x7   : > { %5366 = vmatpush3.bf16.msra.mxu1 (!%p138_p2), %v5958_v0  ;;  %5510 = vmatpush3.bf16.msra.mxu0 (!%p138_p2), %v5959_v1  ;;  %v6114_v6 = vld [vmem:[%s7339_s1 + $0x50] sm:$0xff] (!%p138_p2)   ;;  %v5965_v52 = vld [vmem:[%s7339_s1 + $0x8] sm:$0xff] (!%p138_p2)   ;;  %v6190_v63 = vld [vmem:[%s7339_s1 + $0x58] sm:$0xff] (!%p138_p2)   ;;  %vm4381_vm7 = vcmask (!%p138_p2), 257024  }
   0x8   : > { %5367 = vmatprep.subr.bf16.mxu1 (!%p138_p2), %v5960_v2  ;;  %5511 = vmatprep.subr.bf16.mxu0 (!%p138_p2), %v5961_v3  ;;  %vm6331_vm6 = vmor (!%p138_p2), %vm1027_vm4, %vm1028_vm5 }
   0xb   : > { %5368 = vmatpush3.bf16.msra.mxu1 (!%p138_p2), %v5960_v2  ;;  %5512 = vmatpush3.bf16.msra.mxu0 (!%p138_p2), %v5961_v3 }
   0xc   : > { %5401 = vmatprep.subr.bf16.mxu1 (!%p138_p2), %v6104_v5  ;;  %5545 = vmatprep.subr.bf16.mxu0 (!%p138_p2), %v6114_v6 }
   0xd   : > { %s7347_s13 = smov (!%p161_p3, %s4469_s13), 1 }
   0xe   : > { %s5949_s22 = smul.u32 240, %s7347_s13  ;;  %s5170_s8 = sshll.u32 %s7347_s13, 7 }
   0xf   : > { %s7234_s11 = scalar_lea.vmem %s7341_s3, %s5170_s8 }
  0x10   : > { %s6109_s27 = scalar_lea.vmem %s7338_s0, %s5949_s22 }
  0x11   : > { %v6117_v7 = vld [vmem:[%s6109_s27 + $0x4] sm:$0xf]  ;;  %v208_v8 = vld [vmem:[%s6109_s27] sm:$0xe]  ;;  %v209_v9 = vld [vmem:[%s6109_s27 + $0x8] sm:$0x1] }
  0x12   : > { %v4477_v10 = vrot.slane %v208_v8, 9  ;;  %v293_v11 = vrot.slane %v6117_v7, 5  ;;  %v296_v12 = vrot.slane %v209_v9, 5  ;;  %v4689_v13 = vld [vmem:[%s6109_s27 + $0x18] sm:$0xe] }
  0x13   : > { %v6125_v14 = vld [vmem:[%s6109_s27 + $0x1c] sm:$0xf]  ;;  %v4691_v15 = vld [vmem:[%s6109_s27 + $0x20] sm:$0x1]  ;;  %v4737_v16 = vrot.slane %v4689_v13, 9 }
  0x14   : > { %v294_v17 = vsel %vm6097_vm2, %v4477_v10, %v293_v11  ;;  %v295_v18 = vrot.slane %v293_v11, 4  ;;  %v1917_v19 = vrot.slane %v6125_v14, 5  ;;  %v1920_v20 = vrot.slane %v4691_v15, 5  ;;  %v6133_v21 = vld [vmem:[%s6109_s27 + $0x10] sm:$0xf] }
  0x15   : > { %v2399_v22 = vrot.slane %v6125_v14, 6  ;;  %v210_v23 = vld [vmem:[%s6109_s27 + $0xc] sm:$0xe]  ;;  %v211_v24 = vld [vmem:[%s6109_s27 + $0x14] sm:$0x1]  ;;  %v300_v25 = vrot.slane %v6133_v21, 5 }
  0x16   : > { %v297_v26 = vsel %vm6097_vm2, %v295_v18, %v296_v12  ;;  %v1918_v27 = vsel %vm6097_vm2, %v4737_v16, %v1917_v19  ;;  %v1919_v28 = vrot.slane %v1917_v19, 4  ;;  %v4478_v29 = vrot.slane %v210_v23, 9  ;;  %v4692_v30 = vld [vmem:[%s6109_s27 + $0x24] sm:$0xe]  ;;  %v6145_v31 = vld [vmem:[%s6109_s27 + $0x28] sm:$0xf] }
  0x17   : > { %v4497_v32 = vcombine.low %v294_v17, %v297_v26  ;;  %v302_v33 = vrot.slane %v300_v25, 4  ;;  %v303_v34 = vrot.slane %v211_v24, 5  ;;  %v4694_v35 = vld [vmem:[%s6109_s27 + $0x2c] sm:$0x1]  ;;  %v4738_v38 = vrot.slane %v4692_v30, 9  ;;  %v6212_v23 = vld [vmem:[%s7339_s1 + $0x20] sm:$0xff]  }
  0x18   : > { %v1921_v36 = vsel %vm6097_vm2, %v1919_v28, %v1920_v20  ;;  %v301_v37 = vsel %vm6097_vm2, %v4478_v29, %v300_v25  ;;  %v6153_v39 = vld [vmem:[%s6109_s27 + $0x1c] sm:$0xf]  ;;  %v212_v40 = vld [vmem:[%s6109_s27 + $0x18] sm:$0xe]  ;;  %v1924_v43 = vrot.slane %v6145_v31, 5  ;;  %v1927_v44 = vrot.slane %v4694_v35, 5 }
  0x19   : > { %5369 = vmatprep.mubr.msk.bf16.mxu1 %vm468_vm3, %v4497_v32  ;;  %v4757_v41 = vcombine.low %v1918_v27, %v1921_v36  ;;  %v304_v42 = vsel %vm6097_vm2, %v302_v33, %v303_v34  ;;  %v213_v45 = vld [vmem:[%s6109_s27 + $0x20] sm:$0x1]  ;;  %v4695_v46 = vld [vmem:[%s6109_s27 + $0x30] sm:$0xe]  ;;  %v6164_v47 = vrot.slane %v2399_v22, 4  ;;  %v2406_v49 = vrot.slane %v6145_v31, 6 }
  0x1a   : > { %v4498_v48 = vcombine.low %v301_v37, %v304_v42  ;;  %v4479_v50 = vrot.slane %v212_v40, 9  ;;  %v6168_v51 = vld [vmem:[%s6109_s27 + $0x34] sm:$0xf]  ;;  %v1925_v53 = vsel %vm6097_vm2, %v4738_v38, %v1924_v43  ;;  %v1926_v54 = vrot.slane %v1924_v43, 4  ;;  %v4697_v57 = vld [vmem:[%s6109_s27 + $0x38] sm:$0x1] }
  0x1b   : > { %5513 = vmatprep.mubr.msk.bf16.mxu0 %vm468_vm3, %v4757_v41  ;;  %v307_v55 = vrot.slane %v6153_v39, 5  ;;  %v310_v56 = vrot.slane %v213_v45, 5  ;;  %v6181_v58 = vrot.slane %v2406_v49, 4  ;;  %v4739_v59 = vrot.slane %v4695_v46, 9  ;;  %v6185_v62 = vld [vmem:[%s6109_s27 + $0x28] sm:$0xf] }
  0x1c   : > { %5370 = vmatmul.mubr.msk.bf16.vlgmr.msra.gmra.mrb[0].mxu1 %vm468_vm3, %v4498_v48  ;;  %v1931_v60 = vrot.slane %v6168_v51, 5  ;;  %v1934_v61 = vrot.slane %v4697_v57, 5  ;;  %v1928_v0 = vsel %vm6097_vm2, %v1926_v54, %v1927_v44  ;;  %v214_v3 = vld [vmem:[%s6109_s27 + $0x24] sm:$0xe]  ;;  %v215_v8 = vld [vmem:[%s6109_s27 + $0x2c] sm:$0x1] }
  0x1d   : > { %5402 = vmatpush3.bf16.msra.mxu1 %v6104_v5  ;;  %v308_v1 = vsel %vm6097_vm2, %v4479_v50, %v307_v55  ;;  %v309_v2 = vrot.slane %v307_v55, 4  ;;  %v314_v9 = vrot.slane %v6185_v62, 5  ;;  %v4758_v10 = vcombine.low %v1925_v53, %v1928_v0  ;;  %v4698_v5 = vld [vmem:[%s6109_s27 + $0x3c] sm:$0xe]  ;;  %v6204_v15 = vld [vmem:[%s6109_s27 + $0x40] sm:$0xf] }
  0x1e   : > { %v1932_v11 = vsel %vm6097_vm2, %v4739_v59, %v1931_v60  ;;  %v1933_v12 = vrot.slane %v1931_v60, 4  ;;  %v4480_v13 = vrot.slane %v214_v3, 9  ;;  %5403 = vmatprep.subr.bf16.mxu1 %v5965_v52  ;;  %v317_v18 = vrot.slane %v215_v8, 5  ;;  %v4700_v19 = vld [vmem:[%s6109_s27 + $0x44] sm:$0x1] }
  0x1f   : > { %v311_v16 = vsel %vm6097_vm2, %v309_v2, %v310_v56  ;;  %v316_v17 = vrot.slane %v314_v9, 4  ;;  %v4740_v20 = vrot.slane %v4698_v5, 9  ;;  %5514 = vmatmul.mubr.msk.bf16.vlgmr.msra.gmra.mrb[0].mxu0 %vm468_vm3, %v4758_v10  ;;  %v1938_v27 = vrot.slane %v6204_v15, 5  ;;  %v6221_v28 = vld [vmem:[%s6109_s27 + $0x34] sm:$0xf]  ;;  %v6227_v30 = vld [vmem:[%s7339_s1 + $0x60] sm:$0xff]  }
  0x20   : > { %v4499_v24 = vcombine.low %v308_v1, %v311_v16  ;;  %v1935_v25 = vsel %vm6097_vm2, %v1933_v12, %v1934_v61  ;;  %v315_v26 = vsel %vm6097_vm2, %v4480_v13, %v314_v9  ;;  %v216_v29 = vld [vmem:[%s6109_s27 + $0x30] sm:$0xe]  ;;  %5546 = vmatpush3.bf16.msra.mxu0 %v6114_v6  ;;  %v1941_v34 = vrot.slane %v4700_v19, 5  ;;  %v217_v35 = vld [vmem:[%s6109_s27 + $0x38] sm:$0x1] }
  0x21   : > { %v4759_v32 = vcombine.low %v1932_v11, %v1935_v25  ;;  %v318_v33 = vsel %vm6097_vm2, %v316_v17, %v317_v18  ;;  %v4481_v36 = vrot.slane %v216_v29, 9  ;;  %v4701_v37 = vld [vmem:[%s6109_s27 + $0x48] sm:$0xe]  ;;  %5404 = vmatpush3.bf16.msra.mxu1 %v5965_v52  ;;  %v1939_v40 = vsel %vm6097_vm2, %v4740_v20, %v1938_v27  ;;  %v6239_v42 = vld [vmem:[%s6109_s27 + $0x4c] sm:$0xf]  ;;  %5547 = vmatprep.subr.bf16.mxu0 %v6190_v63 }
  0x22   : > { %5373 = vmatprep.mubr.msk.bf16.mxu1 %vm468_vm3, %v4499_v24  ;;  %v4500_v38 = vcombine.low %v315_v26, %v318_v33  ;;  %v1940_v41 = vrot.slane %v1938_v27, 4  ;;  %v321_v6 = vrot.slane %v6221_v28, 5  ;;  %v4703_v43 = vld [vmem:[%s6109_s27 + $0x50] sm:$0x1]  ;;  %v324_v44 = vrot.slane %v217_v35, 5  ;;  %5437 = vmatprep.subr.bf16.mxu1 %v6212_v23 }
  0x23   : > { %5517 = vmatprep.mubr.msk.bf16.mxu0 %vm468_vm3, %v4759_v32  ;;  %v4741_v45 = vrot.slane %v4701_v37, 9  ;;  %v1945_v46 = vrot.slane %v6239_v42, 5  ;;  %v1948_v48 = vrot.slane %v4703_v43, 5  ;;  %v6246_v50 = vld [vmem:[%s6109_s27 + $0x40] sm:$0xf] }
  0x24   : > { %5374 = vmatmul.mubr.msk.bf16.gmra.mrb[4].mxu1 %vm468_vm3, %v4500_v38  ;;  %v1942_v52 = vsel %vm6097_vm2, %v1940_v41, %v1941_v34  ;;  %v322_v53 = vsel %vm6097_vm2, %v4481_v36, %v321_v6  ;;  %v323_v54 = vrot.slane %v321_v6, 4  ;;  %v218_v55 = vld [vmem:[%s6109_s27 + $0x3c] sm:$0xe]  ;;  %v219_v56 = vld [vmem:[%s6109_s27 + $0x44] sm:$0x1]  ;;  %v328_v57 = vrot.slane %v6246_v50, 5  ;;  %5548 = vmatpush3.bf16.msra.mxu0 %v6190_v63 }
  0x25   : > { %v4760_v59 = vcombine.low %v1939_v40, %v1942_v52  ;;  %v1946_v60 = vsel %vm6097_vm2, %v4741_v45, %v1945_v46  ;;  %v1947_v61 = vrot.slane %v1945_v46, 4  ;;  %v4482_v0 = vrot.slane %v218_v55, 9  ;;  %v4704_v1 = vld [vmem:[%s6109_s27 + $0x54] sm:$0xe]  ;;  %v6261_v2 = vld [vmem:[%s6109_s27 + $0x58] sm:$0xf]  ;;  %5581 = vmatprep.subr.bf16.mxu0 %v6227_v30 }
  0x26   : > { %v325_v3 = vsel %vm6097_vm2, %v323_v54, %v324_v44  ;;  %v330_v8 = vrot.slane %v328_v57, 4  ;;  %v331_v9 = vrot.slane %v219_v56, 5  ;;  %v4706_v10 = vld [vmem:[%s6109_s27 + $0x5c] sm:$0x1]  ;;  %v4742_v11 = vrot.slane %v4704_v1, 9 }
  0x27   : > { %v4501_v12 = vcombine.low %v322_v53, %v325_v3  ;;  %v1949_v13 = vsel %vm6097_vm2, %v1947_v61, %v1948_v48  ;;  %v329_v63 = vsel %vm6097_vm2, %v4482_v0, %v328_v57  ;;  %v1952_v5 = vrot.slane %v6261_v2, 5  ;;  %v6274_v16 = vld [vmem:[%s6109_s27 + $0x4c] sm:$0xf]  ;;  %v220_v17 = vld [vmem:[%s6109_s27 + $0x48] sm:$0xe]  ;;  %5518 = vmatmul.mubr.msk.bf16.gmra.mrb[4].mxu0 %vm468_vm3, %v4760_v59 }
  0x28   : > { %v4761_v18 = vcombine.low %v1946_v60, %v1949_v13  ;;  %v332_v19 = vsel %vm6097_vm2, %v330_v8, %v331_v9  ;;  %v1955_v20 = vrot.slane %v4706_v10, 5  ;;  %v221_v24 = vld [vmem:[%s6109_s27 + $0x50] sm:$0x1]  ;;  %v4483_v25 = vrot.slane %v220_v17, 9  ;;  %v4707_v26 = vld [vmem:[%s6109_s27 + $0x60] sm:$0xe] }
  0x29   : > { %5377 = vmatprep.mubr.msk.bf16.mxu1 %vm468_vm3, %v4501_v12  ;;  %v4502_v27 = vcombine.low %v329_v63, %v332_v19  ;;  %v1953_v29 = vsel %vm6097_vm2, %v4742_v11, %v1952_v5  ;;  %v1954_v32 = vrot.slane %v1952_v5, 4  ;;  %v335_v33 = vrot.slane %v6274_v16, 5  ;;  %v6287_v34 = vld [vmem:[%s6109_s27 + $0x64] sm:$0xf]  ;;  %v4709_v35 = vld [vmem:[%s6109_s27 + $0x68] sm:$0x1] }
  0x2a   : > { %5521 = vmatprep.mubr.msk.bf16.mxu0 %vm468_vm3, %v4761_v18  ;;  %v338_v36 = vrot.slane %v221_v24, 5  ;;  %v4743_v37 = vrot.slane %v4707_v26, 9  ;;  %v1959_v38 = vrot.slane %v6287_v34, 5  ;;  %v1962_v40 = vrot.slane %v4709_v35, 5  ;;  %v6293_v41 = vld [vmem:[%s6109_s27 + $0x58] sm:$0xf] }
  0x2b   : > { %v1956_v6 = vsel %vm6097_vm2, %v1954_v32, %v1955_v20  ;;  %v336_v43 = vsel %vm6097_vm2, %v4483_v25, %v335_v33  ;;  %v337_v44 = vrot.slane %v335_v33, 4  ;;  %v222_v45 = vld [vmem:[%s6109_s27 + $0x54] sm:$0xe]  ;;  %v223_v46 = vld [vmem:[%s6109_s27 + $0x5c] sm:$0x1]  ;;  %v342_v48 = vrot.slane %v6293_v41, 5 }
  0x2c   : > { %5378 = vmatmul.mubr.msk.bf16.gmra.mrb[8].mxu1 %vm468_vm3, %v4502_v27  ;;  %v4762_v52 = vcombine.low %v1953_v29, %v1956_v6  ;;  %v1960_v53 = vsel %vm6097_vm2, %v4743_v37, %v1959_v38  ;;  %v1961_v54 = vrot.slane %v1959_v38, 4  ;;  %v4484_v55 = vrot.slane %v222_v45, 9  ;;  %v4710_v56 = vld [vmem:[%s6109_s27 + $0x6c] sm:$0xe]  ;;  %v6307_v57 = vld [vmem:[%s6109_s27 + $0x70] sm:$0xf] }
  0x2d   : > { %v339_v59 = vsel %vm6097_vm2, %v337_v44, %v338_v36  ;;  %v344_v60 = vrot.slane %v342_v48, 4  ;;  %v345_v61 = vrot.slane %v223_v46, 5  ;;  %v4712_v0 = vld [vmem:[%s6109_s27 + $0x74] sm:$0x1]  ;;  %v4744_v1 = vrot.slane %v4710_v56, 9 }
  0x2e   : > { %v4503_v3 = vcombine.low %v336_v43, %v339_v59  ;;  %v1963_v8 = vsel %vm6097_vm2, %v1961_v54, %v1962_v40  ;;  %v343_v9 = vsel %vm6097_vm2, %v4484_v55, %v342_v48  ;;  %v1966_v10 = vrot.slane %v6307_v57, 5  ;;  %v6318_v11 = vld [vmem:[%s6109_s27 + $0x64] sm:$0xf]  ;;  %v224_v12 = vld [vmem:[%s6109_s27 + $0x60] sm:$0xe] }
  0x2f   : > { %v4763_v13 = vcombine.low %v1960_v53, %v1963_v8  ;;  %v346_v63 = vsel %vm6097_vm2, %v344_v60, %v345_v61  ;;  %v1969_v5 = vrot.slane %v4712_v0, 5  ;;  %v225_v17 = vld [vmem:[%s6109_s27 + $0x68] sm:$0x1]  ;;  %v4485_v18 = vrot.slane %v224_v12, 9  ;;  %5522 = vmatmul.mubr.msk.bf16.gmra.mrb[8].mxu0 %vm468_vm3, %v4762_v52  ;;  %v4791_v27 = vld [vmem:[%s6109_s27 + $0x18] sm:$0xc] }
  0x30   : > { %5381 = vmatprep.mubr.msk.bf16.mxu1 %vm468_vm3, %v4503_v3  ;;  %v4504_v19 = vcombine.low %v343_v9, %v346_v63  ;;  %v1967_v20 = vsel %vm6097_vm2, %v4744_v1, %v1966_v10  ;;  %v1968_v24 = vrot.slane %v1966_v10, 4  ;;  %v349_v25 = vrot.slane %v6318_v11, 5  ;;  %v4792_v32 = vld [vmem:[%s6109_s27 + $0x20] sm:$0x3]  ;;  %v6343_v40 = vld [vmem:[%s6109_s27 + $0x70] sm:$0xf] }
  0x31   : > { %5525 = vmatprep.mubr.msk.bf16.mxu0 %vm468_vm3, %v4763_v13  ;;  %v352_v29 = vrot.slane %v225_v17, 5  ;;  %v4823_v33 = vrot.slane %v4791_v27, 10  ;;  %v2402_v38 = vrot.slane %v4792_v32, 6  ;;  %v226_v44 = vld [vmem:[%s6109_s27 + $0x6c] sm:$0xe]  ;;  %v356_v46 = vrot.slane %v6343_v40, 5 }
  0x32   : > { %v1970_v35 = vsel %vm6097_vm2, %v1968_v24, %v1969_v5  ;;  %v350_v36 = vsel %vm6097_vm2, %v4485_v18, %v349_v25  ;;  %v351_v37 = vrot.slane %v349_v25, 4  ;;  %v227_v45 = vld [vmem:[%s6109_s27 + $0x74] sm:$0x1]  ;;  %v2413_v48 = vrot.slane %v6168_v51, 6  ;;  %v4793_v54 = vld [vmem:[%s6109_s27 + $0x24] sm:$0xc] }
  0x33   : > { %v4764_v6 = vcombine.low %v1967_v20, %v1970_v35  ;;  %v2400_v43 = vsel %vm6331_vm6, %v4823_v33, %v2399_v22  ;;  %v2403_v14 = vsel %vm6331_vm6, %v6164_v47, %v2402_v38  ;;  %v4486_v53 = vrot.slane %v226_v44, 9  ;;  %v4794_v55 = vld [vmem:[%s6109_s27 + $0x2c] sm:$0x3]  ;;  %v6362_v61 = vld [vmem:[%s6109_s27 + $0x7c] sm:$0xf] }
  0x34   : > { %5382 = vmatmul.mubr.msk.bf16.gmra.mrb[12].mxu1 %vm468_vm3, %v4504_v19  ;;  %v353_v52 = vsel %vm6097_vm2, %v351_v37, %v352_v29  ;;  %v359_v22 = vrot.slane %v227_v45, 5  ;;  %v4843_v59 = vcombine.low %v2400_v43, %v2403_v14  ;;  %v358_v60 = vrot.slane %v356_v46, 4  ;;  %v228_v0 = vld [vmem:[%s6109_s27 + $0x78] sm:$0xe]  ;;  %v229_v8 = vld [vmem:[%s6109_s27 + $0x80] sm:$0x1] }
  0x35   : > { %v4505_v56 = vcombine.low %v350_v36, %v353_v52  ;;  %v4824_v51 = vrot.slane %v4793_v54, 10  ;;  %v357_v1 = vsel %vm6097_vm2, %v4486_v53, %v356_v46  ;;  %v2409_v3 = vrot.slane %v4794_v55, 6  ;;  %v4795_v63 = vld [vmem:[%s6109_s27 + $0x30] sm:$0xc]  ;;  %v4796_v5 = vld [vmem:[%s6109_s27 + $0x38] sm:$0x3] }
  0x36   : > { %v4487_v47 = vrot.slane %v228_v0, 9  ;;  %v363_v9 = vrot.slane %v6362_v61, 5  ;;  %v360_v10 = vsel %vm6097_vm2, %v358_v60, %v359_v22  ;;  %v366_v13 = vrot.slane %v229_v8, 5  ;;  %v6385_v24 = vld [vmem:[%s6109_s27 + $0x88] sm:$0xf] }
  0x37   : > { %5385 = vmatprep.mubr.msk.bf16.mxu1 %vm468_vm3, %v4505_v56  ;;  %v2407_v12 = vsel %vm6331_vm6, %v4824_v51, %v2406_v49  ;;  %v2415_v17 = vrot.slane %v2413_v48, 4  ;;  %5526 = vmatmul.mubr.msk.bf16.gmra.mrb[12].mxu0 %vm468_vm3, %v4764_v6  ;;  %v4506_v18 = vcombine.low %v357_v1, %v360_v10  ;;  %v2410_v19 = vsel %vm6331_vm6, %v6181_v58, %v2409_v3  ;;  %v230_v49 = vld [vmem:[%s6109_s27 + $0x84] sm:$0xe]  ;;  %v231_v29 = vld [vmem:[%s6109_s27 + $0x8c] sm:$0x1] }
  0x38   : > { %v364_v31 = vsel %vm6097_vm2, %v4487_v47, %v363_v9  ;;  %v365_v20 = vrot.slane %v363_v9, 4  ;;  %5549 = vmatprep.mubr.msk.bf16.mxu0 %vm468_vm3, %v4843_v59  ;;  %v4825_v25 = vrot.slane %v4795_v63, 10  ;;  %v2416_v27 = vrot.slane %v4796_v5, 6  ;;  %v4797_v37 = vld [vmem:[%s6109_s27 + $0x3c] sm:$0xc]  ;;  %v5969_v56 = vld [vmem:[%s7339_s1 + $0x68] sm:$0xff]  }
  0x39   : > { %v4488_v32 = vrot.slane %v230_v49, 9  ;;  %v4844_v33 = vcombine.low %v2407_v12, %v2410_v19  ;;  %v370_v58 = vrot.slane %v6385_v24, 5  ;;  %v373_v36 = vrot.slane %v231_v29, 5  ;;  %v4798_v38 = vld [vmem:[%s6109_s27 + $0x44] sm:$0x3] }
  0x3a   : > { %v367_v35 = vsel %vm6097_vm2, %v365_v20, %v366_v13  ;;  %v2414_v43 = vsel %vm6331_vm6, %v4825_v25, %v2413_v48  ;;  %v2417_v44 = vsel %vm6331_vm6, %v2415_v17, %v2416_v27  ;;  %v4826_v45 = vrot.slane %v4797_v37, 10  ;;  %v6400_v46 = vld [vmem:[%s6109_s27 + $0x94] sm:$0xf]  ;;  %v232_v52 = vld [vmem:[%s6109_s27 + $0x90] sm:$0xe] }
  0x3b   : > { %v4507_v6 = vcombine.low %v364_v31, %v367_v35  ;;  %v4845_v14 = vcombine.low %v2414_v43, %v2417_v44  ;;  %v371_v53 = vsel %vm6097_vm2, %v4488_v32, %v370_v58  ;;  %v372_v22 = vrot.slane %v370_v58, 4  ;;  %v233_v48 = vld [vmem:[%s6109_s27 + $0x98] sm:$0x1]  ;;  %v4799_v55 = vld [vmem:[%s6109_s27 + $0x48] sm:$0xc]  ;;  %v6443_v32 = vld [vmem:[%s7339_s1 + $0x70] sm:$0xff]  }
  0x3c   : > { %5386 = vmatmul.mubr.msk.bf16.gmra.mrb[16].mxu1 %vm468_vm3, %v4506_v18  ;;  %v2420_v54 = vrot.slane %v6204_v15, 6  ;;  %v2423_v59 = vrot.slane %v4798_v38, 6  ;;  %v4489_v60 = vrot.slane %v232_v52, 9  ;;  %v377_v51 = vrot.slane %v6400_v46, 5  ;;  %v4800_v1 = vld [vmem:[%s6109_s27 + $0x50] sm:$0x3] }
  0x3d   : > { %5389 = vmatprep.mubr.msk.bf16.mxu1 %vm468_vm3, %v4507_v6  ;;  %v380_v0 = vrot.slane %v233_v48, 5  ;;  %v374_v3 = vsel %vm6097_vm2, %v372_v22, %v373_v36  ;;  %v4827_v47 = vrot.slane %v4799_v55, 10  ;;  %v6420_v9 = vld [vmem:[%s6109_s27 + $0xa0] sm:$0xf]  ;;  %v234_v10 = vld [vmem:[%s6109_s27 + $0x9c] sm:$0xe] }
  0x3e   : > { %v2421_v15 = vsel %vm6331_vm6, %v4826_v45, %v2420_v54  ;;  %v2422_v8 = vrot.slane %v2420_v54, 4  ;;  %v4508_v12 = vcombine.low %v371_v53, %v374_v3  ;;  %v378_v13 = vsel %vm6097_vm2, %v4489_v60, %v377_v51  ;;  %v235_v17 = vld [vmem:[%s6109_s27 + $0xa4] sm:$0x1]  ;;  %v4801_v49 = vld [vmem:[%s6109_s27 + $0x54] sm:$0xc] }
  0x3f   : > { %v379_v63 = vrot.slane %v377_v51, 4  ;;  %v2427_v5 = vrot.slane %v6239_v42, 6  ;;  %5550 = vmatmul.mubr.msk.bf16.vlgmr.msra.gmra.mrb[0].mxu0 %vm468_vm3, %v4844_v33  ;;  %v2430_v19 = vrot.slane %v4800_v1, 6  ;;  %v4490_v31 = vrot.slane %v234_v10, 9  ;;  %v6437_v27 = vld [vmem:[%s6109_s27 + $0xac] sm:$0xf] }
  0x40   : > { %v2424_v18 = vsel %vm6331_vm6, %v2422_v8, %v2423_v59  ;;  %v384_v20 = vrot.slane %v6420_v9, 5  ;;  %5582 = vmatpush3.bf16.msra.mxu0 %v6227_v30  ;;  %5553 = vmatprep.mubr.msk.bf16.mxu0 %vm468_vm3, %v4845_v14  ;;  %v236_v29 = vld [vmem:[%s6109_s27 + $0xa8] sm:$0xe]  ;;  %v387_v58 = vrot.slane %v235_v17, 5  ;;  %v4802_v36 = vld [vmem:[%s6109_s27 + $0x5c] sm:$0x3] }
  0x41   : > { %v381_v42 = vsel %vm6097_vm2, %v379_v63, %v380_v0  ;;  %v2429_v25 = vrot.slane %v2427_v5, 4  ;;  %v2428_v35 = vsel %vm6331_vm6, %v4827_v47, %v2427_v5  ;;  %v237_v37 = vld [vmem:[%s6109_s27 + $0xb0] sm:$0x1]  ;;  %5583 = vmatprep.subr.bf16.mxu0 %v5969_v56  ;;  %v4846_v38 = vcombine.low %v2421_v15, %v2424_v18  ;;  %v4803_v45 = vld [vmem:[%s6109_s27 + $0x60] sm:$0xc] }
  0x42   : > { %v4509_v33 = vcombine.low %v378_v13, %v381_v42  ;;  %v386_v30 = vrot.slane %v384_v20, 4  ;;  %v4828_v43 = vrot.slane %v4801_v49, 10  ;;  %v2434_v44 = vrot.slane %v6261_v2, 6  ;;  %v4804_v54 = vld [vmem:[%s6109_s27 + $0x68] sm:$0x3] }
  0x43   : > { %v2431_v6 = vsel %vm6331_vm6, %v2429_v25, %v2430_v19  ;;  %v385_v52 = vsel %vm6097_vm2, %v4490_v31, %v384_v20  ;;  %v4491_v53 = vrot.slane %v236_v29, 9  ;;  %v391_v22 = vrot.slane %v6437_v27, 5  ;;  %v6461_v48 = vld [vmem:[%s6109_s27 + $0xb8] sm:$0xf]  ;;  %v238_v51 = vld [vmem:[%s6109_s27 + $0xb4] sm:$0xe] }
  0x44   : > { %5390 = vmatmul.mubr.msk.bf16.gmra.mrb[20].mxu1 %vm468_vm3, %v4508_v12  ;;  %v388_v14 = vsel %vm6097_vm2, %v386_v30, %v387_v58  ;;  %v4847_v55 = vcombine.low %v2428_v35, %v2431_v6  ;;  %v2436_v2 = vrot.slane %v2434_v44, 4  ;;  %v2437_v59 = vrot.slane %v4802_v36, 6  ;;  %5584 = vmatpush3.bf16.msra.mxu0 %v5969_v56  ;;  %v239_v8 = vld [vmem:[%s6109_s27 + $0xbc] sm:$0x1]  ;;  %v4805_v31 = vld [vmem:[%s6109_s27 + $0x6c] sm:$0xc] }
  0x45   : > { %5393 = vmatprep.mubr.msk.bf16.mxu1 %vm468_vm3, %v4509_v33  ;;  %v394_v60 = vrot.slane %v237_v37, 5  ;;  %v392_v0 = vsel %vm6097_vm2, %v4491_v53, %v391_v22  ;;  %v393_v1 = vrot.slane %v391_v22, 4  ;;  %v4829_v3 = vrot.slane %v4803_v45, 10  ;;  %5617 = vmatprep.subr.bf16.mxu0 %v6443_v32  ;;  %v4714_v20 = vld [vmem:[%s6109_s27 + $0x7c] sm:$0xf] }
  0x46   : > { %v2441_v15 = vrot.slane %v6287_v34, 6  ;;  %v4510_v47 = vcombine.low %v385_v52, %v388_v14  ;;  %v2444_v10 = vrot.slane %v4804_v54, 6  ;;  %v398_v12 = vrot.slane %v6461_v48, 5  ;;  %v4806_v25 = vld [vmem:[%s6109_s27 + $0x74] sm:$0x3] }
  0x47   : > { %5554 = vmatmul.mubr.msk.bf16.gmra.mrb[4].mxu0 %vm468_vm3, %v4846_v38  ;;  %v2435_v56 = vsel %vm6331_vm6, %v4828_v43, %v2434_v44  ;;  %v395_v34 = vsel %vm6097_vm2, %v393_v1, %v394_v60  ;;  %v4492_v63 = vrot.slane %v238_v51, 9  ;;  %v2438_v5 = vsel %vm6331_vm6, %v2436_v2, %v2437_v59  ;;  %v4807_v33 = vld [vmem:[%s6109_s27 + $0x78] sm:$0xc]  ;;  %v4808_v35 = vld [vmem:[%s6109_s27 + $0x80] sm:$0x3] }
  0x48   : > { %v2443_v13 = vrot.slane %v2441_v15, 4  ;;  %5557 = vmatprep.mubr.msk.bf16.mxu0 %vm468_vm3, %v4847_v55  ;;  %v4511_v17 = vcombine.low %v392_v0, %v395_v34  ;;  %v400_v18 = vrot.slane %v398_v12, 4  ;;  %v401_v19 = vrot.slane %v239_v8, 5  ;;  %v172_v44 = vld [vmem:[%s6109_s27] sm:$0xf] }
  0x49   : > { %v2442_v49 = vsel %vm6331_vm6, %v4829_v3, %v2441_v15  ;;  %v2448_v29 = vrot.slane %v6307_v57, 6  ;;  %v4848_v30 = vcombine.low %v2435_v56, %v2438_v5  ;;  %v399_v58 = vsel %vm6097_vm2, %v4492_v63, %v398_v12  ;;  %v4717_v53 = vld [vmem:[%s6109_s27 + $0x88] sm:$0xf]  ;;  %v4720_v22 = vld [vmem:[%s6109_s27 + $0x94] sm:$0xf] }
  0x4a   : > { %v2445_v42 = vsel %vm6331_vm6, %v2443_v13, %v2444_v10  ;;  %v4830_v36 = vrot.slane %v4805_v31, 10  ;;  %v2455_v37 = vrot.slane %v4714_v20, 6  ;;  %v402_v6 = vsel %vm6097_vm2, %v400_v18, %v401_v19  ;;  %v4809_v60 = vld [vmem:[%s6109_s27 + $0x84] sm:$0xc]  ;;  %v4810_v3 = vld [vmem:[%s6109_s27 + $0x8c] sm:$0x3] }
  0x4b   : > { %v4849_v38 = vcombine.low %v2442_v49, %v2445_v42  ;;  %v2450_v57 = vrot.slane %v2448_v29, 4  ;;  %v2451_v43 = vrot.slane %v4806_v25, 6  ;;  %v4831_v45 = vrot.slane %v4807_v33, 10  ;;  %v4811_v15 = vld [vmem:[%s6109_s27 + $0x90] sm:$0xc] }
  0x4c   : > { %5394 = vmatmul.mubr.msk.bf16.gmra.mrb[24].mxu1 %vm468_vm3, %v4510_v47  ;;  %v2457_v52 = vrot.slane %v2455_v37, 4  ;;  %v2458_v14 = vrot.slane %v4808_v35, 6  ;;  %v4512_v54 = vcombine.low %v399_v58, %v402_v6  ;;  %v2449_v55 = vsel %vm6331_vm6, %v4830_v36, %v2448_v29  ;;  %v4812_v47 = vld [vmem:[%s6109_s27 + $0x98] sm:$0x3]  ;;  %v174_v10 = vld [vmem:[%s6109_s27 + $0xc] sm:$0xf] }
  0x4d   : > { %5397 = vmatprep.mubr.msk.bf16.mxu1 %vm468_vm3, %v4511_v17  ;;  %v2452_v2 = vsel %vm6331_vm6, %v2450_v57, %v2451_v43  ;;  %v4531_v59 = vcombine.low %v172_v44, %v6117_v7  ;;  %v2462_v51 = vrot.slane %v4717_v53, 6  ;;  %v2456_v0 = vsel %vm6331_vm6, %v4831_v45, %v2455_v37  ;;  %v176_v63 = vld [vmem:[%s6109_s27 + $0x18] sm:$0xf]  ;;  %v4723_v19 = vld [vmem:[%s6109_s27 + $0xa0] sm:$0xf]  ;;  %v6544_v45 = vld [vmem:[%s7339_s1 + $0x30] sm:$0xff]  }
  0x4e   : > { %v2459_v1 = vsel %vm6331_vm6, %v2457_v52, %v2458_v14  ;;  %v2469_v8 = vrot.slane %v4720_v22, 6  ;;  %v4850_v7 = vcombine.low %v2449_v55, %v2452_v2  ;;  %v4832_v12 = vrot.slane %v4809_v60, 10  ;;  %v4813_v31 = vld [vmem:[%s6109_s27 + $0x9c] sm:$0xc]  ;;  %v4814_v20 = vld [vmem:[%s6109_s27 + $0xa4] sm:$0x3] }
  0x4f   : > { %5558 = vmatmul.mubr.msk.bf16.gmra.mrb[8].mxu0 %vm468_vm3, %v4848_v30  ;;  %v4851_v56 = vcombine.low %v2456_v0, %v2459_v1  ;;  %v2464_v34 = vrot.slane %v2462_v51, 4  ;;  %v2465_v13 = vrot.slane %v4810_v3, 6  ;;  %v4833_v5 = vrot.slane %v4811_v15, 10  ;;  %v4726_v49 = vld [vmem:[%s6109_s27 + $0xac] sm:$0xf] }
  0x50   : > { %5561 = vmatprep.mubr.msk.bf16.mxu0 %vm468_vm3, %v4849_v38  ;;  %v2471_v17 = vrot.slane %v2469_v8, 4  ;;  %v2472_v18 = vrot.slane %v4812_v47, 6  ;;  %v4532_v42 = vcombine.low %v174_v10, %v6133_v21  ;;  %v4533_v25 = vcombine.low %v176_v63, %v6153_v39  ;;  %v4815_v39 = vld [vmem:[%s6109_s27 + $0xa8] sm:$0xc]  ;;  %v178_v6 = vld [vmem:[%s6109_s27 + $0x24] sm:$0xf] }
  0x51   : > { %v2463_v29 = vsel %vm6331_vm6, %v4832_v12, %v2462_v51  ;;  %v2466_v33 = vsel %vm6331_vm6, %v2464_v34, %v2465_v13  ;;  %v2470_v35 = vsel %vm6331_vm6, %v4833_v5, %v2469_v8  ;;  %v2476_v30 = vrot.slane %v4723_v19, 6  ;;  %v5978_v38 = vld [vmem:[%s7339_s1 + $0x28] sm:$0xff]   ;;  %v4816_v57 = vld [vmem:[%s6109_s27 + $0xb0] sm:$0x3]  ;;  %v4729_v22 = vld [vmem:[%s6109_s27 + $0xb8] sm:$0xf] }
  0x52   : > { %v2473_v58 = vsel %vm6331_vm6, %v2471_v17, %v2472_v18  ;;  %v4834_v36 = vrot.slane %v4813_v31, 10  ;;  %v2479_v21 = vrot.slane %v4814_v20, 6  ;;  %v2483_v37 = vrot.slane %v4726_v49, 6  ;;  %v180_v44 = vld [vmem:[%s6109_s27 + $0x30] sm:$0xf] }
  0x53   : > { %v4852_v43 = vcombine.low %v2463_v29, %v2466_v33  ;;  %v4853_v52 = vcombine.low %v2470_v35, %v2473_v58  ;;  %v2478_v14 = vrot.slane %v2476_v30, 4  ;;  %v4835_v53 = vrot.slane %v4815_v39, 10  ;;  %v4817_v2 = vld [vmem:[%s6109_s27 + $0xb4] sm:$0xc]  ;;  %v4732_v60 = vld [vmem:[%s6109_s27 + $0xc4] sm:$0xf] }
  0x54   : > { %5398 = vmatmul.mubr.msk.bf16.gmra.mrb[28].mxu1 %vm468_vm3, %v4512_v54  ;;  %v2485_v54 = vrot.slane %v2483_v37, 4  ;;  %v2486_v55 = vrot.slane %v4816_v57, 6  ;;  %v4534_v51 = vcombine.low %v178_v6, %v6185_v62  ;;  %v2477_v0 = vsel %vm6331_vm6, %v4834_v36, %v2476_v30  ;;  %v4819_v15 = vld [vmem:[%s6109_s27 + $0xc0] sm:$0xc]  ;;  %v4820_v10 = vld [vmem:[%s6109_s27 + $0xc8] sm:$0x3] }
  0x55   : > { %5405 = vmatprep.mubr.msk.bf16.mxu1 %vm468_vm3, %v4531_v59  ;;  %v4818_v59 = vld [vmem:[%s6109_s27 + $0xbc] sm:$0x3]  ;;  %v2480_v1 = vsel %vm6331_vm6, %v2478_v14, %v2479_v21  ;;  %v4535_v3 = vcombine.low %v180_v44, %v6221_v28  ;;  %v2484_v8 = vsel %vm6331_vm6, %v4835_v53, %v2483_v37  ;;  %v2497_v47 = vrot.slane %v4732_v60, 6  ;;  %v184_v28 = vld [vmem:[%s6109_s27 + $0x48] sm:$0xf] }
  0x56   : > { %v2487_v62 = vsel %vm6331_vm6, %v2485_v54, %v2486_v55  ;;  %v4854_v12 = vcombine.low %v2477_v0, %v2480_v1  ;;  %v2493_v34 = vrot.slane %v4818_v59, 6  ;;  %v4837_v5 = vrot.slane %v4819_v15, 10  ;;  %v4735_v17 = vld [vmem:[%s6109_s27 + $0xd0] sm:$0xf]  ;;  %v4821_v35 = vld [vmem:[%s6109_s27 + $0xcc] sm:$0xc] }
  0x57   : > { %5562 = vmatmul.mubr.msk.bf16.gmra.mrb[12].mxu0 %vm468_vm3, %v4850_v7  ;;  %v182_v7 = vld [vmem:[%s6109_s27 + $0x3c] sm:$0xf]  ;;  %v4855_v13 = vcombine.low %v2484_v8, %v2487_v62  ;;  %v2499_v18 = vrot.slane %v2497_v47, 4  ;;  %v2500_v19 = vrot.slane %v4820_v10, 6  ;;  %v186_v58 = vld [vmem:[%s6109_s27 + $0x54] sm:$0xf] }
  0x58   : > { %5565 = vmatprep.mubr.msk.bf16.mxu0 %vm468_vm3, %v4851_v56  ;;  %v4836_v56 = vrot.slane %v4817_v2, 10  ;;  %v4536_v31 = vcombine.low %v182_v7, %v6246_v50  ;;  %v2498_v29 = vsel %vm6331_vm6, %v4837_v5, %v2497_v47  ;;  %v4822_v50 = vld [vmem:[%s6109_s27 + $0xd4] sm:$0x3]  ;;  %v188_v37 = vld [vmem:[%s6109_s27 + $0x60] sm:$0xf]  ;;  %v5984_v55 = vld [vmem:[%s6109_s27 + $0x48] sm:$0xff]  }
  0x59   : > { %v2501_v33 = vsel %vm6331_vm6, %v2499_v18, %v2500_v19  ;;  %v2507_v39 = vrot.slane %v4822_v50, 6  ;;  %v192_v14 = vld [vmem:[%s6109_s27 + $0x78] sm:$0xf]  ;;  %v5982_v54 = vld [vmem:[%s6109_s27 + $0x3c] sm:$0xff]   ;;  %v194_v2 = vld [vmem:[%s6109_s27 + $0x84] sm:$0xf] }
  0x5a   : > { %v4857_v36 = vcombine.low %v2498_v29, %v2501_v33  ;;  %v196_v59 = vld [vmem:[%s6109_s27 + $0x90] sm:$0xf]  ;;  %v5997_v60 = vld [vmem:[%s7339_s1 + $0x78] sm:$0xff]   ;;  %v6624_v0 = vld [vmem:[%s7339_s1 + $0x80] sm:$0xff]  }
  0x5b   : > { %v5986_v1 = vld [vmem:[%s6109_s27 + $0x54] sm:$0xff]   ;;  %v200_v8 = vld [vmem:[%s6109_s27 + $0xa8] sm:$0xf]  ;;  %v963_v62 = vld [vmem:[%s6109_s27] sm:$0xc] }
  0x5c   : > { %5406 = vmatmul.mubr.msk.bf16.vlgmr.msra.gmra.mrb[0].mxu1 %vm468_vm3, %v4532_v42  ;;  %v4537_v42 = vcombine.low %v184_v28, %v6274_v16  ;;  %v4838_v16 = vrot.slane %v4821_v35, 10  ;;  %v964_v47 = vld [vmem:[%s6109_s27 + $0x8] sm:$0x3]  ;;  %v4545_v10 = vcombine.low %v200_v8, %v6437_v27  ;;  %v5990_v28 = vld [vmem:[%s6109_s27 + $0x6c] sm:$0xff]   ;;  %v5992_v5 = vld [vmem:[%s6109_s27 + $0x78] sm:$0xff]  }
  0x5d   : > { %5438 = vmatpush3.bf16.msra.mxu1 %v6212_v23  ;;  %5409 = vmatprep.mubr.msk.bf16.mxu1 %vm468_vm3, %v4533_v25  ;;  %v2490_v23 = vrot.slane %v4729_v22, 6  ;;  %v2504_v25 = vrot.slane %v4735_v17, 6  ;;  %v4541_v22 = vcombine.low %v192_v14, %v6362_v61  ;;  %v965_v18 = vld [vmem:[%s6109_s27 + $0xc] sm:$0xc]  ;;  %v966_v19 = vld [vmem:[%s6109_s27 + $0x14] sm:$0x3] }
  0x5e   : > { %5439 = vmatprep.subr.bf16.mxu1 %v5978_v38  ;;  %v4566_v35 = vrot.slane %v965_v18, 10  ;;  %v1042_v50 = vrot.slane %v966_v19, 6  ;;  %v971_v14 = vld [vmem:[%s6109_s27 + $0x30] sm:$0xc] }
  0x5f   : > { %5566 = vmatmul.mubr.msk.bf16.gmra.mrb[16].mxu0 %vm468_vm3, %v4852_v43  ;;  %v2492_v63 = vrot.slane %v2490_v23, 4  ;;  %v2491_v20 = vsel %vm6331_vm6, %v4836_v56, %v2490_v23  ;;  %v2506_v21 = vrot.slane %v2504_v25, 4  ;;  %v2505_v6 = vsel %vm6331_vm6, %v4838_v16, %v2504_v25  ;;  %v5994_v16 = vld [vmem:[%s6109_s27 + $0x84] sm:$0xff]  }
  0x60   : > { %5569 = vmatprep.mubr.msk.bf16.mxu0 %vm468_vm3, %v4853_v52  ;;  %v4539_v43 = vcombine.low %v188_v37, %v6318_v11  ;;  %v190_v52 = vld [vmem:[%s6109_s27 + $0x6c] sm:$0xf]  ;;  %v4543_v23 = vcombine.low %v196_v59, %v6400_v46 }
  0x61   : > { %5440 = vmatpush3.bf16.msra.mxu1 %v5978_v38  ;;  %v2494_v49 = vsel %vm6331_vm6, %v2492_v63, %v2493_v34  ;;  %v4538_v38 = vcombine.low %v186_v58, %v6293_v41  ;;  %v2508_v57 = vsel %vm6331_vm6, %v2506_v21, %v2507_v39  ;;  %v5979_v41 = vld [vmem:[%s6109_s27 + $0x30] sm:$0xff]   ;;  %v4540_v53 = vcombine.low %v190_v52, %v6343_v40  ;;  %v6027_v21 = vld [vmem:[%s6109_s27 + $0x28] sm:$0xf] }
  0x62   : > { %5473 = vmatprep.subr.bf16.mxu1 %v6544_v45  ;;  %v4856_v30 = vcombine.low %v2491_v20, %v2494_v49  ;;  %v4858_v44 = vcombine.low %v2505_v6, %v2508_v57  ;;  %v1035_v34 = vrot.slane %v964_v47, 6  ;;  %v967_v49 = vld [vmem:[%s6109_s27 + $0x18] sm:$0xc]  ;;  %v1053_v39 = vrot.slane %v6027_v21, 6  ;;  %v969_v6 = vld [vmem:[%s6109_s27 + $0x24] sm:$0xc] }
  0x63   : > { %v973_v47 = vld [vmem:[%s6109_s27 + $0x3c] sm:$0xc]  ;;  %v979_v21 = vld [vmem:[%s6109_s27 + $0x60] sm:$0xc] }
  0x64   : > { %5410 = vmatmul.mubr.msk.bf16.gmra.mrb[4].mxu1 %vm468_vm3, %v4534_v51  ;;  %v4542_v51 = vcombine.low %v194_v2, %v6385_v24  ;;  %v5988_v24 = vld [vmem:[%s6109_s27 + $0x60] sm:$0xff]   ;;  %v4568_v2 = vrot.slane %v969_v6, 10 }
  0x65   : > { %5413 = vmatprep.mubr.msk.bf16.mxu1 %vm468_vm3, %v4535_v3  ;;  %v198_v3 = vld [vmem:[%s6109_s27 + $0x9c] sm:$0xf] }
  0x66   : > { %v4544_v7 = vcombine.low %v198_v3, %v6420_v9  ;;  %v202_v9 = vld [vmem:[%s6109_s27 + $0xb4] sm:$0xf]  ;;  %v5999_v3 = vld [vmem:[%s6109_s27 + $0xa8] sm:$0xff]   ;;  %v1054_v8 = vsel %vm6331_vm6, %v4568_v2, %v1053_v39 }
  0x67   : > { %5570 = vmatmul.mubr.msk.bf16.gmra.mrb[20].mxu0 %vm468_vm3, %v4854_v12  ;;  %v4565_v12 = vrot.slane %v963_v62, 10  ;;  %v4546_v25 = vcombine.low %v202_v9, %v6461_v48  ;;  %v5996_v48 = vld [vmem:[%s6109_s27 + $0x90] sm:$0xff]   ;;  %v4570_v9 = vrot.slane %v973_v47, 10  ;;  %v984_v47 = vld [vmem:[%s6109_s27 + $0x80] sm:$0x3] }
  0x68   : > { %5573 = vmatprep.mubr.msk.bf16.mxu0 %vm468_vm3, %v4855_v13  ;;  %v6025_v13 = vld [vmem:[%s6109_s27 + $0x10] sm:$0xf] }
  0x69   : > { %v1039_v63 = vrot.slane %v6025_v13, 6 }
  0x6b   : > { %v1041_v29 = vrot.slane %v1039_v63, 4  ;;  %v1040_v37 = vsel %vm6331_vm6, %v4566_v35, %v1039_v63 }
  0x6c   : > { %5414 = vmatmul.mubr.msk.bf16.gmra.mrb[8].mxu1 %vm468_vm3, %v4536_v31  ;;  %v6026_v31 = vld [vmem:[%s6109_s27 + $0x1c] sm:$0xf] }
  0x6d   : > { %5417 = vmatprep.mubr.msk.bf16.mxu1 %vm468_vm3, %v4537_v42  ;;  %v1046_v20 = vrot.slane %v6026_v31, 6  ;;  %v968_v42 = vld [vmem:[%s6109_s27 + $0x20] sm:$0x3] }
  0x6e   : > { %v6705_v31 = vld [vmem:[%s7339_s1 + $0x40] sm:$0xff]  }
  0x6f   : > { %5574 = vmatmul.mubr.msk.bf16.gmra.mrb[24].mxu0 %vm468_vm3, %v4856_v30  ;;  %v4567_v30 = vrot.slane %v967_v49, 10  ;;  %v1048_v58 = vrot.slane %v1046_v20, 4  ;;  %v6032_v49 = vld [vmem:[%s6109_s27 + $0x58] sm:$0xf] }
  0x70   : > { %5577 = vmatprep.mubr.msk.bf16.mxu0 %vm468_vm3, %v4857_v36  ;;  %v1049_v36 = vrot.slane %v968_v42, 6  ;;  %v1081_v42 = vrot.slane %v6032_v49, 6 }
  0x71   : > { %v1047_v57 = vsel %vm6331_vm6, %v4567_v30, %v1046_v20  ;;  %v6000_v20 = vld [vmem:[%s6109_s27 + $0xb4] sm:$0xff]   ;;  %v1088_v30 = vrot.slane %v6318_v11, 6 }
  0x74   : > { %5418 = vmatmul.mubr.msk.bf16.gmra.mrb[12].mxu1 %vm468_vm3, %v4538_v38  ;;  %v1043_v38 = vsel %vm6331_vm6, %v1041_v29, %v1042_v50  ;;  %v978_v29 = vld [vmem:[%s6109_s27 + $0x5c] sm:$0x3] }
  0x75   : > { %5421 = vmatprep.mubr.msk.bf16.mxu1 %vm468_vm3, %v4539_v43  ;;  %v1050_v43 = vsel %vm6331_vm6, %v1048_v58, %v1049_v36  ;;  %v6721_v58 = vld [vmem:[%s6109_s27 + $0x34] sm:$0xf]  ;;  %v1084_v6 = vrot.slane %v978_v29, 6 }
  0x77   : > { %5578 = vmatmul.mubr.msk.bf16.gmra.mrb[28].mxu0 %vm468_vm3, %v4858_v44  ;;  %v970_v44 = vld [vmem:[%s6109_s27 + $0x2c] sm:$0x3] }
  0x78   : > { %5585 = vmatprep.mubr.msk.bf16.mxu0 %vm468_vm3, %v5979_v41  ;;  %v6028_v41 = vld [vmem:[%s6109_s27 + $0x34] sm:$0xf]  ;;  %v1056_v59 = vrot.slane %v970_v44, 6 }
  0x79   : > { %v1060_v52 = vrot.slane %v6028_v41, 6  ;;  %v4573_v41 = vrot.slane %v979_v21, 10 }
  0x7c   : > { %5422 = vmatmul.mubr.msk.bf16.gmra.mrb[16].mxu1 %vm468_vm3, %v4540_v53  ;;  %v972_v53 = vld [vmem:[%s6109_s27 + $0x38] sm:$0x3] }
  0x7d   : > { %5425 = vmatprep.mubr.msk.bf16.mxu1 %vm468_vm3, %v4541_v22  ;;  %v4586_v22 = vcombine.low %v1040_v37, %v1043_v38  ;;  %v1083_v37 = vrot.slane %v1081_v42, 4  ;;  %v4947_v38 = vld [vmem:[%s6109_s27 + $0x30] sm:$0xe] }
  0x7e   : > { %v4995_v2 = vrot.slane %v4947_v38, 9  ;;  %v6785_v38 = vld [vmem:[%s6109_s27 + $0x58] sm:$0xf] }
  0x7f   : > { %5586 = vmatmul.mubr.msk.bf16.vlgmr.msra.gmra.mrb[0].mxu0 %vm468_vm3, %v5982_v54  ;;  %v1055_v54 = vrot.slane %v1053_v39, 4  ;;  %v980_v39 = vld [vmem:[%s6109_s27 + $0x68] sm:$0x3] }
  0x80   : > { %5618 = vmatpush3.bf16.msra.mxu0 %v6443_v32  ;;  %5589 = vmatprep.mubr.msk.bf16.mxu0 %vm468_vm3, %v5984_v55  ;;  %v6024_v32 = vld [vmem:[%s6109_s27 + $0x4] sm:$0xf]  ;;  %v4587_v55 = vcombine.low %v1047_v57, %v1050_v43  ;;  %v4949_v57 = vld [vmem:[%s6109_s27 + $0x38] sm:$0x1]  ;;  %v3284_v43 = vrot.slane %v6721_v58, 5 }
  0x81   : > { %5619 = vmatprep.subr.bf16.mxu0 %v5997_v60  ;;  %v1032_v15 = vrot.slane %v6024_v32, 6  ;;  %v6029_v32 = vld [vmem:[%s6109_s27 + $0x40] sm:$0xf]  ;;  %v1057_v62 = vsel %vm6331_vm6, %v1055_v54, %v1056_v59  ;;  %v982_v54 = vld [vmem:[%s6109_s27 + $0x74] sm:$0x3]  ;;  %v3287_v59 = vrot.slane %v4949_v57, 5 }
  0x82   : > { %v4588_v13 = vcombine.low %v1054_v8, %v1057_v62  ;;  %v1098_v8 = vrot.slane %v982_v54, 6  ;;  %v983_v62 = vld [vmem:[%s6109_s27 + $0x78] sm:$0xc]  ;;  %v6790_v57 = vld [vmem:[%s6109_s27 + $0x64] sm:$0xf] }
  0x83   : > { %v1034_v56 = vrot.slane %v1032_v15, 4  ;;  %v1033_v17 = vsel %vm6331_vm6, %v4565_v12, %v1032_v15  ;;  %v1067_v15 = vrot.slane %v6029_v32, 6 }
  0x84   : > { %5426 = vmatmul.mubr.msk.bf16.gmra.mrb[20].mxu1 %vm468_vm3, %v4542_v51  ;;  %5620 = vmatpush3.bf16.msra.mxu0 %v5997_v60  ;;  %v4569_v60 = vrot.slane %v971_v14, 10  ;;  %v1062_v51 = vrot.slane %v1060_v52, 4  ;;  %v1091_v14 = vrot.slane %v980_v39, 6 }
  0x85   : > { %5429 = vmatprep.mubr.msk.bf16.mxu1 %vm468_vm3, %v4543_v23  ;;  %5653 = vmatprep.subr.bf16.mxu0 %v6624_v0  ;;  %v1036_v27 = vsel %vm6331_vm6, %v1034_v56, %v1035_v34  ;;  %v1063_v23 = vrot.slane %v972_v53, 6  ;;  %v975_v56 = vld [vmem:[%s6109_s27 + $0x48] sm:$0xc]  ;;  %v6030_v34 = vld [vmem:[%s6109_s27 + $0x4c] sm:$0xf]  ;;  %v1069_v63 = vrot.slane %v1067_v15, 4  ;;  %v1068_v35 = vsel %vm6331_vm6, %v4570_v9, %v1067_v15 }
  0x86   : > { %v4585_v33 = vcombine.low %v1033_v17, %v1036_v27  ;;  %v4571_v27 = vrot.slane %v975_v56, 10  ;;  %v6002_v53 = vld [vmem:[%s6109_s27 + $0xcc] sm:$0xff]   ;;  %v1105_v9 = vrot.slane %v984_v47, 6 }
  0x87   : > { %5590 = vmatmul.mubr.msk.bf16.gmra.mrb[4].mxu0 %vm468_vm3, %v5986_v1  ;;  %v6005_v1 = vld [vmem:[%s7339_s1 + $0x38] sm:$0xff]   ;;  %v1064_v12 = vsel %vm6331_vm6, %v1062_v51, %v1063_v23  ;;  %v1085_v23 = vsel %vm6331_vm6, %v1083_v37, %v1084_v6  ;;  %v986_v37 = vld [vmem:[%s6109_s27 + $0x8c] sm:$0x3]  ;;  %v1116_v6 = vrot.slane %v6400_v46, 6  ;;  %v4956_v46 = vld [vmem:[%s6109_s27 + $0x54] sm:$0xe] }
  0x88   : > { %5593 = vmatprep.mubr.msk.bf16.mxu0 %vm468_vm3, %v5988_v24  ;;  %v5998_v24 = vld [vmem:[%s6109_s27 + $0x9c] sm:$0xff]   ;;  %v1112_v54 = vrot.slane %v986_v37, 6  ;;  %v4962_v37 = vld [vmem:[%s6109_s27 + $0x6c] sm:$0xe] }
  0x8c   : > { %5430 = vmatmul.mubr.msk.bf16.gmra.mrb[24].mxu1 %vm468_vm3, %v4544_v7  ;;  %v974_v7 = vld [vmem:[%s6109_s27 + $0x44] sm:$0x3] }
  0x8d   : > { %5433 = vmatprep.mubr.msk.bf16.mxu1 %vm468_vm3, %v4545_v10  ;;  %v1061_v10 = vsel %vm6331_vm6, %v4569_v60, %v1060_v52  ;;  %v1070_v17 = vrot.slane %v974_v7, 6  ;;  %v1090_v52 = vrot.slane %v1088_v30, 4  ;;  %v1095_v60 = vrot.slane %v6343_v40, 6  ;;  %v6756_v7 = vld [vmem:[%s6109_s27 + $0x4c] sm:$0xf] }
  0x8e   : > { %v1089_v40 = vsel %vm6331_vm6, %v4573_v41, %v1088_v30  ;;  %v6033_v30 = vld [vmem:[%s6109_s27 + $0x88] sm:$0xf] }
  0x8f   : > { %5594 = vmatmul.mubr.msk.bf16.gmra.mrb[8].mxu0 %vm468_vm3, %v5990_v28  ;;  %v1074_v28 = vrot.slane %v6030_v34, 6  ;;  %v1071_v50 = vsel %vm6331_vm6, %v1069_v63, %v1070_v17  ;;  %v1092_v32 = vsel %vm6331_vm6, %v1090_v52, %v1091_v14  ;;  %v3285_v63 = vsel %vm6097_vm2, %v4995_v2, %v3284_v43  ;;  %v4953_v17 = vld [vmem:[%s6109_s27 + $0x48] sm:$0xe]  ;;  %v988_v14 = vld [vmem:[%s6109_s27 + $0x98] sm:$0x3] }
  0x90   : > { %5597 = vmatprep.mubr.msk.bf16.mxu0 %vm468_vm3, %v5992_v5  ;;  %v4589_v5 = vcombine.low %v1061_v10, %v1064_v12  ;;  %v4590_v11 = vcombine.low %v1068_v35, %v1071_v50  ;;  %v1097_v10 = vrot.slane %v1095_v60, 4  ;;  %v4950_v12 = vld [vmem:[%s6109_s27 + $0x3c] sm:$0xe]  ;;  %v4593_v34 = vcombine.low %v1089_v40, %v1092_v32  ;;  %v985_v50 = vld [vmem:[%s6109_s27 + $0x84] sm:$0xc] }
  0x91   : > { %v1076_v18 = vrot.slane %v1074_v28, 4  ;;  %v1075_v36 = vsel %vm6331_vm6, %v4571_v27, %v1074_v28  ;;  %v4952_v28 = vld [vmem:[%s6109_s27 + $0x44] sm:$0x1]  ;;  %v3298_v27 = vrot.slane %v6756_v7, 5  ;;  %v4997_v35 = vrot.slane %v4953_v17, 9 }
  0x92   : > { %v4576_v52 = vrot.slane %v985_v50, 10  ;;  %v4959_v40 = vld [vmem:[%s6109_s27 + $0x60] sm:$0xe]  ;;  %v4961_v32 = vld [vmem:[%s6109_s27 + $0x68] sm:$0x1] }
  0x93   : > { %v3300_v39 = vrot.slane %v3298_v27, 4  ;;  %v3299_v2 = vsel %vm6097_vm2, %v4997_v35, %v3298_v27 }
  0x94   : > { %5434 = vmatmul.mubr.msk.bf16.gmra.mrb[28].mxu1 %vm468_vm3, %v4546_v25  ;;  %v977_v25 = vld [vmem:[%s6109_s27 + $0x54] sm:$0xc] }
  0x95   : > { %5441 = vmatprep.mubr.msk.bf16.mxu1 %vm468_vm3, %v4585_v33  ;;  %v6001_v33 = vld [vmem:[%s6109_s27 + $0xc0] sm:$0xff]  }
  0x97   : > { %5598 = vmatmul.mubr.msk.bf16.gmra.mrb[12].mxu0 %vm468_vm3, %v5994_v16 }
  0x98   : > { %5601 = vmatprep.mubr.msk.bf16.mxu0 %vm468_vm3, %v5996_v48  ;;  %v4572_v48 = vrot.slane %v977_v25, 10  ;;  %v6004_v25 = vld [vmem:[%s6109_s27 + $0xe4] sm:$0xff]  }
  0x9a   : > { %v1082_v51 = vsel %vm6331_vm6, %v4572_v48, %v1081_v42  ;;  %v3294_v42 = vrot.slane %v4952_v28, 5  ;;  %v4999_v28 = vrot.slane %v4959_v40, 9 }
  0x9b   : > { %v4592_v56 = vcombine.low %v1082_v51, %v1085_v23  ;;  %v3312_v23 = vrot.slane %v6790_v57, 5 }
  0x9c   : > { %5442 = vmatmul.mubr.msk.bf16.vlgmr.msra.gmra.mrb[0].mxu1 %vm468_vm3, %v4586_v22  ;;  %v981_v22 = vld [vmem:[%s6109_s27 + $0x6c] sm:$0xc] }
  0x9d   : > { %5474 = vmatpush3.bf16.msra.mxu1 %v6544_v45  ;;  %5445 = vmatprep.mubr.msk.bf16.mxu1 %vm468_vm3, %v4587_v55  ;;  %v976_v45 = vld [vmem:[%s6109_s27 + $0x50] sm:$0x3]  ;;  %v6003_v55 = vld [vmem:[%s6109_s27 + $0xd8] sm:$0xff]   ;;  %v4574_v15 = vrot.slane %v981_v22, 10 }
  0x9e   : > { %5475 = vmatprep.subr.bf16.mxu1 %v6005_v1  ;;  %v1077_v19 = vrot.slane %v976_v45, 6  ;;  %v4575_v45 = vrot.slane %v983_v62, 10  ;;  %v4998_v62 = vrot.slane %v4956_v46, 9 }
  0x9f   : > { %5602 = vmatmul.mubr.msk.bf16.gmra.mrb[16].mxu0 %vm468_vm3, %v5998_v24  ;;  %v6745_v24 = vld [vmem:[%s6109_s27 + $0x40] sm:$0xf] }
  0xa0   : > { %5605 = vmatprep.mubr.msk.bf16.mxu0 %vm468_vm3, %v5999_v3  ;;  %v1078_v16 = vsel %vm6331_vm6, %v1076_v18, %v1077_v19  ;;  %v1102_v3 = vrot.slane %v6362_v61, 6  ;;  %v3291_v61 = vrot.slane %v6745_v24, 5  ;;  %v4955_v18 = vld [vmem:[%s6109_s27 + $0x50] sm:$0x1]  ;;  %v1096_v19 = vsel %vm6331_vm6, %v4574_v15, %v1095_v60  ;;  %v4958_v60 = vld [vmem:[%s6109_s27 + $0x5c] sm:$0x1] }
  0xa1   : > { %5476 = vmatpush3.bf16.msra.mxu1 %v6005_v1  ;;  %v4591_v44 = vcombine.low %v1075_v36, %v1078_v16  ;;  %v3286_v1 = vrot.slane %v3284_v43, 4  ;;  %v1109_v36 = vrot.slane %v6033_v30, 6  ;;  %v3301_v48 = vrot.slane %v4955_v18, 5  ;;  %v6035_v18 = vld [vmem:[%s6109_s27 + $0xac] sm:$0xf] }
  0xa2   : > { %5689 = vmatprep.subr.bf16.mxu1 %v6705_v31  ;;  %v3293_v49 = vrot.slane %v3291_v61, 4  ;;  %v1103_v16 = vsel %vm6331_vm6, %v4575_v45, %v1102_v3  ;;  %v3314_v45 = vrot.slane %v3312_v23, 4 }
  0xa3   : > { %v1111_v22 = vrot.slane %v1109_v36, 4 }
  0xa4   : > { %5446 = vmatmul.mubr.msk.bf16.gmra.mrb[4].mxu1 %vm468_vm3, %v4588_v13  ;;  %v1104_v13 = vrot.slane %v1102_v3, 4  ;;  %v3295_v41 = vsel %vm6097_vm2, %v3293_v49, %v3294_v42  ;;  %v1119_v3 = vrot.slane %v988_v14, 6  ;;  %v4967_v14 = vld [vmem:[%s6109_s27 + $0x80] sm:$0x1] }
  0xa5   : > { %5449 = vmatprep.mubr.msk.bf16.mxu1 %vm468_vm3, %v4589_v5  ;;  %v3288_v5 = vsel %vm6097_vm2, %v3286_v1, %v3287_v59  ;;  %v3302_v59 = vsel %vm6097_vm2, %v3300_v39, %v3301_v48  ;;  %v1118_v1 = vrot.slane %v1116_v6, 4 }
  0xa6   : > { %v5015_v29 = vcombine.low %v3285_v63, %v3288_v5  ;;  %v1106_v21 = vsel %vm6331_vm6, %v1104_v13, %v1105_v9  ;;  %v5017_v47 = vcombine.low %v3299_v2, %v3302_v59  ;;  %v3315_v13 = vrot.slane %v4961_v32, 5  ;;  %v6034_v63 = vld [vmem:[%s6109_s27 + $0xa0] sm:$0xf]  ;;  %v6819_v9 = vld [vmem:[%s6109_s27 + $0x70] sm:$0xf] }
  0xa7   : > { %5606 = vmatmul.mubr.msk.bf16.gmra.mrb[20].mxu0 %vm468_vm3, %v6000_v20  ;;  %v4996_v20 = vrot.slane %v4950_v12, 9  ;;  %v1123_v5 = vrot.slane %v6034_v63, 6  ;;  %v1120_v27 = vsel %vm6331_vm6, %v1118_v1, %v1119_v3  ;;  %v3329_v32 = vrot.slane %v4967_v14, 5 }
  0xa8   : > { %5609 = vmatprep.mubr.msk.bf16.mxu0 %vm468_vm3, %v6001_v33  ;;  %v1099_v33 = vsel %vm6331_vm6, %v1097_v10, %v1098_v8  ;;  %v1110_v8 = vsel %vm6331_vm6, %v4576_v52, %v1109_v36  ;;  %v1113_v10 = vsel %vm6331_vm6, %v1111_v22, %v1112_v54  ;;  %v3319_v36 = vrot.slane %v6819_v9, 5 }
  0xa9   : > { %v4594_v43 = vcombine.low %v1096_v19, %v1099_v33  ;;  %v1130_v19 = vrot.slane %v6035_v18, 6  ;;  %v4596_v49 = vcombine.low %v1110_v8, %v1113_v10  ;;  %v6834_v33 = vld [vmem:[%s6109_s27 + $0x7c] sm:$0xf]  ;;  %v3316_v39 = vsel %vm6097_vm2, %v3314_v45, %v3315_v13  ;;  %v6865_v8 = vld [vmem:[%s6109_s27 + $0x88] sm:$0xf] }
  0xaa   : > { %v1125_v48 = vrot.slane %v1123_v5, 4  ;;  %v5000_v22 = vrot.slane %v4962_v37, 9  ;;  %v3321_v54 = vrot.slane %v3319_v36, 4  ;;  %v4968_v45 = vld [vmem:[%s6109_s27 + $0x84] sm:$0xe]  ;;  %v3333_v13 = vrot.slane %v6865_v8, 5 }
  0xab   : > { %v4971_v18 = vld [vmem:[%s6109_s27 + $0x90] sm:$0xe] }
  0xac   : > { %5450 = vmatmul.mubr.msk.bf16.gmra.mrb[8].mxu1 %vm468_vm3, %v4590_v11  ;;  %v987_v11 = vld [vmem:[%s6109_s27 + $0x90] sm:$0xc]  ;;  %v3320_v10 = vsel %vm6097_vm2, %v5000_v22, %v3319_v36  ;;  %v4979_v22 = vld [vmem:[%s6109_s27 + $0xb0] sm:$0x1] }
  0xad   : > { %5453 = vmatprep.mubr.msk.bf16.mxu1 %vm468_vm3, %v4591_v44  ;;  %v3292_v44 = vsel %vm6097_vm2, %v4996_v20, %v3291_v61  ;;  %v4577_v51 = vrot.slane %v987_v11, 10  ;;  %v3308_v61 = vrot.slane %v4958_v60, 5  ;;  %v6008_v20 = vld [vmem:[%s7339_s1 + $0x88] sm:$0xff]   ;;  %v4964_v11 = vld [vmem:[%s6109_s27 + $0x74] sm:$0x1] }
  0xae   : > { %v5016_v15 = vcombine.low %v3292_v44, %v3295_v41  ;;  %v4965_v41 = vld [vmem:[%s6109_s27 + $0x78] sm:$0xe]  ;;  %v3322_v46 = vrot.slane %v4964_v11, 5  ;;  %v993_v60 = vld [vmem:[%s6109_s27 + $0xb4] sm:$0xc] }
  0xaf   : > { %5610 = vmatmul.mubr.msk.bf16.gmra.mrb[24].mxu0 %vm468_vm3, %v6002_v53  ;;  %v4595_v53 = vcombine.low %v1103_v16, %v1106_v21  ;;  %v1117_v17 = vsel %vm6331_vm6, %v4577_v51, %v1116_v6  ;;  %v3313_v21 = vsel %vm6097_vm2, %v4999_v28, %v3312_v23  ;;  %v5001_v59 = vrot.slane %v4965_v41, 9  ;;  %v6036_v51 = vld [vmem:[%s6109_s27 + $0xb8] sm:$0xf] }
  0xb0   : > { %5613 = vmatprep.mubr.msk.bf16.mxu0 %vm468_vm3, %v6003_v55  ;;  %v3305_v55 = vrot.slane %v6785_v38, 5  ;;  %v4597_v16 = vcombine.low %v1117_v17, %v1120_v27  ;;  %v1137_v23 = vrot.slane %v6036_v51, 6  ;;  %v4970_v17 = vld [vmem:[%s6109_s27 + $0x8c] sm:$0x1] }
  0xb2   : > { %v3307_v12 = vrot.slane %v3305_v55, 4  ;;  %v3306_v42 = vsel %vm6097_vm2, %v4998_v62, %v3305_v55  ;;  %v5019_v55 = vcombine.low %v3313_v21, %v3316_v39  ;;  %v6868_v62 = vld [vmem:[%s6109_s27 + $0x94] sm:$0xf]  ;;  %v6893_v21 = vld [vmem:[%s6109_s27 + $0xa0] sm:$0xf] }
  0xb3   : > { %v3340_v27 = vrot.slane %v6868_v62, 5  ;;  %v6896_v39 = vld [vmem:[%s6109_s27 + $0xac] sm:$0xf] }
  0xb4   : > { %5454 = vmatmul.mubr.msk.bf16.gmra.mrb[12].mxu1 %vm468_vm3, %v4592_v56  ;;  %v989_v56 = vld [vmem:[%s6109_s27 + $0x9c] sm:$0xc]  ;;  %v3309_v35 = vsel %vm6097_vm2, %v3307_v12, %v3308_v61  ;;  %v3323_v12 = vsel %vm6097_vm2, %v3321_v54, %v3322_v46  ;;  %v4580_v61 = vrot.slane %v993_v60, 10  ;;  %v3354_v14 = vrot.slane %v6896_v39, 5 }
  0xb5   : > { %5457 = vmatprep.mubr.msk.bf16.mxu1 %vm468_vm3, %v4593_v34  ;;  %v990_v34 = vld [vmem:[%s6109_s27 + $0xa4] sm:$0x3]  ;;  %v4578_v50 = vrot.slane %v989_v56, 10  ;;  %v5018_v52 = vcombine.low %v3306_v42, %v3309_v35  ;;  %v5002_v42 = vrot.slane %v4968_v45, 9  ;;  %v3335_v35 = vrot.slane %v3333_v13, 4 }
  0xb6   : > { %v1126_v30 = vrot.slane %v990_v34, 6  ;;  %v1139_v34 = vrot.slane %v1137_v23, 4  ;;  %v3342_v36 = vrot.slane %v3340_v27, 4  ;;  %v3356_v51 = vrot.slane %v3354_v14, 4  ;;  %v4983_v45 = vld [vmem:[%s6109_s27 + $0xc0] sm:$0xe] }
  0xb7   : > { %5614 = vmatmul.mubr.msk.bf16.gmra.mrb[28].mxu0 %vm468_vm3, %v6004_v25  ;;  %v991_v25 = vld [vmem:[%s6109_s27 + $0xa8] sm:$0xc]  ;;  %v3334_v37 = vsel %vm6097_vm2, %v5002_v42, %v3333_v13  ;;  %v4985_v13 = vld [vmem:[%s6109_s27 + $0xc8] sm:$0x1]  ;;  %v6945_v42 = vld [vmem:[%s6109_s27 + $0xd0] sm:$0xf] }
  0xb8   : > { %5621 = vmatprep.mubr.msk.bf16.mxu0 %vm468_vm3, %v5015_v29  ;;  %v992_v29 = vld [vmem:[%s6109_s27 + $0xb0] sm:$0x3]  ;;  %v4579_v6 = vrot.slane %v991_v25, 10  ;;  %v1127_v2 = vsel %vm6331_vm6, %v1125_v48, %v1126_v30  ;;  %v5003_v30 = vrot.slane %v4971_v18, 9 }
  0xb9   : > { %v1133_v44 = vrot.slane %v992_v29, 6 }
  0xba   : > { %v1131_v1 = vsel %vm6331_vm6, %v4579_v6, %v1130_v19  ;;  %v6007_v6 = vld [vmem:[%s6109_s27 + $0x18] sm:$0xff]  }
  0xbc   : > { %5458 = vmatmul.mubr.msk.bf16.gmra.mrb[16].mxu1 %vm468_vm3, %v4594_v43  ;;  %v1132_v43 = vrot.slane %v1130_v19, 4  ;;  %v4973_v19 = vld [vmem:[%s6109_s27 + $0x98] sm:$0x1] }
  0xbd   : > { %5461 = vmatprep.mubr.msk.bf16.mxu1 %vm468_vm3, %v4595_v53  ;;  %v1124_v53 = vsel %vm6331_vm6, %v4578_v50, %v1123_v5  ;;  %v3336_v50 = vrot.slane %v4970_v17, 5 }
  0xbe   : > { %v1134_v3 = vsel %vm6331_vm6, %v1132_v43, %v1133_v44  ;;  %v3347_v43 = vrot.slane %v6893_v21, 5  ;;  %v3341_v44 = vsel %vm6097_vm2, %v5003_v30, %v3340_v27  ;;  %v6012_v30 = vld [vmem:[%s6109_s27 + $0x48] sm:$0xff]  }
  0xbf   : > { %5622 = vmatmul.mubr.msk.bf16.vlgmr.msra.gmra.mrb[0].mxu0 %vm468_vm3, %v5016_v15  ;;  %v994_v15 = vld [vmem:[%s6109_s27 + $0xbc] sm:$0x3]  ;;  %v4599_v56 = vcombine.low %v1131_v1, %v1134_v3  ;;  %v3337_v11 = vsel %vm6097_vm2, %v3335_v35, %v3336_v50  ;;  %v6918_v1 = vld [vmem:[%s6109_s27 + $0xb8] sm:$0xf]  ;;  %v6921_v3 = vld [vmem:[%s6109_s27 + $0xc4] sm:$0xf] }
  0xc0   : > { %5654 = vmatpush3.bf16.msra.mxu0 %v6624_v0  ;;  %5625 = vmatprep.mubr.msk.bf16.mxu0 %vm468_vm3, %v5017_v47  ;;  %v3326_v0 = vrot.slane %v6834_v33, 5  ;;  %v4598_v47 = vcombine.low %v1124_v53, %v1127_v2  ;;  %v1140_v28 = vrot.slane %v994_v15, 6  ;;  %v4977_v53 = vld [vmem:[%s6109_s27 + $0xa8] sm:$0xe]  ;;  %v5022_v54 = vcombine.low %v3334_v37, %v3337_v11  ;;  %v4986_v37 = vld [vmem:[%s6109_s27 + $0xcc] sm:$0xe] }
  0xc1   : > { %5655 = vmatprep.subr.bf16.mxu0 %v6008_v20  ;;  %v3349_v2 = vrot.slane %v3347_v43, 4  ;;  %v5005_v60 = vrot.slane %v4977_v53, 9  ;;  %v4988_v11 = vld [vmem:[%s6109_s27 + $0xd4] sm:$0x1] }
  0xc2   : > { %v3328_v40 = vrot.slane %v3326_v0, 4  ;;  %v3327_v63 = vsel %vm6097_vm2, %v5001_v59, %v3326_v0  ;;  %v1141_v29 = vsel %vm6331_vm6, %v1139_v34, %v1140_v28  ;;  %v4974_v0 = vld [vmem:[%s6109_s27 + $0x9c] sm:$0xe]  ;;  %v4982_v34 = vld [vmem:[%s6109_s27 + $0xbc] sm:$0x1]  ;;  %v3368_v28 = vrot.slane %v6921_v3, 5 }
  0xc3   : > { %v3364_v18 = vrot.slane %v4982_v34, 5  ;;  %v3378_v53 = vrot.slane %v4988_v11, 5 }
  0xc4   : > { %5462 = vmatmul.mubr.msk.bf16.gmra.mrb[20].mxu1 %vm468_vm3, %v4596_v49  ;;  %5656 = vmatpush3.bf16.msra.mxu0 %v6008_v20  ;;  %v3330_v5 = vsel %vm6097_vm2, %v3328_v40, %v3329_v32  ;;  %v5020_v20 = vcombine.low %v3320_v10, %v3323_v12  ;;  %v1138_v49 = vsel %vm6331_vm6, %v4580_v61, %v1137_v23  ;;  %v3357_v23 = vrot.slane %v4979_v22, 5  ;;  %v6009_v40 = vld [vmem:[%s6109_s27 + $0x24] sm:$0xff]  }
  0xc5   : > { %5465 = vmatprep.mubr.msk.bf16.mxu1 %vm468_vm3, %v4597_v16  ;;  %v5021_v25 = vcombine.low %v3327_v63, %v3330_v5  ;;  %v3343_v16 = vrot.slane %v4973_v19, 5  ;;  %v4600_v48 = vcombine.low %v1138_v49, %v1141_v29  ;;  %v3361_v10 = vrot.slane %v6918_v1, 5  ;;  %v6011_v29 = vld [vmem:[%s6109_s27 + $0x3c] sm:$0xff]  }
  0xc6   : > { %v3355_v12 = vsel %vm6097_vm2, %v5005_v60, %v3354_v14  ;;  %v3358_v61 = vsel %vm6097_vm2, %v3356_v51, %v3357_v23  ;;  %v5007_v19 = vrot.slane %v4983_v45, 9  ;;  %v3371_v49 = vrot.slane %v4985_v13, 5  ;;  %v6014_v51 = vld [vmem:[%s6109_s27 + $0x60] sm:$0xff]  }
  0xc7   : > { %5626 = vmatmul.mubr.msk.bf16.gmra.mrb[4].mxu0 %vm468_vm3, %v5018_v52  ;;  %v3344_v41 = vsel %vm6097_vm2, %v3342_v36, %v3343_v16  ;;  %v4976_v52 = vld [vmem:[%s6109_s27 + $0xa4] sm:$0x1]  ;;  %v5025_v5 = vcombine.low %v3355_v12, %v3358_v61  ;;  %v3363_v27 = vrot.slane %v3361_v10, 4  ;;  %v3375_v36 = vrot.slane %v6945_v42, 5  ;;  %v5049_v12 = vld [vmem:[%s6109_s27 + $0x30] sm:$0xc] }
  0xc8   : > { %5629 = vmatprep.mubr.msk.bf16.mxu0 %vm468_vm3, %v5019_v55  ;;  %v5023_v46 = vcombine.low %v3341_v44, %v3344_v41  ;;  %v5004_v55 = vrot.slane %v4974_v0, 9  ;;  %v3350_v59 = vrot.slane %v4976_v52, 5  ;;  %v3369_v16 = vsel %vm6097_vm2, %v5007_v19, %v3368_v28  ;;  %v4991_v44 = vld [vmem:[%s6109_s27 + $0xe0] sm:$0x1]  ;;  %v5050_v61 = vld [vmem:[%s6109_s27 + $0x38] sm:$0x3] }
  0xc9   : > { %v3365_v50 = vsel %vm6097_vm2, %v3363_v27, %v3364_v18  ;;  %v5008_v52 = vrot.slane %v4986_v37, 9  ;;  %v3377_v14 = vrot.slane %v3375_v36, 4  ;;  %v6016_v19 = vld [vmem:[%s6109_s27 + $0x78] sm:$0xff]  }
  0xca   : > { %v3348_v32 = vsel %vm6097_vm2, %v5004_v55, %v3347_v43  ;;  %v3351_v15 = vsel %vm6097_vm2, %v3349_v2, %v3350_v59  ;;  %v4989_v43 = vld [vmem:[%s6109_s27 + $0xd8] sm:$0xe]  ;;  %v6974_v55 = vld [vmem:[%s6109_s27 + $0xe8] sm:$0xf] }
  0xcb   : > { %v5024_v63 = vcombine.low %v3348_v32, %v3351_v15  ;;  %v5009_v22 = vrot.slane %v4989_v43, 9  ;;  %v6013_v2 = vld [vmem:[%s6109_s27 + $0x54] sm:$0xff]   ;;  %v3376_v59 = vsel %vm6097_vm2, %v5008_v52, %v3375_v36  ;;  %v3379_v60 = vsel %vm6097_vm2, %v3377_v14, %v3378_v53  ;;  %v4992_v15 = vld [vmem:[%s6109_s27 + $0xe4] sm:$0xe]  ;;  %v5054_v36 = vld [vmem:[%s6109_s27 + $0x50] sm:$0x3] }
  0xcc   : > { %5466 = vmatmul.mubr.msk.bf16.gmra.mrb[24].mxu1 %vm468_vm3, %v4598_v47  ;;  %v6010_v47 = vld [vmem:[%s6109_s27 + $0x30] sm:$0xff]   ;;  %v3389_v23 = vrot.slane %v6974_v55, 5 }
  0xcd   : > { %5469 = vmatprep.mubr.msk.bf16.mxu1 %vm468_vm3, %v4599_v56  ;;  %v4980_v56 = vld [vmem:[%s6109_s27 + $0xb4] sm:$0xe] }
  0xce   : > { %v5006_v17 = vrot.slane %v4980_v56, 9  ;;  %v5028_v56 = vcombine.low %v3376_v59, %v3379_v60  ;;  %v3391_v45 = vrot.slane %v3389_v23, 4  ;;  %v6018_v14 = vld [vmem:[%s6109_s27 + $0x90] sm:$0xff]   ;;  %v5058_v59 = vld [vmem:[%s6109_s27 + $0x68] sm:$0x3] }
  0xcf   : > { %5630 = vmatmul.mubr.msk.bf16.gmra.mrb[8].mxu0 %vm468_vm3, %v5020_v20  ;;  %v3370_v20 = vrot.slane %v3368_v28, 4  ;;  %v5010_v28 = vrot.slane %v4992_v15, 9  ;;  %v5055_v53 = vld [vmem:[%s6109_s27 + $0x54] sm:$0xc] }
  0xd0   : > { %5633 = vmatprep.mubr.msk.bf16.mxu0 %vm468_vm3, %v5021_v25  ;;  %v6037_v25 = vld [vmem:[%s7339_s1 + $0x48] sm:$0xff]   ;;  %v3362_v35 = vsel %vm6097_vm2, %v5006_v17, %v3361_v10  ;;  %v3766_v10 = vrot.slane %v6721_v58, 6  ;;  %v3769_v17 = vrot.slane %v5050_v61, 6 }
  0xd1   : > { %v5026_v41 = vcombine.low %v3362_v35, %v3365_v50  ;;  %v6015_v58 = vld [vmem:[%s6109_s27 + $0x6c] sm:$0xff]   ;;  %v3390_v27 = vsel %vm6097_vm2, %v5010_v28, %v3389_v23  ;;  %v5052_v35 = vld [vmem:[%s6109_s27 + $0x44] sm:$0x3]  ;;  %v3780_v50 = vrot.slane %v6756_v7, 6 }
  0xd2   : > { %v3776_v11 = vrot.slane %v5052_v35, 6  ;;  %v6017_v7 = vld [vmem:[%s6109_s27 + $0x84] sm:$0xff]   ;;  %v6038_v35 = vld [vmem:[%s6109_s27 + $0x7c] sm:$0xf] }
  0xd3   : > { %v3782_v43 = vrot.slane %v3780_v50, 4  ;;  %v6020_v28 = vld [vmem:[%s6109_s27 + $0xa8] sm:$0xff]  }
  0xd4   : > { %5470 = vmatmul.mubr.msk.bf16.gmra.mrb[28].mxu1 %vm468_vm3, %v4600_v48  ;;  %v3372_v48 = vsel %vm6097_vm2, %v3370_v20, %v3371_v49  ;;  %v3773_v20 = vrot.slane %v6745_v24, 6 }
  0xd5   : > { %5477 = vmatprep.mubr.msk.bf16.mxu1 %vm468_vm3, %v6007_v6  ;;  %v5027_v0 = vcombine.low %v3369_v16, %v3372_v48 }
  0xd6   : > { %v3775_v37 = vrot.slane %v3773_v20, 4 }
  0xd7   : > { %5634 = vmatmul.mubr.msk.bf16.gmra.mrb[12].mxu0 %vm468_vm3, %v5022_v54 }
  0xd8   : > { %5637 = vmatprep.mubr.msk.bf16.mxu0 %vm468_vm3, %v5023_v46  ;;  %v3385_v46 = vrot.slane %v4991_v44, 5  ;;  %v3783_v44 = vrot.slane %v5054_v36, 6  ;;  %v3777_v52 = vsel %vm6331_vm6, %v3775_v37, %v3776_v11  ;;  %v5063_v36 = vld [vmem:[%s6109_s27 + $0x84] sm:$0xc] }
  0xdc   : > { %5478 = vmatmul.mubr.msk.bf16.vlgmr.msra.gmra.mrb[0].mxu1 %vm468_vm3, %v6009_v40 }
  0xdd   : > { %5691 = vmatpush3.bf16.msra.mxu1 %v6705_v31  ;;  %5481 = vmatprep.mubr.msk.bf16.mxu1 %vm468_vm3, %v6010_v47  ;;  %v6951_v31 = vld [vmem:[%s6109_s27 + $0xdc] sm:$0xf]  ;;  %v4994_v47 = vld [vmem:[%s6109_s27 + $0xec] sm:$0x1] }
  0xde   : > { %5690 = vmatprep.subr.bf16.mxu1 %v6037_v25  ;;  %v3382_v6 = vrot.slane %v6951_v31, 5  ;;  %v3392_v13 = vrot.slane %v4994_v47, 5 }
  0xdf   : > { %5638 = vmatmul.mubr.msk.bf16.gmra.mrb[16].mxu0 %vm468_vm3, %v5024_v63  ;;  %v5081_v63 = vrot.slane %v5049_v12, 10 }
  0xe0   : > { %5641 = vmatprep.mubr.msk.bf16.mxu0 %vm468_vm3, %v5025_v5  ;;  %v3384_v54 = vrot.slane %v3382_v6, 4  ;;  %v3383_v40 = vsel %vm6097_vm2, %v5009_v22, %v3382_v6  ;;  %v3768_v5 = vrot.slane %v3766_v10, 4  ;;  %v3393_v18 = vsel %vm6097_vm2, %v3391_v45, %v3392_v13  ;;  %v5056_v22 = vld [vmem:[%s6109_s27 + $0x5c] sm:$0x3]  ;;  %v5060_v45 = vld [vmem:[%s6109_s27 + $0x74] sm:$0x3] }
  0xe1   : > { %5692 = vmatpush3.bf16.msra.mxu1 %v6037_v25  ;;  %v3767_v49 = vsel %vm6331_vm6, %v5081_v63, %v3766_v10  ;;  %v5030_v16 = vcombine.low %v3390_v27, %v3393_v18  ;;  %v3797_v10 = vrot.slane %v5058_v59, 6  ;;  %v5061_v13 = vld [vmem:[%s6109_s27 + $0x78] sm:$0xc]  ;;  %v3808_v63 = vrot.slane %v6834_v33, 6 }
  0xe2   : > { %v3386_v32 = vsel %vm6097_vm2, %v3384_v54, %v3385_v46  ;;  %v3770_v25 = vsel %vm6331_vm6, %v3768_v5, %v3769_v17  ;;  %v3784_v46 = vsel %vm6331_vm6, %v3782_v43, %v3783_v44  ;;  %v6022_v44 = vld [vmem:[%s6109_s27 + $0xc0] sm:$0xff]  }
  0xe3   : > { %v5029_v34 = vcombine.low %v3383_v40, %v3386_v32  ;;  %v5101_v24 = vcombine.low %v3767_v49, %v3770_v25  ;;  %v3790_v40 = vrot.slane %v5056_v22, 6  ;;  %v3810_v49 = vrot.slane %v3808_v63, 4 }
  0xe4   : > { %5482 = vmatmul.mubr.msk.bf16.gmra.mrb[4].mxu1 %vm468_vm3, %v6011_v29  ;;  %v5051_v29 = vld [vmem:[%s6109_s27 + $0x3c] sm:$0xc]  ;;  %v5088_v22 = vrot.slane %v5063_v36, 10 }
  0xe5   : > { %5485 = vmatprep.mubr.msk.bf16.mxu1 %vm468_vm3, %v6012_v30  ;;  %v5053_v30 = vld [vmem:[%s6109_s27 + $0x48] sm:$0xc]  ;;  %v5082_v48 = vrot.slane %v5051_v29, 10  ;;  %v4713_v29 = vld [vmem:[%s6109_s27 + $0x78] sm:$0xe] }
  0xe6   : > { %v5083_v6 = vrot.slane %v5053_v30, 10  ;;  %v4715_v30 = vld [vmem:[%s6109_s27 + $0x80] sm:$0x1]  ;;  %v4745_v43 = vrot.slane %v4713_v29, 9  ;;  %v5070_v29 = vld [vmem:[%s6109_s27 + $0xb0] sm:$0x3] }
  0xe7   : > { %5642 = vmatmul.mubr.msk.bf16.gmra.mrb[20].mxu0 %vm468_vm3, %v5026_v41  ;;  %v3787_v41 = vrot.slane %v6785_v38, 6  ;;  %v3794_v38 = vrot.slane %v6790_v57, 6  ;;  %v6019_v57 = vld [vmem:[%s6109_s27 + $0x9c] sm:$0xff]  }
  0xe8   : > { %5645 = vmatprep.mubr.msk.bf16.mxu0 %vm468_vm3, %v5027_v0  ;;  %v3774_v0 = vsel %vm6331_vm6, %v5082_v48, %v3773_v20  ;;  %v3781_v54 = vsel %vm6331_vm6, %v5083_v6, %v3780_v50  ;;  %v5087_v20 = vrot.slane %v5061_v13, 10  ;;  %v1973_v50 = vrot.slane %v6038_v35, 5  ;;  %v5064_v6 = vld [vmem:[%s6109_s27 + $0x8c] sm:$0x3]  ;;  %v5067_v13 = vld [vmem:[%s6109_s27 + $0x9c] sm:$0xc] }
  0xe9   : > { %v5102_v60 = vcombine.low %v3774_v0, %v3777_v52  ;;  %v3789_v23 = vrot.slane %v3787_v41, 4  ;;  %v5103_v32 = vcombine.low %v3781_v54, %v3784_v46  ;;  %v3796_v47 = vrot.slane %v3794_v38, 4  ;;  %v5065_v0 = vld [vmem:[%s6109_s27 + $0x90] sm:$0xc]  ;;  %v5066_v54 = vld [vmem:[%s6109_s27 + $0x98] sm:$0x3] }
  0xea   : > { %v3809_v11 = vsel %vm6331_vm6, %v5087_v20, %v3808_v63  ;;  %v3822_v52 = vrot.slane %v6868_v62, 6  ;;  %v4718_v62 = vld [vmem:[%s6109_s27 + $0x8c] sm:$0x1]  ;;  %v3829_v63 = vrot.slane %v6893_v21, 6  ;;  %v5069_v21 = vld [vmem:[%s6109_s27 + $0xa8] sm:$0xc] }
  0xeb   : > { %v3791_v61 = vsel %vm6331_vm6, %v3789_v23, %v3790_v40  ;;  %v3798_v17 = vsel %vm6331_vm6, %v3796_v47, %v3797_v10  ;;  %v4716_v23 = vld [vmem:[%s6109_s27 + $0x84] sm:$0xe]  ;;  %v4719_v47 = vld [vmem:[%s6109_s27 + $0x90] sm:$0xe]  ;;  %v6040_v10 = vld [vmem:[%s6109_s27 + $0x94] sm:$0xf] }
  0xec   : > { %5486 = vmatmul.mubr.msk.bf16.gmra.mrb[8].mxu1 %vm468_vm3, %v6013_v2  ;;  %v5057_v2 = vld [vmem:[%s6109_s27 + $0x60] sm:$0xc] }
  0xed   : > { %5489 = vmatprep.mubr.msk.bf16.mxu1 %vm468_vm3, %v6014_v51  ;;  %v5084_v51 = vrot.slane %v5055_v53, 10  ;;  %v5085_v15 = vrot.slane %v5057_v2, 10 }
  0xef   : > { %5646 = vmatmul.mubr.msk.bf16.gmra.mrb[24].mxu0 %vm468_vm3, %v5028_v56  ;;  %v3788_v12 = vsel %vm6331_vm6, %v5084_v51, %v3787_v41  ;;  %v5059_v56 = vld [vmem:[%s6109_s27 + $0x6c] sm:$0xc]  ;;  %v3795_v5 = vsel %vm6331_vm6, %v5085_v15, %v3794_v38  ;;  %v1976_v41 = vrot.slane %v4715_v30, 5  ;;  %v3818_v38 = vrot.slane %v5064_v6, 6 }
  0xf0   : > { %5649 = vmatprep.mubr.msk.bf16.mxu0 %vm468_vm3, %v5029_v34  ;;  %v3801_v34 = vrot.slane %v6819_v9, 6  ;;  %v5104_v27 = vcombine.low %v3788_v12, %v3791_v61  ;;  %v5086_v9 = vrot.slane %v5059_v56, 10  ;;  %v5105_v33 = vcombine.low %v3795_v5, %v3798_v17  ;;  %v4721_v56 = vld [vmem:[%s6109_s27 + $0x98] sm:$0x1]  ;;  %v6023_v5 = vld [vmem:[%s6109_s27 + $0xcc] sm:$0xff]  }
  0xf1   : > { %v5089_v51 = vrot.slane %v5065_v0, 10  ;;  %v3825_v15 = vrot.slane %v5066_v54, 6  ;;  %v1990_v20 = vrot.slane %v4721_v56, 5  ;;  %v3831_v30 = vrot.slane %v3829_v63, 4 }
  0xf2   : > { %v3803_v18 = vrot.slane %v3801_v34, 4  ;;  %v3802_v48 = vsel %vm6331_vm6, %v5086_v9, %v3801_v34  ;;  %v4747_v9 = vrot.slane %v4719_v47, 9  ;;  %v5073_v47 = vld [vmem:[%s6109_s27 + $0xc0] sm:$0xc] }
  0xf4   : > { %5490 = vmatmul.mubr.msk.bf16.gmra.mrb[12].mxu1 %vm468_vm3, %v6015_v58  ;;  %v5062_v58 = vld [vmem:[%s6109_s27 + $0x80] sm:$0x3] }
  0xf5   : > { %5493 = vmatprep.mubr.msk.bf16.mxu1 %vm468_vm3, %v6016_v19  ;;  %v3804_v19 = vrot.slane %v5060_v45, 6  ;;  %v3811_v25 = vrot.slane %v5062_v58, 6  ;;  %v1983_v45 = vrot.slane %v4718_v62, 5  ;;  %v3823_v58 = vsel %vm6331_vm6, %v5089_v51, %v3822_v52  ;;  %v5072_v62 = vld [vmem:[%s6109_s27 + $0xbc] sm:$0x3] }
  0xf6   : > { %v3843_v51 = vrot.slane %v6918_v1, 6 }
  0xf7   : > { %5650 = vmatmul.mubr.msk.bf16.gmra.mrb[28].mxu0 %vm468_vm3, %v5030_v16  ;;  %v3815_v16 = vrot.slane %v6865_v8, 6  ;;  %v3805_v37 = vsel %vm6331_vm6, %v3803_v18, %v3804_v19  ;;  %v3812_v8 = vsel %vm6331_vm6, %v3810_v49, %v3811_v25  ;;  %v5090_v25 = vrot.slane %v5067_v13, 10 }
  0xf8   : > { %5657 = vmatprep.mubr.msk.bf16.mxu0 %vm468_vm3, %v5101_v24  ;;  %v6021_v24 = vld [vmem:[%s6109_s27 + $0xb4] sm:$0xff]   ;;  %v5106_v2 = vcombine.low %v3802_v48, %v3805_v37  ;;  %v5107_v59 = vcombine.low %v3809_v11, %v3812_v8  ;;  %v4722_v48 = vld [vmem:[%s6109_s27 + $0x9c] sm:$0xe]  ;;  %v4724_v37 = vld [vmem:[%s6109_s27 + $0xa4] sm:$0x1]  ;;  %v3839_v8 = vrot.slane %v5070_v29, 6 }
  0xf9   : > { %v3817_v46 = vrot.slane %v3815_v16, 4  ;;  %v3816_v61 = vsel %vm6331_vm6, %v5088_v22, %v3815_v16  ;;  %v6041_v11 = vld [vmem:[%s6109_s27 + $0xa0] sm:$0xf]  ;;  %v3830_v0 = vsel %vm6331_vm6, %v5090_v25, %v3829_v63  ;;  %v4748_v54 = vrot.slane %v4722_v48, 9  ;;  %v4733_v25 = vld [vmem:[%s6109_s27 + $0xc8] sm:$0x1] }
  0xfa   : > { %v1994_v6 = vrot.slane %v6041_v11, 5  ;;  %v5093_v63 = vrot.slane %v5073_v47, 10  ;;  %v5076_v48 = vld [vmem:[%s6109_s27 + $0xd4] sm:$0x3] }
  0xfb   : > { %v3819_v34 = vsel %vm6331_vm6, %v3817_v46, %v3818_v38  ;;  %v1997_v46 = vrot.slane %v4724_v37, 5 }
  0xfc   : > { %5494 = vmatmul.mubr.msk.bf16.gmra.mrb[16].mxu1 %vm468_vm3, %v6017_v7  ;;  %v1975_v7 = vrot.slane %v1973_v50, 4  ;;  %v5108_v49 = vcombine.low %v3816_v61, %v3819_v34  ;;  %v5074_v61 = vld [vmem:[%s6109_s27 + $0xc8] sm:$0x3] }
  0xfd   : > { %5497 = vmatprep.mubr.msk.bf16.mxu1 %vm468_vm3, %v6018_v14  ;;  %v6039_v14 = vld [vmem:[%s6109_s27 + $0x88] sm:$0xf] }
  0xfe   : > { %v1980_v53 = vrot.slane %v6039_v14, 5  ;;  %v1977_v40 = vsel %vm6097_vm2, %v1975_v7, %v1976_v41  ;;  %v6042_v7 = vld [vmem:[%s6109_s27 + $0xac] sm:$0xf]  ;;  %v4727_v14 = vld [vmem:[%s6109_s27 + $0xb0] sm:$0x1] }
  0xff   : > { %5658 = vmatmul.mubr.msk.bf16.vlgmr.msra.gmra.mrb[0].mxu0 %vm468_vm3, %v5102_v60  ;;  %v1974_v60 = vsel %vm6097_vm2, %v4745_v43, %v1973_v50  ;;  %v2001_v41 = vrot.slane %v6042_v7, 5  ;;  %v5078_v7 = vld [vmem:[%s6109_s27 + $0xe0] sm:$0x3] }
 0x100   : > { %5661 = vmatprep.mubr.msk.bf16.mxu0 %vm468_vm3, %v5103_v32  ;;  %v3824_v32 = vrot.slane %v3822_v52, 4  ;;  %v1982_v12 = vrot.slane %v1980_v53, 4  ;;  %v4765_v17 = vcombine.low %v1974_v60, %v1977_v40  ;;  %v4725_v52 = vld [vmem:[%s6109_s27 + $0xa8] sm:$0xe]  ;;  %v5071_v60 = vld [vmem:[%s6109_s27 + $0xb4] sm:$0xc] }
 0x101   : > { %v4749_v40 = vrot.slane %v4725_v52, 9  ;;  %v5092_v1 = vrot.slane %v5071_v60, 10 }
 0x102   : > { %v3826_v18 = vsel %vm6331_vm6, %v3824_v32, %v3825_v15  ;;  %v1984_v50 = vsel %vm6097_vm2, %v1982_v12, %v1983_v45  ;;  %v2003_v32 = vrot.slane %v2001_v41, 4  ;;  %v2004_v15 = vrot.slane %v4727_v14, 5 }
 0x103   : > { %v5109_v16 = vcombine.low %v3823_v58, %v3826_v18  ;;  %v1995_v12 = vsel %vm6097_vm2, %v4748_v54, %v1994_v6  ;;  %v3846_v45 = vrot.slane %v5072_v62, 6  ;;  %v6043_v58 = vld [vmem:[%s6109_s27 + $0xb8] sm:$0xf]  ;;  %v3853_v18 = vrot.slane %v5074_v61, 6  ;;  %v4734_v54 = vld [vmem:[%s6109_s27 + $0xcc] sm:$0xe] }
 0x104   : > { %5498 = vmatmul.mubr.msk.bf16.gmra.mrb[20].mxu1 %vm468_vm3, %v6019_v57  ;;  %v1987_v57 = vrot.slane %v6040_v10, 5  ;;  %v3850_v10 = vrot.slane %v6921_v3, 6  ;;  %v2002_v3 = vsel %vm6097_vm2, %v4749_v40, %v2001_v41  ;;  %v2005_v13 = vsel %vm6097_vm2, %v2003_v32, %v2004_v15 }
 0x105   : > { %5501 = vmatprep.mubr.msk.bf16.mxu1 %vm468_vm3, %v6020_v28  ;;  %v4746_v28 = vrot.slane %v4716_v23, 9  ;;  %v3860_v14 = vrot.slane %v5076_v48, 6  ;;  %v4752_v15 = vrot.slane %v4734_v54, 9  ;;  %v7225_v48 = vld [vmem:[%s7340_s2] ss:$0 sm:$0xff] }
 0x106   : > { %v1989_v19 = vrot.slane %v1987_v57, 4 }
 0x107   : > { %5662 = vmatmul.mubr.msk.bf16.gmra.mrb[4].mxu0 %vm468_vm3, %v5104_v27  ;;  %v5068_v27 = vld [vmem:[%s6109_s27 + $0xa4] sm:$0x3]  ;;  %v1981_v35 = vsel %vm6097_vm2, %v4746_v28, %v1980_v53  ;;  %v3845_v28 = vrot.slane %v3843_v51, 4 }
 0x108   : > { %5665 = vmatprep.mubr.msk.bf16.mxu0 %vm468_vm3, %v5105_v33  ;;  %v3836_v33 = vrot.slane %v6896_v39, 6  ;;  %v3832_v36 = vrot.slane %v5068_v27, 6  ;;  %v1988_v39 = vsel %vm6097_vm2, %v4747_v9, %v1987_v57  ;;  %v1991_v43 = vsel %vm6097_vm2, %v1989_v19, %v1990_v20  ;;  %v4731_v19 = vld [vmem:[%s6109_s27 + $0xc0] sm:$0xe]  ;;  %v6044_v20 = vld [vmem:[%s6109_s27 + $0xc4] sm:$0xf] }
 0x109   : > { %v4766_v53 = vcombine.low %v1981_v35, %v1984_v50  ;;  %v4767_v38 = vcombine.low %v1988_v39, %v1991_v43  ;;  %v2008_v27 = vrot.slane %v6043_v58, 5  ;;  %v3852_v9 = vrot.slane %v3850_v10, 4 }
 0x10a   : > { %v3833_v22 = vsel %vm6331_vm6, %v3831_v30, %v3832_v36  ;;  %v3847_v29 = vsel %vm6331_vm6, %v3845_v28, %v3846_v45  ;;  %v4769_v35 = vcombine.low %v2002_v3, %v2005_v13  ;;  %v5075_v30 = vld [vmem:[%s6109_s27 + $0xcc] sm:$0xc]  ;;  %v3857_v36 = vrot.slane %v6945_v42, 6  ;;  %v5077_v42 = vld [vmem:[%s6109_s27 + $0xd8] sm:$0xc] }
 0x10b   : > { %v5110_v57 = vcombine.low %v3830_v0, %v3833_v22  ;;  %v2010_v39 = vrot.slane %v2008_v27, 4  ;;  %v4751_v37 = vrot.slane %v4731_v19, 9  ;;  %v3854_v11 = vsel %vm6331_vm6, %v3852_v9, %v3853_v18 }
 0x10c   : > { %5502 = vmatmul.mubr.msk.bf16.gmra.mrb[24].mxu1 %vm468_vm3, %v6021_v24  ;;  %v5091_v24 = vrot.slane %v5069_v21, 10  ;;  %v2015_v21 = vrot.slane %v6044_v20, 5  ;;  %v2018_v43 = vrot.slane %v4733_v25, 5  ;;  %v5094_v0 = vrot.slane %v5075_v30, 10 }
 0x10d   : > { %5505 = vmatprep.mubr.msk.bf16.mxu1 %vm468_vm3, %v6022_v44  ;;  %v3838_v44 = vrot.slane %v3836_v33, 4  ;;  %v3859_v52 = vrot.slane %v3857_v36, 4 }
 0x10e   : > { %v3858_v40 = vsel %vm6331_vm6, %v5094_v0, %v3857_v36 }
 0x10f   : > { %5666 = vmatmul.mubr.msk.bf16.gmra.mrb[8].mxu0 %vm468_vm3, %v5106_v2  ;;  %v3837_v2 = vsel %vm6331_vm6, %v5091_v24, %v3836_v33  ;;  %v3840_v23 = vsel %vm6331_vm6, %v3838_v44, %v3839_v8  ;;  %v3864_v44 = vrot.slane %v6951_v31, 6  ;;  %v2016_v31 = vsel %vm6097_vm2, %v4751_v37, %v2015_v21 }
 0x110   : > { %5669 = vmatprep.mubr.msk.bf16.mxu0 %vm468_vm3, %v5107_v59  ;;  %v1996_v59 = vrot.slane %v1994_v6, 4  ;;  %v5111_v56 = vcombine.low %v3837_v2, %v3840_v23  ;;  %v2017_v6 = vrot.slane %v2015_v21, 4  ;;  %v4736_v23 = vld [vmem:[%s6109_s27 + $0xd4] sm:$0x1]  ;;  %v3861_v32 = vsel %vm6331_vm6, %v3859_v52, %v3860_v14 }
 0x111   : > { %v3866_v60 = vrot.slane %v3864_v44, 4  ;;  %v5114_v28 = vcombine.low %v3858_v40, %v3861_v32 }
 0x112   : > { %v1998_v34 = vsel %vm6097_vm2, %v1996_v59, %v1997_v46  ;;  %v6045_v46 = vld [vmem:[%s6109_s27 + $0xd0] sm:$0xf]  ;;  %v2019_v2 = vsel %vm6097_vm2, %v2017_v6, %v2018_v43  ;;  %v5095_v59 = vrot.slane %v5077_v42, 10 }
 0x113   : > { %v4768_v33 = vcombine.low %v1995_v12, %v1998_v34  ;;  %v4771_v47 = vcombine.low %v2016_v31, %v2019_v2  ;;  %v5079_v12 = vld [vmem:[%s6109_s27 + $0xe4] sm:$0xc]  ;;  %v5080_v34 = vld [vmem:[%s6109_s27 + $0xec] sm:$0x3] }
 0x114   : > { %5506 = vmatmul.mubr.msk.bf16.gmra.mrb[28].mxu1 %vm468_vm3, %v6023_v5  ;;  %v4728_v5 = vld [vmem:[%s6109_s27 + $0xb4] sm:$0xe]  ;;  %v3865_v61 = vsel %vm6331_vm6, %v5095_v59, %v3864_v44  ;;  %v5096_v3 = vrot.slane %v5079_v12, 10 }
 0x115   : > { %5529 = vmatprep.mubr.msk.bf16.mxu1 %vm468_vm3, %v4765_v17  ;;  %v4730_v17 = vld [vmem:[%s6109_s27 + $0xbc] sm:$0x1]  ;;  %v4750_v50 = vrot.slane %v4728_v5, 9  ;;  %v3874_v5 = vrot.slane %v5080_v34, 6 }
 0x116   : > { %v2011_v24 = vrot.slane %v4730_v17, 5 }
 0x117   : > { %5670 = vmatmul.mubr.msk.bf16.gmra.mrb[12].mxu0 %vm468_vm3, %v5108_v49  ;;  %v3844_v49 = vsel %vm6331_vm6, %v5092_v1, %v3843_v51  ;;  %v2009_v41 = vsel %vm6097_vm2, %v4750_v50, %v2008_v27  ;;  %v3867_v51 = vrot.slane %v5078_v7, 6  ;;  %v3871_v1 = vrot.slane %v6974_v55, 6 }
 0x118   : > { %5673 = vmatprep.mubr.msk.bf16.mxu0 %vm468_vm3, %v5109_v16  ;;  %v3851_v16 = vsel %vm6331_vm6, %v5093_v63, %v3850_v10  ;;  %v5112_v8 = vcombine.low %v3844_v49, %v3847_v29  ;;  %v2012_v22 = vsel %vm6097_vm2, %v2010_v39, %v2011_v24 }
 0x119   : > { %v4770_v62 = vcombine.low %v2009_v41, %v2012_v22  ;;  %v3873_v63 = vrot.slane %v3871_v1, 4  ;;  %v3872_v58 = vsel %vm6331_vm6, %v5096_v3, %v3871_v1 }
 0x11b   : > { %v3875_v27 = vsel %vm6331_vm6, %v3873_v63, %v3874_v5 }
 0x11c   : > { %5530 = vmatmul.mubr.msk.bf16.vlgmr.msra.gmra.mrb[16].mxu1 %vm468_vm3, %v4766_v53  ;;  %v5113_v53 = vcombine.low %v3851_v16, %v3854_v11  ;;  %v5116_v9 = vcombine.low %v3872_v58, %v3875_v27 }
 0x11d   : > { %5533 = vmatprep.mubr.msk.bf16.mxu1 %vm468_vm3, %v4767_v38  ;;  %v2022_v38 = vrot.slane %v6045_v46, 5 }
 0x11f   : > { %5674 = vmatmul.mubr.msk.bf16.gmra.mrb[16].mxu0 %vm468_vm3, %v5110_v57  ;;  %v2024_v10 = vrot.slane %v2022_v38, 4  ;;  %v2025_v57 = vrot.slane %v4736_v23, 5  ;;  %v2023_v45 = vsel %vm6097_vm2, %v4752_v15, %v2022_v38 }
 0x120   : > { %5677 = vmatprep.mubr.msk.bf16.mxu0 %vm468_vm3, %v5111_v56  ;;  %v3868_v56 = vsel %vm6331_vm6, %v3866_v60, %v3867_v51 }
 0x121   : > { %v5115_v13 = vcombine.low %v3865_v61, %v3868_v56  ;;  %v2026_v55 = vsel %vm6097_vm2, %v2024_v10, %v2025_v57 }
 0x122   : > { %v4772_v17 = vcombine.low %v2023_v45, %v2026_v55 }
 0x124   : > { %5534 = vmatmul.mubr.msk.bf16.gmra.mrb[20].mxu1 %vm468_vm3, %v4768_v33 }
 0x125   : > { %5537 = vmatprep.mubr.msk.bf16.mxu1 %vm468_vm3, %v4769_v35 }
 0x127   : > { %5678 = vmatmul.mubr.msk.bf16.gmra.mrb[20].mxu0 %vm468_vm3, %v5112_v8 }
 0x128   : > { %5681 = vmatprep.mubr.msk.bf16.mxu0 %vm468_vm3, %v5113_v53 }
 0x12c   : > { %5538 = vmatmul.mubr.msk.bf16.gmra.mrb[24].mxu1 %vm468_vm3, %v4770_v62 }
 0x12d   : > { %5541 = vmatprep.mubr.msk.bf16.mxu1 %vm468_vm3, %v4771_v47 }
 0x12f   : > { %5682 = vmatmul.mubr.msk.bf16.gmra.mrb[24].mxu0 %vm468_vm3, %v5114_v28 }
 0x130   : > { %5685 = vmatprep.mubr.msk.bf16.mxu0 %vm468_vm3, %v5115_v13 }
 0x134   : > { %5542 = vmatmul.mubr.msk.bf16.gmra.mrb[28].mxu1 %vm468_vm3, %v4772_v17 }
 0x137   : > { %5686 = vmatmul.mubr.msk.bf16.gmra.mrb[28].mxu0 %vm468_vm3, %v5116_v9 }
 0x1af   : > { %v5479_v4 = vpop.f32.mrb[0].mxu1 }
 0x1b0   : > { %v1660_v18 = vpop.f32.mrb[1].mxu1 }
 0x1b1   : > { %v5480_v19 = vpop.f32.mrb[2].mxu1 }
 0x1b2   : > { %v1663_v20 = vpop.f32.mrb[3].mxu1 }
 0x1b7   : > { %v5483_v21 = vpop.f32.mrb[4].mxu1 }
 0x1b8   : > { %v1676_v33 = vpop.f32.mrb[5].mxu1 }
 0x1b9   : > { %v5484_v49 = vpop.f32.mrb[6].mxu1 }
 0x1ba   : > { %v1679_v25 = vpop.f32.mrb[7].mxu1 }
 0x1bf   : > { %v5487_v29 = vpop.f32.mrb[8].mxu1 }
 0x1c0   : > { %v1692_v35 = vpop.f32.mrb[9].mxu1 }
 0x1c1   : > { %v7210_v50 = vpop.f32.mrb[10].mxu1 }
 0x1c2   : > { %v7212_v26 = vpop.f32.mrb[11].mxu1 }
 0x1c7   : > { %v7214_v30 = vpop.f32.mrb[12].mxu1 }
 0x1c8   : > { %v7216_v36 = vpop.f32.mrb[13].mxu1 }
 0x1c9   : > { %v7218_v16 = vpop.f32.mrb[14].mxu1 }
 0x1ca   : > { %v7220_v39 = vpop.f32.mrb[15].mxu1 }
 0x1d2   : > { %v5659_v24 = vpop.f32.mrb[0].mxu0 }
 0x1d3   : > { %v5693_v37 = vadd.f32 %v5659_v24, %v5479_v4  ;;  %v4023_v11 = vpop.f32.mrb[1].mxu0 }
 0x1d4   : > { %v5694_v6 = vadd.f32 %v4023_v11, %v1660_v18  ;;  %v5660_v43 = vpop.f32.mrb[2].mxu0 }
 0x1d5   : > { %v4191_v44 = vadd.f32 %v5693_v37, %v7225_v48  ;;  %v5695_v8 = vadd.f32 %v5660_v43, %v5480_v19  ;;  %v4026_v42 = vpop.f32.mrb[3].mxu0 }
 0x1d6   : > { %v4189_v7 = vadd.f32 %v5694_v6, %v7225_v48  ;;  %v5696_v41 = vadd.f32 %v4026_v42, %v1663_v20 }
 0x1d7   : > { %v4223_v0 = vmax.f32 %v4191_v44, 0.0  ;;  %v4192_v52 = vadd.f32 %v5695_v8, %v7225_v48 }
 0x1d8   : > { %v4221_v14 = vmax.f32 %v4189_v7, 0.0  ;;  %v4190_v53 = vadd.f32 %v5696_v41, %v7225_v48 }
 0x1d9   : > { %v5173_v22 = vpack.c.bf16 %v4223_v0, %v4223_v0  ;;  %v4224_v31 = vmax.f32 %v4192_v52, 0.0 }
 0x1da   : > { %v5171_v54 = vpack.c.bf16 %v4221_v14, %v4221_v14  ;;  %v4222_v46 = vmax.f32 %v4190_v53, 0.0  ;;  %v5663_v38 = vpop.f32.mrb[4].mxu0 }
 0x1db   : > { %4384 = vst.msk [vmem:[%s7234_s11 + $0x8] sm:$0xf] %vm4381_vm7, %v5173_v22  ;;  %v5174_v2 = vpack.c.bf16 %v4224_v31, %v4224_v31  ;;  %v5697_v59 = vadd.f32 %v5663_v38, %v5483_v21  ;;  %v4039_v60 = vpop.f32.mrb[5].mxu0 }
 0x1dc   : > { %4382 = vst.msk [vmem:[%s7234_s11] sm:$0xf] %vm4381_vm7, %v5171_v54  ;;  %v5172_v51 = vpack.c.bf16 %v4222_v46, %v4222_v46  ;;  %v5698_v23 = vadd.f32 %v4039_v60, %v1676_v33  ;;  %v5664_v62 = vpop.f32.mrb[6].mxu0 }
 0x1dd   : > { %4385 = vst.msk [vmem:[%s7234_s11 + $0xc] sm:$0xf] %vm4381_vm7, %v5174_v2  ;;  %v4195_v40 = vadd.f32 %v5697_v59, %v7225_v48  ;;  %v5699_v32 = vadd.f32 %v5664_v62, %v5484_v49  ;;  %v4042_v15 = vpop.f32.mrb[7].mxu0 }
 0x1de   : > { %4383 = vst.msk [vmem:[%s7234_s11 + $0x4] sm:$0xf] %vm4381_vm7, %v5172_v51  ;;  %v4193_v47 = vadd.f32 %v5698_v23, %v7225_v48  ;;  %v5700_v10 = vadd.f32 %v4042_v15, %v1679_v25 }
 0x1df   : > { %v4227_v57 = vmax.f32 %v4195_v40, 0.0  ;;  %v4196_v12 = vadd.f32 %v5699_v32, %v7225_v48 }
 0x1e0   : > { %v4225_v1 = vmax.f32 %v4193_v47, 0.0  ;;  %v4194_v61 = vadd.f32 %v5700_v10, %v7225_v48 }
 0x1e1   : > { %v5177_v56 = vpack.c.bf16 %v4227_v57, %v4227_v57  ;;  %v4228_v34 = vmax.f32 %v4196_v12, 0.0 }
 0x1e2   : > { %v5175_v28 = vpack.c.bf16 %v4225_v1, %v4225_v1  ;;  %v4226_v45 = vmax.f32 %v4194_v61, 0.0  ;;  %v5667_v3 = vpop.f32.mrb[8].mxu0 }
 0x1e3   : > { %4388 = vst.msk [vmem:[%s7234_s11 + $0x18] sm:$0xf] %vm4381_vm7, %v5177_v56  ;;  %v5178_v13 = vpack.c.bf16 %v4228_v34, %v4228_v34  ;;  %v5701_v55 = vadd.f32 %v5667_v3, %v5487_v29  ;;  %v4055_v63 = vpop.f32.mrb[9].mxu0 }
 0x1e4   : > { %4386 = vst.msk [vmem:[%s7234_s11 + $0x10] sm:$0xf] %vm4381_vm7, %v5175_v28  ;;  %v5176_v5 = vpack.c.bf16 %v4226_v45, %v4226_v45  ;;  %v5702_v17 = vadd.f32 %v4055_v63, %v1692_v35  ;;  %v5668_v58 = vpop.f32.mrb[10].mxu0 }
 0x1e5   : > { %4389 = vst.msk [vmem:[%s7234_s11 + $0x1c] sm:$0xf] %vm4381_vm7, %v5178_v13  ;;  %v4199_v27 = vadd.f32 %v5701_v55, %v7225_v48  ;;  %v5703_v9 = vadd.f32 %v5668_v58, %v7210_v50  ;;  %v4058_v4 = vpop.f32.mrb[11].mxu0 }
 0x1e6   : > { %4387 = vst.msk [vmem:[%s7234_s11 + $0x14] sm:$0xf] %vm4381_vm7, %v5176_v5  ;;  %v4197_v18 = vadd.f32 %v5702_v17, %v7225_v48  ;;  %v5704_v19 = vadd.f32 %v4058_v4, %v7212_v26 }
 0x1e7   : > { %v4231_v20 = vmax.f32 %v4199_v27, 0.0  ;;  %v4200_v21 = vadd.f32 %v5703_v9, %v7225_v48 }
 0x1e8   : > { %v4229_v33 = vmax.f32 %v4197_v18, 0.0  ;;  %v4198_v49 = vadd.f32 %v5704_v19, %v7225_v48 }
 0x1e9   : > { %v5181_v25 = vpack.c.bf16 %v4231_v20, %v4231_v20  ;;  %v4232_v29 = vmax.f32 %v4200_v21, 0.0 }
 0x1ea   : > { %v5179_v35 = vpack.c.bf16 %v4229_v33, %v4229_v33  ;;  %v4230_v50 = vmax.f32 %v4198_v49, 0.0  ;;  %v5671_v24 = vpop.f32.mrb[12].mxu0 }
 0x1eb   : > { %4392 = vst.msk [vmem:[%s7234_s11 + $0x28] sm:$0xf] %vm4381_vm7, %v5181_v25  ;;  %v5182_v37 = vpack.c.bf16 %v4232_v29, %v4232_v29  ;;  %v5705_v11 = vadd.f32 %v5671_v24, %v7214_v30  ;;  %v4071_v6 = vpop.f32.mrb[13].mxu0 }
 0x1ec   : > { %4390 = vst.msk [vmem:[%s7234_s11 + $0x20] sm:$0xf] %vm4381_vm7, %v5179_v35  ;;  %v5180_v26 = vpack.c.bf16 %v4230_v50, %v4230_v50  ;;  %v5706_v43 = vadd.f32 %v4071_v6, %v7216_v36  ;;  %v5672_v44 = vpop.f32.mrb[14].mxu0 }
 0x1ed   : > { %4393 = vst.msk [vmem:[%s7234_s11 + $0x2c] sm:$0xf] %vm4381_vm7, %v5182_v37  ;;  %v4203_v8 = vadd.f32 %v5705_v11, %v7225_v48  ;;  %v5707_v42 = vadd.f32 %v5672_v44, %v7218_v16  ;;  %v4074_v7 = vpop.f32.mrb[15].mxu0 }
 0x1ee   : > { %4391 = vst.msk [vmem:[%s7234_s11 + $0x24] sm:$0xf] %vm4381_vm7, %v5180_v26  ;;  %v4201_v41 = vadd.f32 %v5706_v43, %v7225_v48  ;;  %v5708_v30 = vadd.f32 %v4074_v7, %v7220_v39 }
 0x1ef   : > { %v5531_v0 = vpop.f32.mrb[16].mxu1  ;;  %v4235_v52 = vmax.f32 %v4203_v8, 0.0  ;;  %v4204_v36 = vadd.f32 %v5707_v42, %v7225_v48 }
 0x1f0   : > { %v2238_v14 = vpop.f32.mrb[17].mxu1  ;;  %v4233_v53 = vmax.f32 %v4201_v41, 0.0  ;;  %v4202_v22 = vadd.f32 %v5708_v30, %v7225_v48 }
 0x1f1   : > { %v5532_v31 = vpop.f32.mrb[18].mxu1  ;;  %v5185_v16 = vpack.c.bf16 %v4235_v52, %v4235_v52  ;;  %v4236_v54 = vmax.f32 %v4204_v36, 0.0 }
 0x1f2   : > { %v2241_v46 = vpop.f32.mrb[19].mxu1  ;;  %v5183_v38 = vpack.c.bf16 %v4233_v53, %v4233_v53  ;;  %v4234_v2 = vmax.f32 %v4202_v22, 0.0  ;;  %v5675_v59 = vpop.f32.mrb[16].mxu0 }
 0x1f3   : > { %4396 = vst.msk [vmem:[%s7234_s11 + $0x38] sm:$0xf] %vm4381_vm7, %v5185_v16  ;;  %v5186_v39 = vpack.c.bf16 %v4236_v54, %v4236_v54  ;;  %v5709_v60 = vadd.f32 %v5675_v59, %v5531_v0  ;;  %v4087_v51 = vpop.f32.mrb[17].mxu0 }
 0x1f4   : > { %4394 = vst.msk [vmem:[%s7234_s11 + $0x30] sm:$0xf] %vm4381_vm7, %v5183_v38  ;;  %v5184_v23 = vpack.c.bf16 %v4234_v2, %v4234_v2  ;;  %v5710_v62 = vadd.f32 %v4087_v51, %v2238_v14  ;;  %v5676_v40 = vpop.f32.mrb[18].mxu0 }
 0x1f5   : > { %4397 = vst.msk [vmem:[%s7234_s11 + $0x3c] sm:$0xf] %vm4381_vm7, %v5186_v39  ;;  %v4207_v32 = vadd.f32 %v5709_v60, %v7225_v48  ;;  %v5711_v15 = vadd.f32 %v5676_v40, %v5532_v31  ;;  %v4090_v47 = vpop.f32.mrb[19].mxu0 }
 0x1f6   : > { %4395 = vst.msk [vmem:[%s7234_s11 + $0x34] sm:$0xf] %vm4381_vm7, %v5184_v23  ;;  %v4205_v10 = vadd.f32 %v5710_v62, %v7225_v48  ;;  %v5712_v57 = vadd.f32 %v4090_v47, %v2241_v46 }
 0x1f7   : > { %v5535_v12 = vpop.f32.mrb[20].mxu1  ;;  %v4239_v1 = vmax.f32 %v4207_v32, 0.0  ;;  %v4208_v61 = vadd.f32 %v5711_v15, %v7225_v48 }
 0x1f8   : > { %v2254_v56 = vpop.f32.mrb[21].mxu1  ;;  %v4237_v34 = vmax.f32 %v4205_v10, 0.0  ;;  %v4206_v28 = vadd.f32 %v5712_v57, %v7225_v48 }
 0x1f9   : > { %v5536_v45 = vpop.f32.mrb[22].mxu1  ;;  %v5189_v3 = vpack.c.bf16 %v4239_v1, %v4239_v1  ;;  %v4240_v13 = vmax.f32 %v4208_v61, 0.0 }
 0x1fa   : > { %v2257_v55 = vpop.f32.mrb[23].mxu1  ;;  %v5187_v63 = vpack.c.bf16 %v4237_v34, %v4237_v34  ;;  %v4238_v5 = vmax.f32 %v4206_v28, 0.0  ;;  %v5679_v17 = vpop.f32.mrb[20].mxu0 }
 0x1fb   : > { %4400 = vst.msk [vmem:[%s7234_s11 + $0x48] sm:$0xf] %vm4381_vm7, %v5189_v3  ;;  %v5190_v58 = vpack.c.bf16 %v4240_v13, %v4240_v13  ;;  %v5713_v27 = vadd.f32 %v5679_v17, %v5535_v12  ;;  %v4103_v9 = vpop.f32.mrb[21].mxu0 }
 0x1fc   : > { %4398 = vst.msk [vmem:[%s7234_s11 + $0x40] sm:$0xf] %vm4381_vm7, %v5187_v63  ;;  %v5188_v4 = vpack.c.bf16 %v4238_v5, %v4238_v5  ;;  %v5714_v18 = vadd.f32 %v4103_v9, %v2254_v56  ;;  %v5680_v19 = vpop.f32.mrb[22].mxu0 }
 0x1fd   : > { %4401 = vst.msk [vmem:[%s7234_s11 + $0x4c] sm:$0xf] %vm4381_vm7, %v5190_v58  ;;  %v4211_v20 = vadd.f32 %v5713_v27, %v7225_v48  ;;  %v5715_v21 = vadd.f32 %v5680_v19, %v5536_v45  ;;  %v4106_v33 = vpop.f32.mrb[23].mxu0 }
 0x1fe   : > { %4399 = vst.msk [vmem:[%s7234_s11 + $0x44] sm:$0xf] %vm4381_vm7, %v5188_v4  ;;  %v4209_v49 = vadd.f32 %v5714_v18, %v7225_v48  ;;  %v5716_v25 = vadd.f32 %v4106_v33, %v2257_v55 }
 0x1ff   : > { %v5539_v29 = vpop.f32.mrb[24].mxu1  ;;  %v4243_v35 = vmax.f32 %v4211_v20, 0.0  ;;  %v4212_v50 = vadd.f32 %v5715_v21, %v7225_v48 }
 0x200   : > { %v2270_v24 = vpop.f32.mrb[25].mxu1  ;;  %v4241_v37 = vmax.f32 %v4209_v49, 0.0  ;;  %v4210_v11 = vadd.f32 %v5716_v25, %v7225_v48 }
 0x201   : > { %v5540_v6 = vpop.f32.mrb[26].mxu1  ;;  %v5193_v26 = vpack.c.bf16 %v4243_v35, %v4243_v35  ;;  %v4244_v43 = vmax.f32 %v4212_v50, 0.0 }
 0x202   : > { %v2273_v44 = vpop.f32.mrb[27].mxu1  ;;  %v5191_v8 = vpack.c.bf16 %v4241_v37, %v4241_v37  ;;  %v4242_v42 = vmax.f32 %v4210_v11, 0.0  ;;  %v5683_v7 = vpop.f32.mrb[24].mxu0 }
 0x203   : > { %4404 = vst.msk [vmem:[%s7234_s11 + $0x58] sm:$0xf] %vm4381_vm7, %v5193_v26  ;;  %v5194_v41 = vpack.c.bf16 %v4244_v43, %v4244_v43  ;;  %v5717_v30 = vadd.f32 %v5683_v7, %v5539_v29  ;;  %v4119_v0 = vpop.f32.mrb[25].mxu0 }
 0x204   : > { %4402 = vst.msk [vmem:[%s7234_s11 + $0x50] sm:$0xf] %vm4381_vm7, %v5191_v8  ;;  %v5192_v52 = vpack.c.bf16 %v4242_v42, %v4242_v42  ;;  %v5718_v36 = vadd.f32 %v4119_v0, %v2270_v24  ;;  %v5684_v14 = vpop.f32.mrb[26].mxu0 }
 0x205   : > { %4405 = vst.msk [vmem:[%s7234_s11 + $0x5c] sm:$0xf] %vm4381_vm7, %v5194_v41  ;;  %v4215_v53 = vadd.f32 %v5717_v30, %v7225_v48  ;;  %v5719_v22 = vadd.f32 %v5684_v14, %v5540_v6  ;;  %v4122_v31 = vpop.f32.mrb[27].mxu0 }
 0x206   : > { %4403 = vst.msk [vmem:[%s7234_s11 + $0x54] sm:$0xf] %vm4381_vm7, %v5192_v52  ;;  %v4213_v16 = vadd.f32 %v5718_v36, %v7225_v48  ;;  %v5720_v54 = vadd.f32 %v4122_v31, %v2273_v44 }
 0x207   : > { %v5543_v46 = vpop.f32.mrb[28].mxu1  ;;  %v4247_v38 = vmax.f32 %v4215_v53, 0.0  ;;  %v4216_v2 = vadd.f32 %v5719_v22, %v7225_v48 }
 0x208   : > { %v2286_v59 = vpop.f32.mrb[29].mxu1  ;;  %v4245_v39 = vmax.f32 %v4213_v16, 0.0  ;;  %v4214_v60 = vadd.f32 %v5720_v54, %v7225_v48 }
 0x209   : > { %v5544_v51 = vpop.f32.mrb[30].mxu1  ;;  %v5197_v23 = vpack.c.bf16 %v4247_v38, %v4247_v38  ;;  %v4248_v62 = vmax.f32 %v4216_v2, 0.0 }
 0x20a   : > { %v2289_v40 = vpop.f32.mrb[31].mxu1  ;;  %v5195_v32 = vpack.c.bf16 %v4245_v39, %v4245_v39  ;;  %v4246_v15 = vmax.f32 %v4214_v60, 0.0  ;;  %v5687_v47 = vpop.f32.mrb[28].mxu0 }
 0x20b   : > { %4408 = vst.msk [vmem:[%s7234_s11 + $0x68] sm:$0xf] %vm4381_vm7, %v5197_v23  ;;  %v5198_v10 = vpack.c.bf16 %v4248_v62, %v4248_v62  ;;  %v5721_v57 = vadd.f32 %v5687_v47, %v5543_v46  ;;  %v4135_v12 = vpop.f32.mrb[29].mxu0 }
 0x20c   : > { %4406 = vst.msk [vmem:[%s7234_s11 + $0x60] sm:$0xf] %vm4381_vm7, %v5195_v32  ;;  %v5196_v1 = vpack.c.bf16 %v4246_v15, %v4246_v15  ;;  %v5722_v61 = vadd.f32 %v4135_v12, %v2286_v59  ;;  %v5688_v56 = vpop.f32.mrb[30].mxu0 }
 0x20d   : > { %4409 = vst.msk [vmem:[%s7234_s11 + $0x6c] sm:$0xf] %vm4381_vm7, %v5198_v10  ;;  %v4219_v34 = vadd.f32 %v5721_v57, %v7225_v48  ;;  %v5723_v28 = vadd.f32 %v5688_v56, %v5544_v51  ;;  %v4138_v45 = vpop.f32.mrb[31].mxu0 }
 0x20e   : > { %4407 = vst.msk [vmem:[%s7234_s11 + $0x64] sm:$0xf] %vm4381_vm7, %v5196_v1  ;;  %v4217_v3 = vadd.f32 %v5722_v61, %v7225_v48  ;;  %v5724_v13 = vadd.f32 %v4138_v45, %v2289_v40 }
 0x20f   : > { %v4251_v55 = vmax.f32 %v4219_v34, 0.0  ;;  %v4220_v63 = vadd.f32 %v5723_v28, %v7225_v48 }
 0x210   : > { %v4249_v5 = vmax.f32 %v4217_v3, 0.0  ;;  %v4218_v17 = vadd.f32 %v5724_v13, %v7225_v48 }
 0x211   : > { %v5201_v58 = vpack.c.bf16 %v4251_v55, %v4251_v55  ;;  %v4252_v27 = vmax.f32 %v4220_v63, 0.0 }
 0x212   : > { %v5199_v9 = vpack.c.bf16 %v4249_v5, %v4249_v5  ;;  %v4250_v4 = vmax.f32 %v4218_v17, 0.0 }
 0x213   : > { %4412 = vst.msk [vmem:[%s7234_s11 + $0x78] sm:$0xf] %vm4381_vm7, %v5201_v58  ;;  %v5202_v18 = vpack.c.bf16 %v4252_v27, %v4252_v27 }
 0x214   : > { %4410 = vst.msk [vmem:[%s7234_s11 + $0x70] sm:$0xf] %vm4381_vm7, %v5199_v9  ;;  %v5200_v19 = vpack.c.bf16 %v4250_v4, %v4250_v4 }
 0x215   : > { %4413 = vst.msk [vmem:[%s7234_s11 + $0x7c] sm:$0xf] %vm4381_vm7, %v5202_v18 }
 0x216   : > { %4411 = vst.msk [vmem:[%s7234_s11 + $0x74] sm:$0xf] %vm4381_vm7, %v5200_v19 }
 0x217 PF: > { %s13_s12 = sadd.s32 1, %s6052_s12  }
 0x218   : > { %p10_p4 = scmp.ge.s32.totalorder %s13_s12, 4  }
 0x21a   :  { %12 = sbr.rel (!%p10_p4) target bundleno = 1 (0x1), region = 72 }

</bundles_post_ra>
